<compile_context>
chip_gen: v6e
topology: v6e:2x2x1
jax: 0.10.0
libtpu: 0.0.40
codegen_flags: <defaults>
</compile_context>

<pallas_src>
from functools import partial

import jax
import jax.numpy as jnp
from jax.experimental import pallas as pl
from jax.experimental.pallas import tpu as pltpu


def _make_fused_chain_kernel(H, W, chans):
    """Kernel running the whole conv3x3 + FiLM + ReLU chain on one batch
    element per grid step.  `chans` = (C0, C1, ..., Cn) per-stage channels."""
    n_stages = len(chans) - 1
    Cout_last = chans[-1]

    def kernel(*refs):
        x_ref = refs[0]                              # (1, H, W, C0)
        stage_refs = refs[1:1 + 3 * n_stages]        # per stage: w2d, scale, shift
        o_ref = refs[1 + 3 * n_stages]               # (1, H, W*Cout) lane-dense slab
        pad_refs = refs[2 + 3 * n_stages:]           # per stage: (H+2, W+2, Cs)

        cur = x_ref[0]                               # (H, W, C0), operand dtype
        for s in range(n_stages):
            w_ref = stage_refs[3 * s]                # (9*Cs, Cn)
            scale_ref = stage_refs[3 * s + 1]        # (1, Cn) f32
            shift_ref = stage_refs[3 * s + 2]        # (1, Cn) f32
            pad_ref = pad_refs[s]                    # (H+2, W+2, Cs) VMEM scratch
            Cs, Cn = chans[s], chans[s + 1]
            zdt = pad_ref.dtype

            # Zero ONLY the 1-pixel border; the interior is fully overwritten
            # below every step, so a full-buffer memset is never needed.
            # (Done every step -- not gated on program_id==0 -- so it is safe
            #  under megacore-parallel partitioning of the batch grid axis.)
            pad_ref[0:1, :, :] = jnp.zeros((1, W + 2, Cs), zdt)
            pad_ref[H + 1:H + 2, :, :] = jnp.zeros((1, W + 2, Cs), zdt)
            pad_ref[:, 0:1, :] = jnp.zeros((H + 2, 1, Cs), zdt)
            pad_ref[:, W + 1:W + 2, :] = jnp.zeros((H + 2, 1, Cs), zdt)
            pad_ref[1:H + 1, 1:W + 1, :] = cur.astype(zdt)

            if Cs < 128:
                # Small Cin: a single big-K im2col matmul keeps the MXU fed
                # (K = 9*Cs); the (H, W, Cs)->(H*W, Cs) reshape only merges
                # the two major dims (supported, costs a repack copy).
                cols = [pad_ref[kh:kh + H, kw:kw + W, :].reshape(H * W, Cs)
                        for kh in range(3) for kw in range(3)]
                patches = jnp.concatenate(cols, axis=-1)        # (H*W, 9*Cs)
                y = jnp.dot(patches, w_ref[...],
                            preferred_element_type=jnp.float32)  # (H*W, Cn) f32
            else:
                # Large Cin: 9 accumulating matmuls -- no 9x patches buffer
                # (the main VMEM hog), K = Cs already saturates MXU cadence.
                y = jnp.zeros((H * W, Cn), jnp.float32)
                for k in range(9):
                    kh, kw = k // 3, k % 3
                    win = pad_ref[kh:kh + H, kw:kw + W, :].reshape(H * W, Cs)
                    y = y + jnp.dot(win, w_ref[k * Cs:(k + 1) * Cs, :],
                                    preferred_element_type=jnp.float32)

            # FiLM (per-channel scale/shift) + ReLU epilogue in f32.
            y = jnp.maximum(y * scale_ref[...] + shift_ref[...], 0.0)
            cur = y.reshape(H, W, Cn)                # major-dim split; stays on-chip

        # Lane-dense store into the (1, H, W*Cout) output block: W static
        # slice-stores (unmasked & lane-aligned whenever Cout % 128 == 0);
        # the HBM writeback DMA then runs over a dense (H, W*Cout) buffer.
        for w in range(W):
            o_ref[0, :, w * Cout_last:(w + 1) * Cout_last] = (
                cur[:, w, :].astype(o_ref.dtype))

    return kernel


def _vmem_limit_bytes(H, W, chans, operand_dtype, out_dtype):
    """Rough working-set estimate -> scoped-VMEM limit (clamped for v7x)."""
    op = jnp.dtype(operand_dtype).itemsize
    f32 = 4
    est = 2 * H * W * chans[0] * op                              # input block (2-buf)
    est += 2 * H * W * chans[-1] * jnp.dtype(out_dtype).itemsize  # output block (2-buf)
    for s in range(len(chans) - 1):
        cs, cn = chans[s], chans[s + 1]
        est += 2 * (9 * cs * cn * op + 2 * cn * f32)             # weights/scale/shift
        est += (H + 2) * (W + 2) * cs * op                       # padded scratch
        est += H * W * cn * f32                                  # conv result
        if cs < 128:
            est += H * W * 9 * cs * op                           # im2col patches
    return int(min(max(2 * est, 32 * 1024 * 1024), 48 * 1024 * 1024))


def conv3x3_film_relu_chain_nhwc(x_nhwc, stages, operand_dtype=None):
    """Run the whole chain of (3x3 conv -> FiLM -> ReLU) stages in ONE fused
    Pallas kernel.  `stages` = [(w_hwio, scale, shift), ...].

    operand_dtype: dtype of the matmul operands / padded scratch.  Pass
    jnp.bfloat16 on v6e/v7x for 2x MXU rate and half the VMEM footprint
    (accumulation and the FiLM/ReLU epilogue stay f32)."""
    N, H, W, C0 = x_nhwc.shape
    operand_dtype = jnp.dtype(operand_dtype or x_nhwc.dtype)
    out_dtype = x_nhwc.dtype

    chans = [C0]
    flat_inputs = [x_nhwc.astype(operand_dtype)]
    in_specs = [pl.BlockSpec((1, H, W, C0), lambda n: (n, 0, 0, 0))]
    for w_hwio, scale, shift in stages:
        kh, kw, cin, cout = w_hwio.shape
        assert (kh, kw) == (3, 3) and cin == chans[-1]
        chans.append(cout)
        # (3,3,Cin,Cout) -> (9*Cin, Cout): row index (kh*3+kw)*Cin + ci matches
        # both in-kernel conv paths.  Pure wrapper glue.
        flat_inputs += [
            w_hwio.reshape(9 * cin, cout).astype(operand_dtype),
            scale.reshape(1, cout).astype(jnp.float32),
            shift.reshape(1, cout).astype(jnp.float32),
        ]
        in_specs += [
            pl.BlockSpec((9 * cin, cout), lambda n: (0, 0)),
            pl.BlockSpec((1, cout), lambda n: (0, 0)),
            pl.BlockSpec((1, cout), lambda n: (0, 0)),
        ]
    Cout = chans[-1]

    kernel = _make_fused_chain_kernel(H, W, tuple(chans))
    out_slab = pl.pallas_call(
        kernel,
        # Lane-dense output slab: minor dim is W*Cout, not Cout.
        out_shape=jax.ShapeDtypeStruct((N, H, W * Cout), out_dtype),
        grid_spec=pltpu.PrefetchScalarGridSpec(
            num_scalar_prefetch=0,
            grid=(N,),
            in_specs=in_specs,
            out_specs=pl.BlockSpec((1, H, W * Cout), lambda n: (n, 0, 0)),
            # Per-stage padded-activation scratch: the intermediate tensor
            # lives here and never round-trips to HBM.
            scratch_shapes=[pltpu.VMEM((H + 2, W + 2, c), operand_dtype)
                            for c in chans[:-1]]),
        compiler_params=pltpu.CompilerParams(
            dimension_semantics=("parallel",),          # batch axis independent
            vmem_limit_bytes=_vmem_limit_bytes(H, W, chans,
                                               operand_dtype, out_dtype)),
    )(*flat_inputs)
    return out_slab.reshape(N, H, W, Cout)              # free wrapper glue


class AlterModuleSeqPallas:
    """JAX/Pallas equivalent of AlterModuleSeq: chain modules, each taking
    (x, **add_par).  Every module here is a conv3x3 + FiLM + ReLU stage; the
    whole chain is executed by a single fused Pallas kernel."""

    def __init__(self, stage_weights, operand_dtype=None):
        # stage_weights: list of dicts with key 'w_hwio' (3,3,Cin,Cout)
        self.stage_weights = list(stage_weights)
        self.operand_dtype = operand_dtype

    def __len__(self):
        return len(self.stage_weights)

    def forward(self, x_nchw, add_pars):
        """x_nchw: (N, C, H, W) PyTorch layout; add_pars: list[dict]."""
        assert len(add_pars) == len(self)
        x = jnp.transpose(x_nchw, (0, 2, 3, 1))          # NCHW -> NHWC (glue)
        stages = [(p['w_hwio'], a['scale'], a['shift'])
                  for p, a in zip(self.stage_weights, add_pars)]
        y = conv3x3_film_relu_chain_nhwc(x, stages,
                                         operand_dtype=self.operand_dtype)
        return jnp.transpose(y, (0, 3, 1, 2))            # NHWC -> NCHW (glue)


def _ref_forward(x_nchw, stage_weights, add_pars):
    """Pure-JAX reference mirroring the PyTorch semantics (NCHW conv)."""
    x = x_nchw
    for params, add_par in zip(stage_weights, add_pars):
        w_oihw = jnp.transpose(params['w_hwio'], (3, 2, 0, 1))
        y = jax.lax.conv_general_dilated(
            x, w_oihw, window_strides=(1, 1), padding='SAME',
            dimension_numbers=('NCHW', 'OIHW', 'NCHW'),
            precision=jax.lax.Precision.HIGHEST)
        scale = add_par['scale'].reshape(1, -1, 1, 1)
        shift = add_par['shift'].reshape(1, -1, 1, 1)
        x = jnp.maximum(y * scale + shift, 0.0)
    return x


if __name__ == "__main__":
    key = jax.random.PRNGKey(0)
    N, C, H, W = 2, 4, 16, 16
    n_stages = 2

    keys = jax.random.split(key, 1 + 3 * n_stages)
    x = jax.random.normal(keys[0], (N, C, H, W), dtype=jnp.float32)

    stage_weights = []
    add_pars = []
    for s in range(n_stages):
        kw_, ks_, kb_ = keys[1 + 3 * s: 4 + 3 * s]
        stage_weights.append({
            'w_hwio': 0.1 * jax.random.normal(kw_, (3, 3, C, C),
                                              dtype=jnp.float32),
        })
        add_pars.append({
            'scale': 1.0 + 0.1 * jax.random.normal(ks_, (C,), dtype=jnp.float32),
            'shift': 0.1 * jax.random.normal(kb_, (C,), dtype=jnp.float32),
        })

    model = AlterModuleSeqPallas(stage_weights)      # f32 operands for exactness
    out = jax.block_until_ready(model.forward(x, add_pars))

    ref = jax.block_until_ready(_ref_forward(x, stage_weights, add_pars))
    assert out.shape == (N, C, H, W)
    assert out.dtype == x.dtype
    # MXU default precision on f32 operands may use bf16 passes -> modest tol.
    assert jnp.allclose(out, ref, atol=3e-3, rtol=3e-3), \
        f"max abs err {jnp.max(jnp.abs(out - ref))}"
    print("KERNEL_OK")
</pallas_src>

<mosaic_0001>
module attributes {stable_mosaic.version = 11 : i64} {
  func.func @kernel(%arg0: i32, %arg1: memref<1x16x16x4xf32, #tpu.memory_space<vmem>>, %arg2: memref<36x4xf32, #tpu.memory_space<vmem>>, %arg3: memref<1x4xf32, #tpu.memory_space<vmem>>, %arg4: memref<1x4xf32, #tpu.memory_space<vmem>>, %arg5: memref<36x4xf32, #tpu.memory_space<vmem>>, %arg6: memref<1x4xf32, #tpu.memory_space<vmem>>, %arg7: memref<1x4xf32, #tpu.memory_space<vmem>>, %arg8: memref<1x16x64xf32, #tpu.memory_space<vmem>>, %arg9: memref<18x18x4xf32, #tpu.memory_space<vmem>>, %arg10: memref<18x18x4xf32, #tpu.memory_space<vmem>>) attributes {dimension_semantics = [#tpu.dimension_semantics<parallel>], iteration_bounds = array<i64: 2>, scalar_prefetch = 0 : i64, scratch_operands = 2 : i64, tpu.core_type = #tpu.core_type<tc>, window_params = [{transform_indices = @transform_0, window_bounds = array<i64: 1, 16, 16, 4>}, {pipeline_mode = #tpu.pipeline_mode<synchronous>, transform_indices = @transform_1, window_bounds = array<i64: 36, 4>}, {pipeline_mode = #tpu.pipeline_mode<synchronous>, transform_indices = @transform_2, window_bounds = array<i64: 1, 4>}, {pipeline_mode = #tpu.pipeline_mode<synchronous>, transform_indices = @transform_3, window_bounds = array<i64: 1, 4>}, {pipeline_mode = #tpu.pipeline_mode<synchronous>, transform_indices = @transform_4, window_bounds = array<i64: 36, 4>}, {pipeline_mode = #tpu.pipeline_mode<synchronous>, transform_indices = @transform_5, window_bounds = array<i64: 1, 4>}, {pipeline_mode = #tpu.pipeline_mode<synchronous>, transform_indices = @transform_6, window_bounds = array<i64: 1, 4>}, {transform_indices = @transform_7, window_bounds = array<i64: 1, 16, 64>}]} {
    %c0 = arith.constant 0 : index
    %c0_0 = arith.constant 0 : index
    %c0_1 = arith.constant 0 : index
    %c0_2 = arith.constant 0 : index
    %0 = vector.load %arg1[%c0, %c0_0, %c0_1, %c0_2] : memref<1x16x16x4xf32, #tpu.memory_space<vmem>>, vector<1x16x16x4xf32>
    %1 = vector.shape_cast %0 : vector<1x16x16x4xf32> to vector<16x16x4xf32>
    %cst = arith.constant 0.000000e+00 : f32
    %2 = vector.broadcast %cst : f32 to vector<1x18x4xf32>
    %c0_3 = arith.constant 0 : index
    %c0_4 = arith.constant 0 : index
    %c0_5 = arith.constant 0 : index
    %3 = vector.load %arg9[%c0_3, %c0_4, %c0_5] : memref<18x18x4xf32, #tpu.memory_space<vmem>>, vector<1x18x4xf32>
    tpu.vector_store %arg9[%c0_3, %c0_4, %c0_5], %2 {strides = array<i32>} : memref<18x18x4xf32, #tpu.memory_space<vmem>>, vector<1x18x4xf32>,
    %cst_6 = arith.constant 0.000000e+00 : f32
    %4 = vector.broadcast %cst_6 : f32 to vector<1x18x4xf32>
    %c17 = arith.constant 17 : index
    %c0_7 = arith.constant 0 : index
    %c0_8 = arith.constant 0 : index
    %5 = vector.load %arg9[%c17, %c0_7, %c0_8] : memref<18x18x4xf32, #tpu.memory_space<vmem>>, vector<1x18x4xf32>
    tpu.vector_store %arg9[%c17, %c0_7, %c0_8], %4 {strides = array<i32>} : memref<18x18x4xf32, #tpu.memory_space<vmem>>, vector<1x18x4xf32>,
    %cst_9 = arith.constant 0.000000e+00 : f32
    %6 = vector.broadcast %cst_9 : f32 to vector<18x1x4xf32>
    %c0_10 = arith.constant 0 : index
    %c0_11 = arith.constant 0 : index
    %c0_12 = arith.constant 0 : index
    %7 = vector.load %arg9[%c0_10, %c0_11, %c0_12] : memref<18x18x4xf32, #tpu.memory_space<vmem>>, vector<18x1x4xf32>
    tpu.vector_store %arg9[%c0_10, %c0_11, %c0_12], %6 {strides = array<i32>} : memref<18x18x4xf32, #tpu.memory_space<vmem>>, vector<18x1x4xf32>,
    %cst_13 = arith.constant 0.000000e+00 : f32
    %8 = vector.broadcast %cst_13 : f32 to vector<18x1x4xf32>
    %c0_14 = arith.constant 0 : index
    %c17_15 = arith.constant 17 : index
    %c0_16 = arith.constant 0 : index
    %9 = vector.load %arg9[%c0_14, %c17_15, %c0_16] : memref<18x18x4xf32, #tpu.memory_space<vmem>>, vector<18x1x4xf32>
    tpu.vector_store %arg9[%c0_14, %c17_15, %c0_16], %8 {strides = array<i32>} : memref<18x18x4xf32, #tpu.memory_space<vmem>>, vector<18x1x4xf32>,
    %c1 = arith.constant 1 : index
    %c1_17 = arith.constant 1 : index
    %c0_18 = arith.constant 0 : index
    %10 = vector.load %arg9[%c1, %c1_17, %c0_18] : memref<18x18x4xf32, #tpu.memory_space<vmem>>, vector<16x16x4xf32>
    tpu.vector_store %arg9[%c1, %c1_17, %c0_18], %1 {strides = array<i32>} : memref<18x18x4xf32, #tpu.memory_space<vmem>>, vector<16x16x4xf32>,
    %c0_19 = arith.constant 0 : index
    %c0_20 = arith.constant 0 : index
    %c0_21 = arith.constant 0 : index
    %11 = vector.load %arg9[%c0_19, %c0_20, %c0_21] : memref<18x18x4xf32, #tpu.memory_space<vmem>>, vector<16x16x4xf32>
    %12 = vector.shape_cast %11 : vector<16x16x4xf32> to vector<256x4xf32>
    %c0_22 = arith.constant 0 : index
    %c1_23 = arith.constant 1 : index
    %c0_24 = arith.constant 0 : index
    %13 = vector.load %arg9[%c0_22, %c1_23, %c0_24] : memref<18x18x4xf32, #tpu.memory_space<vmem>>, vector<16x16x4xf32>
    %14 = vector.shape_cast %13 : vector<16x16x4xf32> to vector<256x4xf32>
    %c0_25 = arith.constant 0 : index
    %c2 = arith.constant 2 : index
    %c0_26 = arith.constant 0 : index
    %15 = vector.load %arg9[%c0_25, %c2, %c0_26] : memref<18x18x4xf32, #tpu.memory_space<vmem>>, vector<16x16x4xf32>
    %16 = vector.shape_cast %15 : vector<16x16x4xf32> to vector<256x4xf32>
    %c1_27 = arith.constant 1 : index
    %c0_28 = arith.constant 0 : index
    %c0_29 = arith.constant 0 : index
    %17 = vector.load %arg9[%c1_27, %c0_28, %c0_29] : memref<18x18x4xf32, #tpu.memory_space<vmem>>, vector<16x16x4xf32>
    %18 = vector.shape_cast %17 : vector<16x16x4xf32> to vector<256x4xf32>
    %c1_30 = arith.constant 1 : index
    %c1_31 = arith.constant 1 : index
    %c0_32 = arith.constant 0 : index
    %19 = vector.load %arg9[%c1_30, %c1_31, %c0_32] : memref<18x18x4xf32, #tpu.memory_space<vmem>>, vector<16x16x4xf32>
    %20 = vector.shape_cast %19 : vector<16x16x4xf32> to vector<256x4xf32>
    %c1_33 = arith.constant 1 : index
    %c2_34 = arith.constant 2 : index
    %c0_35 = arith.constant 0 : index
    %21 = vector.load %arg9[%c1_33, %c2_34, %c0_35] : memref<18x18x4xf32, #tpu.memory_space<vmem>>, vector<16x16x4xf32>
    %22 = vector.shape_cast %21 : vector<16x16x4xf32> to vector<256x4xf32>
    %c2_36 = arith.constant 2 : index
    %c0_37 = arith.constant 0 : index
    %c0_38 = arith.constant 0 : index
    %23 = vector.load %arg9[%c2_36, %c0_37, %c0_38] : memref<18x18x4xf32, #tpu.memory_space<vmem>>, vector<16x16x4xf32>
    %24 = vector.shape_cast %23 : vector<16x16x4xf32> to vector<256x4xf32>
    %c2_39 = arith.constant 2 : index
    %c1_40 = arith.constant 1 : index
    %c0_41 = arith.constant 0 : index
    %25 = vector.load %arg9[%c2_39, %c1_40, %c0_41] : memref<18x18x4xf32, #tpu.memory_space<vmem>>, vector<16x16x4xf32>
    %26 = vector.shape_cast %25 : vector<16x16x4xf32> to vector<256x4xf32>
    %c2_42 = arith.constant 2 : index
    %c2_43 = arith.constant 2 : index
    %c0_44 = arith.constant 0 : index
    %27 = vector.load %arg9[%c2_42, %c2_43, %c0_44] : memref<18x18x4xf32, #tpu.memory_space<vmem>>, vector<16x16x4xf32>
    %28 = vector.shape_cast %27 : vector<16x16x4xf32> to vector<256x4xf32>
    %29 = tpu.concatenate %12, %14, %16, %18, %20, %22, %24, %26, %28 in 1 : vector<256x4xf32>, vector<256x4xf32>, vector<256x4xf32>, vector<256x4xf32>, vector<256x4xf32>, vector<256x4xf32>, vector<256x4xf32>, vector<256x4xf32>, vector<256x4xf32> -> vector<256x36xf32>
    %c0_45 = arith.constant 0 : index
    %c0_46 = arith.constant 0 : index
    %30 = vector.load %arg2[%c0_45, %c0_46] : memref<36x4xf32, #tpu.memory_space<vmem>>, vector<36x4xf32>
    %cst_47 = arith.constant dense<0.000000e+00> : vector<256x4xf32>
    %31 = tpu.matmul %29, %30, %cst_47 {dimension_numbers = #tpu.dot_dimension_numbers<[1], [0], [0], [1], [0, 0, 1, 1], [], []>} : vector<256x36xf32>, vector<36x4xf32>, vector<256x4xf32> -> vector<256x4xf32>
    %c0_48 = arith.constant 0 : index
    %c0_49 = arith.constant 0 : index
    %32 = vector.load %arg3[%c0_48, %c0_49] : memref<1x4xf32, #tpu.memory_space<vmem>>, vector<1x4xf32>
    %33 = vector.broadcast %32 : vector<1x4xf32> to vector<256x4xf32>
    %34 = arith.mulf %31, %33 : vector<256x4xf32>
    %c0_50 = arith.constant 0 : index
    %c0_51 = arith.constant 0 : index
    %35 = vector.load %arg4[%c0_50, %c0_51] : memref<1x4xf32, #tpu.memory_space<vmem>>, vector<1x4xf32>
    %36 = vector.broadcast %35 : vector<1x4xf32> to vector<256x4xf32>
    %37 = arith.addf %34, %36 : vector<256x4xf32>
    %cst_52 = arith.constant 0.000000e+00 : f32
    %38 = vector.broadcast %cst_52 : f32 to vector<256x4xf32>
    %39 = arith.maximumf %37, %38 : vector<256x4xf32>
    %40 = vector.shape_cast %39 : vector<256x4xf32> to vector<16x16x4xf32>
    %cst_53 = arith.constant 0.000000e+00 : f32
    %41 = vector.broadcast %cst_53 : f32 to vector<1x18x4xf32>
    %c0_54 = arith.constant 0 : index
    %c0_55 = arith.constant 0 : index
    %c0_56 = arith.constant 0 : index
    %42 = vector.load %arg10[%c0_54, %c0_55, %c0_56] : memref<18x18x4xf32, #tpu.memory_space<vmem>>, vector<1x18x4xf32>
    tpu.vector_store %arg10[%c0_54, %c0_55, %c0_56], %41 {strides = array<i32>} : memref<18x18x4xf32, #tpu.memory_space<vmem>>, vector<1x18x4xf32>,
    %cst_57 = arith.constant 0.000000e+00 : f32
    %43 = vector.broadcast %cst_57 : f32 to vector<1x18x4xf32>
    %c17_58 = arith.constant 17 : index
    %c0_59 = arith.constant 0 : index
    %c0_60 = arith.constant 0 : index
    %44 = vector.load %arg10[%c17_58, %c0_59, %c0_60] : memref<18x18x4xf32, #tpu.memory_space<vmem>>, vector<1x18x4xf32>
    tpu.vector_store %arg10[%c17_58, %c0_59, %c0_60], %43 {strides = array<i32>} : memref<18x18x4xf32, #tpu.memory_space<vmem>>, vector<1x18x4xf32>,
    %cst_61 = arith.constant 0.000000e+00 : f32
    %45 = vector.broadcast %cst_61 : f32 to vector<18x1x4xf32>
    %c0_62 = arith.constant 0 : index
    %c0_63 = arith.constant 0 : index
    %c0_64 = arith.constant 0 : index
    %46 = vector.load %arg10[%c0_62, %c0_63, %c0_64] : memref<18x18x4xf32, #tpu.memory_space<vmem>>, vector<18x1x4xf32>
    tpu.vector_store %arg10[%c0_62, %c0_63, %c0_64], %45 {strides = array<i32>} : memref<18x18x4xf32, #tpu.memory_space<vmem>>, vector<18x1x4xf32>,
    %cst_65 = arith.constant 0.000000e+00 : f32
    %47 = vector.broadcast %cst_65 : f32 to vector<18x1x4xf32>
    %c0_66 = arith.constant 0 : index
    %c17_67 = arith.constant 17 : index
    %c0_68 = arith.constant 0 : index
    %48 = vector.load %arg10[%c0_66, %c17_67, %c0_68] : memref<18x18x4xf32, #tpu.memory_space<vmem>>, vector<18x1x4xf32>
    tpu.vector_store %arg10[%c0_66, %c17_67, %c0_68], %47 {strides = array<i32>} : memref<18x18x4xf32, #tpu.memory_space<vmem>>, vector<18x1x4xf32>,
    %c1_69 = arith.constant 1 : index
    %c1_70 = arith.constant 1 : index
    %c0_71 = arith.constant 0 : index
    %49 = vector.load %arg10[%c1_69, %c1_70, %c0_71] : memref<18x18x4xf32, #tpu.memory_space<vmem>>, vector<16x16x4xf32>
    tpu.vector_store %arg10[%c1_69, %c1_70, %c0_71], %40 {strides = array<i32>} : memref<18x18x4xf32, #tpu.memory_space<vmem>>, vector<16x16x4xf32>,
    %c0_72 = arith.constant 0 : index
    %c0_73 = arith.constant 0 : index
    %c0_74 = arith.constant 0 : index
    %50 = vector.load %arg10[%c0_72, %c0_73, %c0_74] : memref<18x18x4xf32, #tpu.memory_space<vmem>>, vector<16x16x4xf32>
    %51 = vector.shape_cast %50 : vector<16x16x4xf32> to vector<256x4xf32>
    %c0_75 = arith.constant 0 : index
    %c1_76 = arith.constant 1 : index
    %c0_77 = arith.constant 0 : index
    %52 = vector.load %arg10[%c0_75, %c1_76, %c0_77] : memref<18x18x4xf32, #tpu.memory_space<vmem>>, vector<16x16x4xf32>
    %53 = vector.shape_cast %52 : vector<16x16x4xf32> to vector<256x4xf32>
    %c0_78 = arith.constant 0 : index
    %c2_79 = arith.constant 2 : index
    %c0_80 = arith.constant 0 : index
    %54 = vector.load %arg10[%c0_78, %c2_79, %c0_80] : memref<18x18x4xf32, #tpu.memory_space<vmem>>, vector<16x16x4xf32>
    %55 = vector.shape_cast %54 : vector<16x16x4xf32> to vector<256x4xf32>
    %c1_81 = arith.constant 1 : index
    %c0_82 = arith.constant 0 : index
    %c0_83 = arith.constant 0 : index
    %56 = vector.load %arg10[%c1_81, %c0_82, %c0_83] : memref<18x18x4xf32, #tpu.memory_space<vmem>>, vector<16x16x4xf32>
    %57 = vector.shape_cast %56 : vector<16x16x4xf32> to vector<256x4xf32>
    %c1_84 = arith.constant 1 : index
    %c1_85 = arith.constant 1 : index
    %c0_86 = arith.constant 0 : index
    %58 = vector.load %arg10[%c1_84, %c1_85, %c0_86] : memref<18x18x4xf32, #tpu.memory_space<vmem>>, vector<16x16x4xf32>
    %59 = vector.shape_cast %58 : vector<16x16x4xf32> to vector<256x4xf32>
    %c1_87 = arith.constant 1 : index
    %c2_88 = arith.constant 2 : index
    %c0_89 = arith.constant 0 : index
    %60 = vector.load %arg10[%c1_87, %c2_88, %c0_89] : memref<18x18x4xf32, #tpu.memory_space<vmem>>, vector<16x16x4xf32>
    %61 = vector.shape_cast %60 : vector<16x16x4xf32> to vector<256x4xf32>
    %c2_90 = arith.constant 2 : index
    %c0_91 = arith.constant 0 : index
    %c0_92 = arith.constant 0 : index
    %62 = vector.load %arg10[%c2_90, %c0_91, %c0_92] : memref<18x18x4xf32, #tpu.memory_space<vmem>>, vector<16x16x4xf32>
    %63 = vector.shape_cast %62 : vector<16x16x4xf32> to vector<256x4xf32>
    %c2_93 = arith.constant 2 : index
    %c1_94 = arith.constant 1 : index
    %c0_95 = arith.constant 0 : index
    %64 = vector.load %arg10[%c2_93, %c1_94, %c0_95] : memref<18x18x4xf32, #tpu.memory_space<vmem>>, vector<16x16x4xf32>
    %65 = vector.shape_cast %64 : vector<16x16x4xf32> to vector<256x4xf32>
    %c2_96 = arith.constant 2 : index
    %c2_97 = arith.constant 2 : index
    %c0_98 = arith.constant 0 : index
    %66 = vector.load %arg10[%c2_96, %c2_97, %c0_98] : memref<18x18x4xf32, #tpu.memory_space<vmem>>, vector<16x16x4xf32>
    %67 = vector.shape_cast %66 : vector<16x16x4xf32> to vector<256x4xf32>
    %68 = tpu.concatenate %51, %53, %55, %57, %59, %61, %63, %65, %67 in 1 : vector<256x4xf32>, vector<256x4xf32>, vector<256x4xf32>, vector<256x4xf32>, vector<256x4xf32>, vector<256x4xf32>, vector<256x4xf32>, vector<256x4xf32>, vector<256x4xf32> -> vector<256x36xf32>
    %c0_99 = arith.constant 0 : index
    %c0_100 = arith.constant 0 : index
    %69 = vector.load %arg5[%c0_99, %c0_100] : memref<36x4xf32, #tpu.memory_space<vmem>>, vector<36x4xf32>
    %cst_101 = arith.constant dense<0.000000e+00> : vector<256x4xf32>
    %70 = tpu.matmul %68, %69, %cst_101 {dimension_numbers = #tpu.dot_dimension_numbers<[1], [0], [0], [1], [0, 0, 1, 1], [], []>} : vector<256x36xf32>, vector<36x4xf32>, vector<256x4xf32> -> vector<256x4xf32>
    %c0_102 = arith.constant 0 : index
    %c0_103 = arith.constant 0 : index
    %71 = vector.load %arg6[%c0_102, %c0_103] : memref<1x4xf32, #tpu.memory_space<vmem>>, vector<1x4xf32>
    %72 = vector.broadcast %71 : vector<1x4xf32> to vector<256x4xf32>
    %73 = arith.mulf %70, %72 : vector<256x4xf32>
    %c0_104 = arith.constant 0 : index
    %c0_105 = arith.constant 0 : index
    %74 = vector.load %arg7[%c0_104, %c0_105] : memref<1x4xf32, #tpu.memory_space<vmem>>, vector<1x4xf32>
    %75 = vector.broadcast %74 : vector<1x4xf32> to vector<256x4xf32>
    %76 = arith.addf %73, %75 : vector<256x4xf32>
    %cst_106 = arith.constant 0.000000e+00 : f32
    %77 = vector.broadcast %cst_106 : f32 to vector<256x4xf32>
    %78 = arith.maximumf %76, %77 : vector<256x4xf32>
    %79 = vector.shape_cast %78 : vector<256x4xf32> to vector<16x16x4xf32>
    %80 = vector.extract_strided_slice %79 {offsets = [0, 0, 0], sizes = [16, 1, 4], strides = [1, 1, 1]} : vector<16x16x4xf32> to vector<16x1x4xf32>
    %81 = vector.shape_cast %80 : vector<16x1x4xf32> to vector<16x4xf32>
    %c0_107 = arith.constant 0 : index
    %c0_108 = arith.constant 0 : index
    %c0_109 = arith.constant 0 : index
    %82 = vector.load %arg8[%c0_107, %c0_108, %c0_109] : memref<1x16x64xf32, #tpu.memory_space<vmem>>, vector<1x16x4xf32>
    %83 = vector.shape_cast %82 : vector<1x16x4xf32> to vector<16x4xf32>
    %84 = vector.shape_cast %81 : vector<16x4xf32> to vector<1x16x4xf32>
    tpu.vector_store %arg8[%c0_107, %c0_108, %c0_109], %84 {strides = array<i32>} : memref<1x16x64xf32, #tpu.memory_space<vmem>>, vector<1x16x4xf32>,
    %85 = vector.extract_strided_slice %79 {offsets = [0, 1, 0], sizes = [16, 1, 4], strides = [1, 1, 1]} : vector<16x16x4xf32> to vector<16x1x4xf32>
    %86 = vector.shape_cast %85 : vector<16x1x4xf32> to vector<16x4xf32>
    %c0_110 = arith.constant 0 : index
    %c0_111 = arith.constant 0 : index
    %c4 = arith.constant 4 : index
    %87 = vector.load %arg8[%c0_110, %c0_111, %c4] : memref<1x16x64xf32, #tpu.memory_space<vmem>>, vector<1x16x4xf32>
    %88 = vector.shape_cast %87 : vector<1x16x4xf32> to vector<16x4xf32>
    %89 = vector.shape_cast %86 : vector<16x4xf32> to vector<1x16x4xf32>
    tpu.vector_store %arg8[%c0_110, %c0_111, %c4], %89 {strides = array<i32>} : memref<1x16x64xf32, #tpu.memory_space<vmem>>, vector<1x16x4xf32>,
    %90 = vector.extract_strided_slice %79 {offsets = [0, 2, 0], sizes = [16, 1, 4], strides = [1, 1, 1]} : vector<16x16x4xf32> to vector<16x1x4xf32>
    %91 = vector.shape_cast %90 : vector<16x1x4xf32> to vector<16x4xf32>
    %c0_112 = arith.constant 0 : index
    %c0_113 = arith.constant 0 : index
    %c8 = arith.constant 8 : index
    %92 = vector.load %arg8[%c0_112, %c0_113, %c8] : memref<1x16x64xf32, #tpu.memory_space<vmem>>, vector<1x16x4xf32>
    %93 = vector.shape_cast %92 : vector<1x16x4xf32> to vector<16x4xf32>
    %94 = vector.shape_cast %91 : vector<16x4xf32> to vector<1x16x4xf32>
    tpu.vector_store %arg8[%c0_112, %c0_113, %c8], %94 {strides = array<i32>} : memref<1x16x64xf32, #tpu.memory_space<vmem>>, vector<1x16x4xf32>,
    %95 = vector.extract_strided_slice %79 {offsets = [0, 3, 0], sizes = [16, 1, 4], strides = [1, 1, 1]} : vector<16x16x4xf32> to vector<16x1x4xf32>
    %96 = vector.shape_cast %95 : vector<16x1x4xf32> to vector<16x4xf32>
    %c0_114 = arith.constant 0 : index
    %c0_115 = arith.constant 0 : index
    %c12 = arith.constant 12 : index
    %97 = vector.load %arg8[%c0_114, %c0_115, %c12] : memref<1x16x64xf32, #tpu.memory_space<vmem>>, vector<1x16x4xf32>
    %98 = vector.shape_cast %97 : vector<1x16x4xf32> to vector<16x4xf32>
    %99 = vector.shape_cast %96 : vector<16x4xf32> to vector<1x16x4xf32>
    tpu.vector_store %arg8[%c0_114, %c0_115, %c12], %99 {strides = array<i32>} : memref<1x16x64xf32, #tpu.memory_space<vmem>>, vector<1x16x4xf32>,
    %100 = vector.extract_strided_slice %79 {offsets = [0, 4, 0], sizes = [16, 1, 4], strides = [1, 1, 1]} : vector<16x16x4xf32> to vector<16x1x4xf32>
    %101 = vector.shape_cast %100 : vector<16x1x4xf32> to vector<16x4xf32>
    %c0_116 = arith.constant 0 : index
    %c0_117 = arith.constant 0 : index
    %c16 = arith.constant 16 : index
    %102 = vector.load %arg8[%c0_116, %c0_117, %c16] : memref<1x16x64xf32, #tpu.memory_space<vmem>>, vector<1x16x4xf32>
    %103 = vector.shape_cast %102 : vector<1x16x4xf32> to vector<16x4xf32>
    %104 = vector.shape_cast %101 : vector<16x4xf32> to vector<1x16x4xf32>
    tpu.vector_store %arg8[%c0_116, %c0_117, %c16], %104 {strides = array<i32>} : memref<1x16x64xf32, #tpu.memory_space<vmem>>, vector<1x16x4xf32>,
    %105 = vector.extract_strided_slice %79 {offsets = [0, 5, 0], sizes = [16, 1, 4], strides = [1, 1, 1]} : vector<16x16x4xf32> to vector<16x1x4xf32>
    %106 = vector.shape_cast %105 : vector<16x1x4xf32> to vector<16x4xf32>
    %c0_118 = arith.constant 0 : index
    %c0_119 = arith.constant 0 : index
    %c20 = arith.constant 20 : index
    %107 = vector.load %arg8[%c0_118, %c0_119, %c20] : memref<1x16x64xf32, #tpu.memory_space<vmem>>, vector<1x16x4xf32>
    %108 = vector.shape_cast %107 : vector<1x16x4xf32> to vector<16x4xf32>
    %109 = vector.shape_cast %106 : vector<16x4xf32> to vector<1x16x4xf32>
    tpu.vector_store %arg8[%c0_118, %c0_119, %c20], %109 {strides = array<i32>} : memref<1x16x64xf32, #tpu.memory_space<vmem>>, vector<1x16x4xf32>,
    %110 = vector.extract_strided_slice %79 {offsets = [0, 6, 0], sizes = [16, 1, 4], strides = [1, 1, 1]} : vector<16x16x4xf32> to vector<16x1x4xf32>
    %111 = vector.shape_cast %110 : vector<16x1x4xf32> to vector<16x4xf32>
    %c0_120 = arith.constant 0 : index
    %c0_121 = arith.constant 0 : index
    %c24 = arith.constant 24 : index
    %112 = vector.load %arg8[%c0_120, %c0_121, %c24] : memref<1x16x64xf32, #tpu.memory_space<vmem>>, vector<1x16x4xf32>
    %113 = vector.shape_cast %112 : vector<1x16x4xf32> to vector<16x4xf32>
    %114 = vector.shape_cast %111 : vector<16x4xf32> to vector<1x16x4xf32>
    tpu.vector_store %arg8[%c0_120, %c0_121, %c24], %114 {strides = array<i32>} : memref<1x16x64xf32, #tpu.memory_space<vmem>>, vector<1x16x4xf32>,
    %115 = vector.extract_strided_slice %79 {offsets = [0, 7, 0], sizes = [16, 1, 4], strides = [1, 1, 1]} : vector<16x16x4xf32> to vector<16x1x4xf32>
    %116 = vector.shape_cast %115 : vector<16x1x4xf32> to vector<16x4xf32>
    %c0_122 = arith.constant 0 : index
    %c0_123 = arith.constant 0 : index
    %c28 = arith.constant 28 : index
    %117 = vector.load %arg8[%c0_122, %c0_123, %c28] : memref<1x16x64xf32, #tpu.memory_space<vmem>>, vector<1x16x4xf32>
    %118 = vector.shape_cast %117 : vector<1x16x4xf32> to vector<16x4xf32>
    %119 = vector.shape_cast %116 : vector<16x4xf32> to vector<1x16x4xf32>
    tpu.vector_store %arg8[%c0_122, %c0_123, %c28], %119 {strides = array<i32>} : memref<1x16x64xf32, #tpu.memory_space<vmem>>, vector<1x16x4xf32>,
    %120 = vector.extract_strided_slice %79 {offsets = [0, 8, 0], sizes = [16, 1, 4], strides = [1, 1, 1]} : vector<16x16x4xf32> to vector<16x1x4xf32>
    %121 = vector.shape_cast %120 : vector<16x1x4xf32> to vector<16x4xf32>
    %c0_124 = arith.constant 0 : index
    %c0_125 = arith.constant 0 : index
    %c32 = arith.constant 32 : index
    %122 = vector.load %arg8[%c0_124, %c0_125, %c32] : memref<1x16x64xf32, #tpu.memory_space<vmem>>, vector<1x16x4xf32>
    %123 = vector.shape_cast %122 : vector<1x16x4xf32> to vector<16x4xf32>
    %124 = vector.shape_cast %121 : vector<16x4xf32> to vector<1x16x4xf32>
    tpu.vector_store %arg8[%c0_124, %c0_125, %c32], %124 {strides = array<i32>} : memref<1x16x64xf32, #tpu.memory_space<vmem>>, vector<1x16x4xf32>,
    %125 = vector.extract_strided_slice %79 {offsets = [0, 9, 0], sizes = [16, 1, 4], strides = [1, 1, 1]} : vector<16x16x4xf32> to vector<16x1x4xf32>
    %126 = vector.shape_cast %125 : vector<16x1x4xf32> to vector<16x4xf32>
    %c0_126 = arith.constant 0 : index
    %c0_127 = arith.constant 0 : index
    %c36 = arith.constant 36 : index
    %127 = vector.load %arg8[%c0_126, %c0_127, %c36] : memref<1x16x64xf32, #tpu.memory_space<vmem>>, vector<1x16x4xf32>
    %128 = vector.shape_cast %127 : vector<1x16x4xf32> to vector<16x4xf32>
    %129 = vector.shape_cast %126 : vector<16x4xf32> to vector<1x16x4xf32>
    tpu.vector_store %arg8[%c0_126, %c0_127, %c36], %129 {strides = array<i32>} : memref<1x16x64xf32, #tpu.memory_space<vmem>>, vector<1x16x4xf32>,
    %130 = vector.extract_strided_slice %79 {offsets = [0, 10, 0], sizes = [16, 1, 4], strides = [1, 1, 1]} : vector<16x16x4xf32> to vector<16x1x4xf32>
    %131 = vector.shape_cast %130 : vector<16x1x4xf32> to vector<16x4xf32>
    %c0_128 = arith.constant 0 : index
    %c0_129 = arith.constant 0 : index
    %c40 = arith.constant 40 : index
    %132 = vector.load %arg8[%c0_128, %c0_129, %c40] : memref<1x16x64xf32, #tpu.memory_space<vmem>>, vector<1x16x4xf32>
    %133 = vector.shape_cast %132 : vector<1x16x4xf32> to vector<16x4xf32>
    %134 = vector.shape_cast %131 : vector<16x4xf32> to vector<1x16x4xf32>
    tpu.vector_store %arg8[%c0_128, %c0_129, %c40], %134 {strides = array<i32>} : memref<1x16x64xf32, #tpu.memory_space<vmem>>, vector<1x16x4xf32>,
    %135 = vector.extract_strided_slice %79 {offsets = [0, 11, 0], sizes = [16, 1, 4], strides = [1, 1, 1]} : vector<16x16x4xf32> to vector<16x1x4xf32>
    %136 = vector.shape_cast %135 : vector<16x1x4xf32> to vector<16x4xf32>
    %c0_130 = arith.constant 0 : index
    %c0_131 = arith.constant 0 : index
    %c44 = arith.constant 44 : index
    %137 = vector.load %arg8[%c0_130, %c0_131, %c44] : memref<1x16x64xf32, #tpu.memory_space<vmem>>, vector<1x16x4xf32>
    %138 = vector.shape_cast %137 : vector<1x16x4xf32> to vector<16x4xf32>
    %139 = vector.shape_cast %136 : vector<16x4xf32> to vector<1x16x4xf32>
    tpu.vector_store %arg8[%c0_130, %c0_131, %c44], %139 {strides = array<i32>} : memref<1x16x64xf32, #tpu.memory_space<vmem>>, vector<1x16x4xf32>,
    %140 = vector.extract_strided_slice %79 {offsets = [0, 12, 0], sizes = [16, 1, 4], strides = [1, 1, 1]} : vector<16x16x4xf32> to vector<16x1x4xf32>
    %141 = vector.shape_cast %140 : vector<16x1x4xf32> to vector<16x4xf32>
    %c0_132 = arith.constant 0 : index
    %c0_133 = arith.constant 0 : index
    %c48 = arith.constant 48 : index
    %142 = vector.load %arg8[%c0_132, %c0_133, %c48] : memref<1x16x64xf32, #tpu.memory_space<vmem>>, vector<1x16x4xf32>
    %143 = vector.shape_cast %142 : vector<1x16x4xf32> to vector<16x4xf32>
    %144 = vector.shape_cast %141 : vector<16x4xf32> to vector<1x16x4xf32>
    tpu.vector_store %arg8[%c0_132, %c0_133, %c48], %144 {strides = array<i32>} : memref<1x16x64xf32, #tpu.memory_space<vmem>>, vector<1x16x4xf32>,
    %145 = vector.extract_strided_slice %79 {offsets = [0, 13, 0], sizes = [16, 1, 4], strides = [1, 1, 1]} : vector<16x16x4xf32> to vector<16x1x4xf32>
    %146 = vector.shape_cast %145 : vector<16x1x4xf32> to vector<16x4xf32>
    %c0_134 = arith.constant 0 : index
    %c0_135 = arith.constant 0 : index
    %c52 = arith.constant 52 : index
    %147 = vector.load %arg8[%c0_134, %c0_135, %c52] : memref<1x16x64xf32, #tpu.memory_space<vmem>>, vector<1x16x4xf32>
    %148 = vector.shape_cast %147 : vector<1x16x4xf32> to vector<16x4xf32>
    %149 = vector.shape_cast %146 : vector<16x4xf32> to vector<1x16x4xf32>
    tpu.vector_store %arg8[%c0_134, %c0_135, %c52], %149 {strides = array<i32>} : memref<1x16x64xf32, #tpu.memory_space<vmem>>, vector<1x16x4xf32>,
    %150 = vector.extract_strided_slice %79 {offsets = [0, 14, 0], sizes = [16, 1, 4], strides = [1, 1, 1]} : vector<16x16x4xf32> to vector<16x1x4xf32>
    %151 = vector.shape_cast %150 : vector<16x1x4xf32> to vector<16x4xf32>
    %c0_136 = arith.constant 0 : index
    %c0_137 = arith.constant 0 : index
    %c56 = arith.constant 56 : index
    %152 = vector.load %arg8[%c0_136, %c0_137, %c56] : memref<1x16x64xf32, #tpu.memory_space<vmem>>, vector<1x16x4xf32>
    %153 = vector.shape_cast %152 : vector<1x16x4xf32> to vector<16x4xf32>
    %154 = vector.shape_cast %151 : vector<16x4xf32> to vector<1x16x4xf32>
    tpu.vector_store %arg8[%c0_136, %c0_137, %c56], %154 {strides = array<i32>} : memref<1x16x64xf32, #tpu.memory_space<vmem>>, vector<1x16x4xf32>,
    %155 = vector.extract_strided_slice %79 {offsets = [0, 15, 0], sizes = [16, 1, 4], strides = [1, 1, 1]} : vector<16x16x4xf32> to vector<16x1x4xf32>
    %156 = vector.shape_cast %155 : vector<16x1x4xf32> to vector<16x4xf32>
    %c0_138 = arith.constant 0 : index
    %c0_139 = arith.constant 0 : index
    %c60 = arith.constant 60 : index
    %157 = vector.load %arg8[%c0_138, %c0_139, %c60] : memref<1x16x64xf32, #tpu.memory_space<vmem>>, vector<1x16x4xf32>
    %158 = vector.shape_cast %157 : vector<1x16x4xf32> to vector<16x4xf32>
    %159 = vector.shape_cast %156 : vector<16x4xf32> to vector<1x16x4xf32>
    tpu.vector_store %arg8[%c0_138, %c0_139, %c60], %159 {strides = array<i32>} : memref<1x16x64xf32, #tpu.memory_space<vmem>>, vector<1x16x4xf32>,
    return
  }
  func.func @transform_0(%arg0: i32) -> (i32, i32, i32, i32) {
    %c0_i32 = arith.constant 0 : i32
    %c0_i32_0 = arith.constant 0 : i32
    %c0_i32_1 = arith.constant 0 : i32
    %c0_i32_2 = arith.constant 0 : i32
    return %arg0, %c0_i32, %c0_i32_0, %c0_i32_1 : i32, i32, i32, i32
  }
  func.func @transform_1(%arg0: i32) -> (i32, i32) {
    %c0_i32 = arith.constant 0 : i32
    %c0_i32_0 = arith.constant 0 : i32
    %c0_i32_1 = arith.constant 0 : i32
    return %c0_i32, %c0_i32_0 : i32, i32
  }
  func.func @transform_2(%arg0: i32) -> (i32, i32) {
    %c0_i32 = arith.constant 0 : i32
    %c0_i32_0 = arith.constant 0 : i32
    %c0_i32_1 = arith.constant 0 : i32
    return %c0_i32, %c0_i32_0 : i32, i32
  }
  func.func @transform_3(%arg0: i32) -> (i32, i32) {
    %c0_i32 = arith.constant 0 : i32
    %c0_i32_0 = arith.constant 0 : i32
    %c0_i32_1 = arith.constant 0 : i32
    return %c0_i32, %c0_i32_0 : i32, i32
  }
  func.func @transform_4(%arg0: i32) -> (i32, i32) {
    %c0_i32 = arith.constant 0 : i32
    %c0_i32_0 = arith.constant 0 : i32
    %c0_i32_1 = arith.constant 0 : i32
    return %c0_i32, %c0_i32_0 : i32, i32
  }
  func.func @transform_5(%arg0: i32) -> (i32, i32) {
    %c0_i32 = arith.constant 0 : i32
    %c0_i32_0 = arith.constant 0 : i32
    %c0_i32_1 = arith.constant 0 : i32
    return %c0_i32, %c0_i32_0 : i32, i32
  }
  func.func @transform_6(%arg0: i32) -> (i32, i32) {
    %c0_i32 = arith.constant 0 : i32
    %c0_i32_0 = arith.constant 0 : i32
    %c0_i32_1 = arith.constant 0 : i32
    return %c0_i32, %c0_i32_0 : i32, i32
  }
  func.func @transform_7(%arg0: i32) -> (i32, i32, i32) {
    %c0_i32 = arith.constant 0 : i32
    %c0_i32_0 = arith.constant 0 : i32
    %c0_i32_1 = arith.constant 0 : i32
    return %arg0, %c0_i32, %c0_i32_0 : i32, i32, i32
  }
}

</mosaic_0001>

<bundles_post_ra>
// kernel: tpu_custom_call.1
= control target key start
LH: loop header
LB: loop body
LE: loop exit
PB: predicated region body
PF: predicated region fallthrough
CT: control target
= control target key end

     0   :  { %12 = vsyncpa [#allocation5], 0  ;;  %s9383_s0 = inlined_call_operand.vmem [shape: f32[2,16,16,4], index: 0, kind: input, shape index: {}]   ;;  %s9384_s1 = inlined_call_operand.vmem [shape: f32[36,4], index: 1, kind: input, shape index: {}]   ;;  %s9385_s2 = inlined_call_operand.vmem [shape: f32[1,4], index: 2, kind: input, shape index: {}]   ;;  %s9386_s3 = inlined_call_operand.vmem [shape: f32[1,4], index: 3, kind: input, shape index: {}]   ;;  %s9387_s4 = inlined_call_operand.vmem [shape: f32[36,4], index: 4, kind: input, shape index: {}]   ;;  %s9388_s5 = inlined_call_operand.vmem [shape: f32[1,4], index: 5, kind: input, shape index: {}]   ;;  %s9389_s6 = inlined_call_operand.vmem [shape: f32[1,4], index: 6, kind: input, shape index: {}]   ;;  %s9390_s7 = inlined_call_operand.hbm [shape: f32[2,16,64], index: 7, kind: output, shape index: {}]  }
   0x1   :  { %14 = vsyncpa [#allocation5 + $0x1], 0  ;;  %s5562_s24 = smov 0   ;;  %s5564_s25 = smov 0  }
   0x2   :  { %s5566_s26 = smov 0   ;;  %s5568_s27 = smov 0  }
   0x3 LB: > { %s5583_s28 = sadd.s32 4294967295, %s5502_s27   ;;  %s5065_s29 = sadd.s32 4294967294, %s5502_s27   ;;  %s5502_s27 = sphi %s5568_s27, %s9982_s27   ;;  %s5498_s26 = sphi %s5566_s26, %s9981_s26   ;;  %s5494_s25 = sphi %s5564_s25, %s9980_s25   ;;  %s5490_s24 = sphi %s5562_s24, %s9979_s24  }
   0x4   : > { %s5587_s30 = sadd.s32 1, %s5502_s27   ;;  %s179_s8 = sadd.s32 1, %s5498_s26 }
   0x5   : > { %s176_s9 = ssub.s32 %s5502_s27, %s5587_s30  ;;  %p189_p0 = scmp.ne.s32.totalorder %s5498_s26, %s5494_s25 }
   0x6   : > { %p177_p1 = scmp.eq.s32.totalorder %s176_s9, 0  ;;  %p190_p2 = scmp.eq.s32.totalorder %s5583_s28, 1 }
   0x7   : > { %p195_p3 = scmp.ne.s32.totalorder %s5494_s25, %s5490_s24  ;;  %p196_p4 = scmp.eq.s32.totalorder %s5065_s29, 1 }
   0x8   : > { %s5598_s10 = scalar_select %p177_p1, %s5498_s26, %s179_s8  }
   0x9   : > { %p5600_p5 = por %p190_p2, %p189_p0  ;;  %p5604_p6 = por %p196_p4, %p195_p3 }
   0xa   : > { %p5068_p7 = scmp.ge.s32.totalorder %s5502_s27, 1  ;;  %p240_p8 = scmp.lt.s32.totalorder %s5502_s27, 3 }
   0xc   : > { %p241_p9 = pnand %p5068_p7, %p240_p8 }
   0xe   : > { %244 = sbr.rel (%p241_p9) target bundleno = 1872 (0x750), region = 48 }
  0x13   : > { %vm309_vm0 = vcmask 31744   ;;  %vm312_vm1 = vcmask 25600   ;;  %p272_p10 = scmp.lt.s32.totalorder %s5583_s28, 1  ;;  %vm318_vm2 = vcmask 24576   ;;  %v5504_v0 = vmov 0.0   ;;  %s5505_s18 = smov 4  }
  0x14   : > { %310 = vst.msk [vmem:[#allocation2] sm:$0xff] %vm309_vm0, %v5504_v0  ;;  %311 = vst.msk [vmem:[#allocation2 + $0x8] sm:$0xff] %vm309_vm0, %v5504_v0  ;;  %s5506_s19 = smov 8   ;;  %s5507_s20 = smov 12   ;;  %vm2066_vm3 = vcmask 1043456   ;;  %vm1733_vm4 = vcmask 64512  }
  0x15   : > { %315 = vst.msk [vmem:[#allocation2 + $0x198] sm:$0xff] %vm309_vm0, %v5504_v0  ;;  %316 = vst.msk [vmem:[#allocation2 + $0x1a0] sm:$0xff] %vm309_vm0, %v5504_v0  ;;  %s273_s13 = scalar_select %p272_p10, %s5583_s28, 1  ;;  %vm1766_vm5 = vcmask 97280   ;;  %vm1799_vm6 = vcmask 130048   ;;  %vm1832_vm7 = vcmask 162816  }
  0x16   : > { %2405 = vst.msk [vmem:[#allocation3] sm:$0xff] %vm309_vm0, %v5504_v0  ;;  %2406 = vst.msk [vmem:[#allocation3 + $0x8] sm:$0xff] %vm309_vm0, %v5504_v0  ;;  %s5508_s21 = smov 16   ;;  %s5509_s22 = smov 20   ;;  %vm1865_vm8 = vcmask 195584   ;;  %vm1898_vm9 = vcmask 228352  }
  0x17   : > { %2409 = vst.msk [vmem:[#allocation3 + $0x198] sm:$0xff] %vm309_vm0, %v5504_v0  ;;  %2410 = vst.msk [vmem:[#allocation3 + $0x1a0] sm:$0xff] %vm309_vm0, %v5504_v0  ;;  %s5147_s14 = sshll.u32 %s273_s13, 8  ;;  %s5510_s23 = smov 24   ;;  %vm1931_vm10 = vcmask 261120   ;;  %vm1969_vm11 = vcmask 293888  }
  0x18   : > { %313 = vst.msk [vmem:[#allocation2 + $0x10] sm:$0x3] %vm312_vm1, %v5504_v0  ;;  %317 = vst.msk [vmem:[#allocation2 + $0x1a8] sm:$0x3] %vm312_vm1, %v5504_v0  ;;  %s5781_s17 = scalar_lea.vmem %s9383_s0, %s5147_s14  ;;  %s5511_s29 = smov 28   ;;  %vm4509_vm12 = vcmask 1042434  }
  0x19   : > { %2407 = vst.msk [vmem:[#allocation3 + $0x10] sm:$0x3] %vm312_vm1, %v5504_v0  ;;  %2411 = vst.msk [vmem:[#allocation3 + $0x1a8] sm:$0x3] %vm312_vm1, %v5504_v0  ;;  %v277_v1 = vld [vmem:[%s5781_s17] sm:$0xff]  ;;  %v279_v2 = vld [vmem:[%s5781_s17 + $0x10] sm:$0xff] }
  0x1a   : > { %320 = vst.msk [vmem:[#allocation2 + $0x18] sm:$0x1] %vm318_vm2, %v5504_v0  ;;  %321 = vst.msk [vmem:[#allocation2 + $0x30] sm:$0x1] %vm318_vm2, %v5504_v0  ;;  %v278_v3 = vld [vmem:[%s5781_s17 + $0x8] sm:$0xff]  ;;  %v281_v4 = vld [vmem:[%s5781_s17 + $0x20] sm:$0xff] }
  0x1b   : > { %322 = vst.msk [vmem:[#allocation2 + $0x48] sm:$0x1] %vm318_vm2, %v5504_v0  ;;  %323 = vst.msk [vmem:[#allocation2 + $0x60] sm:$0x1] %vm318_vm2, %v5504_v0  ;;  %v280_v5 = vld [vmem:[%s5781_s17 + $0x18] sm:$0xff]  ;;  %v283_v6 = vld [vmem:[%s5781_s17 + $0x30] sm:$0xff] }
  0x1c   : > { %324 = vst.msk [vmem:[#allocation2 + $0x78] sm:$0x1] %vm318_vm2, %v5504_v0  ;;  %325 = vst.msk [vmem:[#allocation2 + $0x90] sm:$0x1] %vm318_vm2, %v5504_v0  ;;  %v420_v7 = vld [vmem:[#allocation2 + $0x1] sm:$0xff]  ;;  %v284_v11 = vld [vmem:[%s5781_s17 + $0x38] sm:$0xff] }
  0x1d   : > { %326 = vst.msk [vmem:[#allocation2 + $0xa8] sm:$0x1] %vm318_vm2, %v5504_v0  ;;  %327 = vst.msk [vmem:[#allocation2 + $0xc0] sm:$0x1] %vm318_vm2, %v5504_v0  ;;  %v282_v9 = vld [vmem:[%s5781_s17 + $0x28] sm:$0xff]  ;;  %709 = vrot.lane.b32.xlu0 %v420_v7, %s5505_s18  ;;  %v285_v10 = vld [vmem:[%s5781_s17 + $0x40] sm:$0xff] }
  0x1e   : > { %328 = vst.msk [vmem:[#allocation2 + $0xd8] sm:$0x1] %vm318_vm2, %v5504_v0  ;;  %329 = vst.msk [vmem:[#allocation2 + $0xf0] sm:$0x1] %vm318_vm2, %v5504_v0  ;;  %v287_v12 = vld [vmem:[%s5781_s17 + $0x50] sm:$0xff]  ;;  %v286_v13 = vld [vmem:[%s5781_s17 + $0x48] sm:$0xff] }
  0x1f   : > { %330 = vst.msk [vmem:[#allocation2 + $0x108] sm:$0x1] %vm318_vm2, %v5504_v0  ;;  %331 = vst.msk [vmem:[#allocation2 + $0x120] sm:$0x1] %vm318_vm2, %v5504_v0  ;;  %v421_v8 = vld [vmem:[#allocation2 + $0x9] sm:$0xff]  ;;  %v289_v14 = vld [vmem:[%s5781_s17 + $0x60] sm:$0xff] }
  0x20   : > { %332 = vst.msk [vmem:[#allocation2 + $0x138] sm:$0x1] %vm318_vm2, %v5504_v0  ;;  %333 = vst.msk [vmem:[#allocation2 + $0x150] sm:$0x1] %vm318_vm2, %v5504_v0  ;;  %v288_v15 = vld [vmem:[%s5781_s17 + $0x58] sm:$0xff]  ;;  %v291_v16 = vld [vmem:[%s5781_s17 + $0x70] sm:$0xff] }
  0x21   : > { %334 = vst.msk [vmem:[#allocation2 + $0x168] sm:$0x1] %vm318_vm2, %v5504_v0  ;;  %335 = vst.msk [vmem:[#allocation2 + $0x180] sm:$0x1] %vm318_vm2, %v5504_v0  ;;  %v290_v17 = vld [vmem:[%s5781_s17 + $0x68] sm:$0xff]  ;;  %v293_v18 = vld [vmem:[%s5781_s17 + $0x80] sm:$0xff]  ;;  %711 = vrot.lane.b32.xlu0 %v421_v8, %s5505_s18 }
  0x22   : > { %338 = vst.msk [vmem:[#allocation2 + $0x29] sm:$0x1] %vm318_vm2, %v5504_v0  ;;  %339 = vst.msk [vmem:[#allocation2 + $0x41] sm:$0x1] %vm318_vm2, %v5504_v0  ;;  %v292_v19 = vld [vmem:[%s5781_s17 + $0x78] sm:$0xff]  ;;  %v295_v20 = vld [vmem:[%s5781_s17 + $0x90] sm:$0xff] }
  0x23   : > { %340 = vst.msk [vmem:[#allocation2 + $0x59] sm:$0x1] %vm318_vm2, %v5504_v0  ;;  %341 = vst.msk [vmem:[#allocation2 + $0x71] sm:$0x1] %vm318_vm2, %v5504_v0  ;;  %v294_v21 = vld [vmem:[%s5781_s17 + $0x88] sm:$0xff]  ;;  %v297_v22 = vld [vmem:[%s5781_s17 + $0xa0] sm:$0xff] }
  0x24   : > { %342 = vst.msk [vmem:[#allocation2 + $0x89] sm:$0x1] %vm318_vm2, %v5504_v0  ;;  %343 = vst.msk [vmem:[#allocation2 + $0xa1] sm:$0x1] %vm318_vm2, %v5504_v0  ;;  %v296_v23 = vld [vmem:[%s5781_s17 + $0x98] sm:$0xff]  ;;  %v299_v24 = vld [vmem:[%s5781_s17 + $0xb0] sm:$0xff] }
  0x25   : > { %344 = vst.msk [vmem:[#allocation2 + $0xb9] sm:$0x1] %vm318_vm2, %v5504_v0  ;;  %345 = vst.msk [vmem:[#allocation2 + $0xd1] sm:$0x1] %vm318_vm2, %v5504_v0  ;;  %v298_v28 = vld [vmem:[%s5781_s17 + $0xa8] sm:$0xff]  ;;  %v301_v29 = vld [vmem:[%s5781_s17 + $0xc0] sm:$0xff] }
  0x26   : > { %346 = vst.msk [vmem:[#allocation2 + $0xe9] sm:$0x1] %vm318_vm2, %v5504_v0  ;;  %347 = vst.msk [vmem:[#allocation2 + $0x101] sm:$0x1] %vm318_vm2, %v5504_v0  ;;  %v300_v33 = vld [vmem:[%s5781_s17 + $0xb8] sm:$0xff]  ;;  %v303_v34 = vld [vmem:[%s5781_s17 + $0xd0] sm:$0xff] }
  0x27   : > { %348 = vst.msk [vmem:[#allocation2 + $0x119] sm:$0x1] %vm318_vm2, %v5504_v0  ;;  %349 = vst.msk [vmem:[#allocation2 + $0x131] sm:$0x1] %vm318_vm2, %v5504_v0  ;;  %v302_v35 = vld [vmem:[%s5781_s17 + $0xc8] sm:$0xff]  ;;  %v305_v36 = vld [vmem:[%s5781_s17 + $0xe0] sm:$0xff] }
  0x28   : > { %350 = vst.msk [vmem:[#allocation2 + $0x149] sm:$0x1] %vm318_vm2, %v5504_v0  ;;  %351 = vst.msk [vmem:[#allocation2 + $0x161] sm:$0x1] %vm318_vm2, %v5504_v0  ;;  %v304_v37 = vld [vmem:[%s5781_s17 + $0xd8] sm:$0xff]  ;;  %v306_v39 = vld [vmem:[%s5781_s17 + $0xe8] sm:$0xff] }
  0x29   : > { %352 = vst.msk [vmem:[#allocation2 + $0x179] sm:$0x1] %vm318_vm2, %v5504_v0  ;;  %353 = vst.msk [vmem:[#allocation2 + $0x191] sm:$0x1] %vm318_vm2, %v5504_v0  ;;  %v307_v58 = vld [vmem:[%s5781_s17 + $0xf0] sm:$0xff]  ;;  %v308_v62 = vld [vmem:[%s5781_s17 + $0xf8] sm:$0xff] }
  0x2a   : > { %2413 = vst.msk [vmem:[#allocation3 + $0x18] sm:$0x1] %vm318_vm2, %v5504_v0  ;;  %2414 = vst.msk [vmem:[#allocation3 + $0x30] sm:$0x1] %vm318_vm2, %v5504_v0  ;;  %s5512_s14 = smov 32   ;;  %vm4512_vm13 = vcmask 1043459  }
  0x2b   : > { %2415 = vst.msk [vmem:[#allocation3 + $0x48] sm:$0x1] %vm318_vm2, %v5504_v0  ;;  %2416 = vst.msk [vmem:[#allocation3 + $0x60] sm:$0x1] %vm318_vm2, %v5504_v0  ;;  %vm4515_vm14 = vcmask 1044484   ;;  %vm4518_vm15 = vcmask 1045509  }
  0x2c   : > { %2417 = vst.msk [vmem:[#allocation3 + $0x78] sm:$0x1] %vm318_vm2, %v5504_v0  ;;  %2418 = vst.msk [vmem:[#allocation3 + $0x90] sm:$0x1] %vm318_vm2, %v5504_v0  ;;  %vm4506_vm1 = vcmask 1041409   ;;  %s269_s15 = sand.u32 1, %s5494_s25  }
  0x2d   : > { %2419 = vst.msk [vmem:[#allocation3 + $0xa8] sm:$0x1] %vm318_vm2, %v5504_v0  ;;  %2420 = vst.msk [vmem:[#allocation3 + $0xc0] sm:$0x1] %vm318_vm2, %v5504_v0  ;;  %s5069_s16 = sshll.u32 %s269_s15, 4  ;;  %s5148_s8 = sshll.u32 %s5583_s28, 8 }
  0x2e   : > { %2421 = vst.msk [vmem:[#allocation3 + $0xd8] sm:$0x1] %vm318_vm2, %v5504_v0  ;;  %2422 = vst.msk [vmem:[#allocation3 + $0xf0] sm:$0x1] %vm318_vm2, %v5504_v0  ;;  %s8898_s17 = scalar_lea.vmem [#allocation4], %s5069_s16  ;;  %s9342_s28 = scalar_lea.sflag [#allocation5], %s269_s15 }
  0x2f   : > { %2423 = vst.msk [vmem:[#allocation3 + $0x108] sm:$0x1] %vm318_vm2, %v5504_v0  ;;  %2424 = vst.msk [vmem:[#allocation3 + $0x120] sm:$0x1] %vm318_vm2, %v5504_v0  ;;  %s5003_s9 = sshll.u32 %s8898_s17, 4  ;;  %s9337_s9 = int_to_ptr.vmem [resolvable:$true] %s5003_s9 }
  0x30   : > { %2425 = vst.msk [vmem:[#allocation3 + $0x138] sm:$0x1] %vm318_vm2, %v5504_v0  ;;  %2426 = vst.msk [vmem:[#allocation3 + $0x150] sm:$0x1] %vm318_vm2, %v5504_v0 }
  0x31   : > { %2427 = vst.msk [vmem:[#allocation3 + $0x168] sm:$0x1] %vm318_vm2, %v5504_v0  ;;  %2428 = vst.msk [vmem:[#allocation3 + $0x180] sm:$0x1] %vm318_vm2, %v5504_v0 }
  0x32   : > { %2431 = vst.msk [vmem:[#allocation3 + $0x29] sm:$0x1] %vm318_vm2, %v5504_v0  ;;  %2432 = vst.msk [vmem:[#allocation3 + $0x41] sm:$0x1] %vm318_vm2, %v5504_v0 }
  0x33   : > { %2433 = vst.msk [vmem:[#allocation3 + $0x59] sm:$0x1] %vm318_vm2, %v5504_v0  ;;  %2434 = vst.msk [vmem:[#allocation3 + $0x71] sm:$0x1] %vm318_vm2, %v5504_v0 }
  0x34   : > { %2435 = vst.msk [vmem:[#allocation3 + $0x89] sm:$0x1] %vm318_vm2, %v5504_v0  ;;  %2436 = vst.msk [vmem:[#allocation3 + $0xa1] sm:$0x1] %vm318_vm2, %v5504_v0 }
  0x35   : > { %2437 = vst.msk [vmem:[#allocation3 + $0xb9] sm:$0x1] %vm318_vm2, %v5504_v0  ;;  %2438 = vst.msk [vmem:[#allocation3 + $0xd1] sm:$0x1] %vm318_vm2, %v5504_v0 }
  0x36   : > { %2439 = vst.msk [vmem:[#allocation3 + $0xe9] sm:$0x1] %vm318_vm2, %v5504_v0  ;;  %2440 = vst.msk [vmem:[#allocation3 + $0x101] sm:$0x1] %vm318_vm2, %v5504_v0 }
  0x37   : > { %2441 = vst.msk [vmem:[#allocation3 + $0x119] sm:$0x1] %vm318_vm2, %v5504_v0  ;;  %2442 = vst.msk [vmem:[#allocation3 + $0x131] sm:$0x1] %vm318_vm2, %v5504_v0 }
  0x38   : > { %2443 = vst.msk [vmem:[#allocation3 + $0x149] sm:$0x1] %vm318_vm2, %v5504_v0  ;;  %2444 = vst.msk [vmem:[#allocation3 + $0x161] sm:$0x1] %vm318_vm2, %v5504_v0 }
  0x39   : > { %2445 = vst.msk [vmem:[#allocation3 + $0x179] sm:$0x1] %vm318_vm2, %v5504_v0  ;;  %2446 = vst.msk [vmem:[#allocation3 + $0x191] sm:$0x1] %vm318_vm2, %v5504_v0 }
  0x3a   : > { %337 = vst.msk [vmem:[#allocation2 + $0x11] sm:$0x1] %vm318_vm2, %v5504_v0  ;;  %319 = vst.msk [vmem:[#allocation2] sm:$0x1] %vm318_vm2, %v5504_v0 }
  0x3b   : > { %336 = vst.msk [vmem:[#allocation2 + $0x198] sm:$0x1] %vm318_vm2, %v5504_v0  ;;  %354 = vst.msk [vmem:[#allocation2 + $0x1a9] sm:$0x1] %vm318_vm2, %v5504_v0 }
  0x3c   : > { %2412 = vst.msk [vmem:[#allocation3] sm:$0x1] %vm318_vm2, %v5504_v0  ;;  %2429 = vst.msk [vmem:[#allocation3 + $0x198] sm:$0x1] %vm318_vm2, %v5504_v0 }
  0x3d   : > { %2430 = vst.msk [vmem:[#allocation3 + $0x11] sm:$0x1] %vm318_vm2, %v5504_v0  ;;  %2447 = vst.msk [vmem:[#allocation3 + $0x1a9] sm:$0x1] %vm318_vm2, %v5504_v0  ;;  %v452_v0 = vld [vmem:[#allocation2 + $0x2] sm:$0xff]  ;;  %vm4521_vm2 = vcmask 1046534  }
  0x3e   : > { %356 = vst.msk [vmem:[#allocation2 + $0x19] sm:$0xff] %vm309_vm0, %v277_v1  ;;  %358 = vst.msk [vmem:[#allocation2 + $0x31] sm:$0xff] %vm309_vm0, %v279_v2 }
  0x3f   : > { %357 = vst.msk [vmem:[#allocation2 + $0x21] sm:$0xff] %vm309_vm0, %v278_v3  ;;  %360 = vst.msk [vmem:[#allocation2 + $0x49] sm:$0xff] %vm309_vm0, %v281_v4 }
  0x40   : > { %359 = vst.msk [vmem:[#allocation2 + $0x39] sm:$0xff] %vm309_vm0, %v280_v5  ;;  %362 = vst.msk [vmem:[#allocation2 + $0x61] sm:$0xff] %vm309_vm0, %v283_v6 }
  0x41   : > { %361 = vst.msk [vmem:[#allocation2 + $0x51] sm:$0xff] %vm309_vm0, %v282_v9  ;;  %364 = vst.msk [vmem:[#allocation2 + $0x79] sm:$0xff] %vm309_vm0, %v285_v10  ;;  %v453_v3 = vld [vmem:[#allocation2 + $0xa] sm:$0xff] }
  0x42   : > { %363 = vst.msk [vmem:[#allocation2 + $0x69] sm:$0xff] %vm309_vm0, %v284_v11  ;;  %366 = vst.msk [vmem:[#allocation2 + $0x91] sm:$0xff] %vm309_vm0, %v287_v12 }
  0x43   : > { %365 = vst.msk [vmem:[#allocation2 + $0x81] sm:$0xff] %vm309_vm0, %v286_v13  ;;  %368 = vst.msk [vmem:[#allocation2 + $0xa9] sm:$0xff] %vm309_vm0, %v289_v14 }
  0x44   : > { %367 = vst.msk [vmem:[#allocation2 + $0x99] sm:$0xff] %vm309_vm0, %v288_v15  ;;  %370 = vst.msk [vmem:[#allocation2 + $0xc1] sm:$0xff] %vm309_vm0, %v291_v16 }
  0x45   : > { %369 = vst.msk [vmem:[#allocation2 + $0xb1] sm:$0xff] %vm309_vm0, %v290_v17  ;;  %372 = vst.msk [vmem:[#allocation2 + $0xd9] sm:$0xff] %vm309_vm0, %v293_v18  ;;  %v5826_v25 = vld [vmem:[#allocation2 + $0x19] sm:$0xff]  ;;  %v5828_v26 = vld [vmem:[#allocation2 + $0x31] sm:$0xff] }
  0x46   : > { %371 = vst.msk [vmem:[#allocation2 + $0xc9] sm:$0xff] %vm309_vm0, %v292_v19  ;;  %374 = vst.msk [vmem:[#allocation2 + $0xf1] sm:$0xff] %vm309_vm0, %v295_v20  ;;  %713 = vrot.lane.b32.xlu1 %v5826_v25, %s5505_s18  ;;  %v5835_v27 = vld [vmem:[#allocation2 + $0x21] sm:$0xff]  ;;  %717 = vrot.lane.b32.xlu0 %v5828_v26, %s5505_s18  ;;  %v5843_v30 = vld [vmem:[#allocation2 + $0x49] sm:$0xff] }
  0x47   : > { %373 = vst.msk [vmem:[#allocation2 + $0xe1] sm:$0xff] %vm309_vm0, %v294_v21  ;;  %376 = vst.msk [vmem:[#allocation2 + $0x109] sm:$0xff] %vm309_vm0, %v297_v22  ;;  %v5847_v31 = vld [vmem:[#allocation2 + $0x39] sm:$0xff]  ;;  %v5851_v32 = vld [vmem:[#allocation2 + $0x61] sm:$0xff] }
  0x48   : > { %375 = vst.msk [vmem:[#allocation2 + $0xf9] sm:$0xff] %vm309_vm0, %v296_v23  ;;  %378 = vst.msk [vmem:[#allocation2 + $0x121] sm:$0xff] %vm309_vm0, %v299_v24  ;;  %v5863_v38 = vld [vmem:[#allocation2 + $0x51] sm:$0xff]  ;;  %v5871_v40 = vld [vmem:[#allocation2 + $0x79] sm:$0xff] }
  0x49   : > { %377 = vst.msk [vmem:[#allocation2 + $0x111] sm:$0xff] %vm309_vm0, %v298_v28  ;;  %380 = vst.msk [vmem:[#allocation2 + $0x139] sm:$0xff] %vm309_vm0, %v301_v29  ;;  %v5875_v41 = vld [vmem:[#allocation2 + $0x69] sm:$0xff]  ;;  %v5879_v42 = vld [vmem:[#allocation2 + $0x91] sm:$0xff] }
  0x4a   : > { %715 = vrot.lane.b32.xlu1 %v5835_v27, %s5505_s18  ;;  %721 = vrot.lane.b32.xlu0 %v5843_v30, %s5505_s18  ;;  %379 = vst.msk [vmem:[#allocation2 + $0x129] sm:$0xff] %vm309_vm0, %v300_v33  ;;  %382 = vst.msk [vmem:[#allocation2 + $0x151] sm:$0xff] %vm309_vm0, %v303_v34  ;;  %v5883_v43 = vld [vmem:[#allocation2 + $0x81] sm:$0xff]  ;;  %v5887_v44 = vld [vmem:[#allocation2 + $0xa9] sm:$0xff] }
  0x4b   : > { %381 = vst.msk [vmem:[#allocation2 + $0x141] sm:$0xff] %vm309_vm0, %v302_v35  ;;  %384 = vst.msk [vmem:[#allocation2 + $0x169] sm:$0xff] %vm309_vm0, %v305_v36  ;;  %v5891_v45 = vld [vmem:[#allocation2 + $0x99] sm:$0xff]  ;;  %v5895_v46 = vld [vmem:[#allocation2 + $0xc1] sm:$0xff] }
  0x4c   : > { %383 = vst.msk [vmem:[#allocation2 + $0x159] sm:$0xff] %vm309_vm0, %v304_v37  ;;  %385 = vst.msk [vmem:[#allocation2 + $0x171] sm:$0xff] %vm309_vm0, %v306_v39  ;;  %v5899_v47 = vld [vmem:[#allocation2 + $0xb1] sm:$0xff]  ;;  %v5903_v48 = vld [vmem:[#allocation2 + $0xd9] sm:$0xff] }
  0x4d   : > { %v5907_v49 = vld [vmem:[#allocation2 + $0xc9] sm:$0xff]  ;;  %v5911_v50 = vld [vmem:[#allocation2 + $0xf1] sm:$0xff]  ;;  %386 = vst.msk [vmem:[#allocation2 + $0x181] sm:$0xff] %vm309_vm0, %v307_v58  ;;  %387 = vst.msk [vmem:[#allocation2 + $0x189] sm:$0xff] %vm309_vm0, %v308_v62 }
  0x4e   : > { %719 = vrot.lane.b32.xlu1 %v5847_v31, %s5505_s18  ;;  %725 = vrot.lane.b32.xlu0 %v5851_v32, %s5505_s18  ;;  %v5915_v51 = vld [vmem:[#allocation2 + $0xe1] sm:$0xff]  ;;  %v5919_v52 = vld [vmem:[#allocation2 + $0x109] sm:$0xff]  ;;  %v5974_v4 = vld [vmem:[#allocation2 + $0x32] sm:$0xff] }
  0x4f   : > { %v5923_v53 = vld [vmem:[#allocation2 + $0xf9] sm:$0xff]  ;;  %v5927_v54 = vld [vmem:[#allocation2 + $0x121] sm:$0xff]  ;;  %v5981_v6 = vld [vmem:[#allocation2 + $0x4a] sm:$0xff] }
  0x50   : > { %v5931_v55 = vld [vmem:[#allocation2 + $0x111] sm:$0xff]  ;;  %v5935_v56 = vld [vmem:[#allocation2 + $0x139] sm:$0xff]  ;;  %v5977_v5 = vld [vmem:[#allocation2 + $0x22] sm:$0xff] }
  0x51   : > { %v5939_v57 = vld [vmem:[#allocation2 + $0x129] sm:$0xff]  ;;  %v5945_v59 = vld [vmem:[#allocation2 + $0x151] sm:$0xff]  ;;  %v5968_v2 = vld [vmem:[#allocation2 + $0x1a] sm:$0xff] }
  0x52   : > { %723 = vrot.lane.b32.xlu1 %v5863_v38, %s5505_s18  ;;  %729 = vrot.lane.b32.xlu0 %v5871_v40, %s5505_s18  ;;  %v5949_v60 = vld [vmem:[#allocation2 + $0x141] sm:$0xff]  ;;  %v5953_v61 = vld [vmem:[#allocation2 + $0x169] sm:$0xff]  ;;  %v5993_v9 = vld [vmem:[#allocation2 + $0x52] sm:$0xff] }
  0x53   : > { %v5959_v63 = vld [vmem:[#allocation2 + $0x159] sm:$0xff]  ;;  %v5965_v1 = vld [vmem:[#allocation2 + $0x171] sm:$0xff]  ;;  %v5989_v8 = vld [vmem:[#allocation2 + $0x62] sm:$0xff] }
  0x54   : > { %v5985_v7 = vld [vmem:[#allocation2 + $0x3a] sm:$0xff]  ;;  %v6001_v11 = vld [vmem:[#allocation2 + $0x6a] sm:$0xff]  ;;  %v6005_v12 = vld [vmem:[#allocation2 + $0x92] sm:$0xff] }
  0x55   : > { %v5997_v10 = vld [vmem:[#allocation2 + $0x7a] sm:$0xff]  ;;  %v6009_v13 = vld [vmem:[#allocation2 + $0x82] sm:$0xff]  ;;  %v6013_v14 = vld [vmem:[#allocation2 + $0xaa] sm:$0xff] }
  0x56   : > { %727 = vrot.lane.b32.xlu1 %v5875_v41, %s5505_s18  ;;  %733 = vrot.lane.b32.xlu0 %v5879_v42, %s5505_s18  ;;  %v6017_v15 = vld [vmem:[#allocation2 + $0x9a] sm:$0xff]  ;;  %v6021_v16 = vld [vmem:[#allocation2 + $0xc2] sm:$0xff]  ;;  %v6025_v17 = vld [vmem:[#allocation2 + $0xb2] sm:$0xff] }
  0x57   : > { %v6029_v18 = vld [vmem:[#allocation2 + $0xda] sm:$0xff]  ;;  %v6033_v19 = vld [vmem:[#allocation2 + $0xca] sm:$0xff]  ;;  %v6037_v20 = vld [vmem:[#allocation2 + $0xf2] sm:$0xff] }
  0x58   : > { %v6041_v21 = vld [vmem:[#allocation2 + $0xe2] sm:$0xff]  ;;  %v6045_v22 = vld [vmem:[#allocation2 + $0x10a] sm:$0xff]  ;;  %v6049_v23 = vld [vmem:[#allocation2 + $0xfa] sm:$0xff] }
  0x59   : > { %v6053_v24 = vld [vmem:[#allocation2 + $0x122] sm:$0xff]  ;;  %v6057_v28 = vld [vmem:[#allocation2 + $0x112] sm:$0xff]  ;;  %v6061_v29 = vld [vmem:[#allocation2 + $0x13a] sm:$0xff] }
  0x5a   : > { %731 = vrot.lane.b32.xlu1 %v5883_v43, %s5505_s18  ;;  %737 = vrot.lane.b32.xlu0 %v5887_v44, %s5505_s18  ;;  %v6067_v34 = vld [vmem:[#allocation2 + $0x12a] sm:$0xff]  ;;  %v6071_v35 = vld [vmem:[#allocation2 + $0x152] sm:$0xff]  ;;  %v6077_v37 = vld [vmem:[#allocation2 + $0x142] sm:$0xff] }
  0x5b   : > { %9431 = vst [vmem:[#allocation9_spill] sm:$0xff] %v6077_v37  ;;  %v6083_v58 = vld [vmem:[#allocation2 + $0x16a] sm:$0xff] }
  0x5c   : > { %9433 = vst [vmem:[#allocation11_spill] sm:$0xff] %v6083_v58 }
  0x5e   : > { %735 = vrot.lane.b32.xlu1 %v5891_v45, %s5505_s18  ;;  %741 = vrot.lane.b32.xlu0 %v5895_v46, %s5505_s18 }
  0x62   : > { %739 = vrot.lane.b32.xlu1 %v5899_v47, %s5505_s18  ;;  %745 = vrot.lane.b32.xlu0 %v5903_v48, %s5505_s18 }
  0x66   : > { %743 = vrot.lane.b32.xlu1 %v5907_v49, %s5505_s18  ;;  %749 = vrot.lane.b32.xlu0 %v5911_v50, %s5505_s18 }
  0x6a   : > { %747 = vrot.lane.b32.xlu1 %v5915_v51, %s5505_s18  ;;  %753 = vrot.lane.b32.xlu0 %v5919_v52, %s5505_s18 }
  0x6e   : > { %751 = vrot.lane.b32.xlu1 %v5923_v53, %s5505_s18  ;;  %757 = vrot.lane.b32.xlu0 %v5927_v54, %s5505_s18 }
  0x72   : > { %755 = vrot.lane.b32.xlu1 %v5931_v55, %s5505_s18  ;;  %761 = vrot.lane.b32.xlu0 %v5935_v56, %s5505_s18 }
  0x76   : > { %759 = vrot.lane.b32.xlu1 %v5939_v57, %s5505_s18  ;;  %765 = vrot.lane.b32.xlu0 %v5945_v59, %s5505_s18 }
  0x7a   : > { %763 = vrot.lane.b32.xlu1 %v5949_v60, %s5505_s18  ;;  %769 = vrot.lane.b32.xlu0 %v5953_v61, %s5505_s18 }
  0x7e   : > { %767 = vrot.lane.b32.xlu1 %v5959_v63, %s5505_s18  ;;  %837 = vrot.lane.b32.xlu0 %v452_v0, %s5506_s19  ;;  %v6089_v0 = vld [vmem:[#allocation2 + $0x15a] sm:$0xff] }
  0x7f   : > { %9435 = vst [vmem:[#allocation13_spill] sm:$0xff] %v6089_v0 }
  0x82   : > { %771 = vrot.lane.b32.xlu1 %v5965_v1, %s5505_s18  ;;  %841 = vrot.lane.b32.xlu0 %v5968_v2, %s5506_s19 }
  0x86   : > { %839 = vrot.lane.b32.xlu1 %v453_v3, %s5506_s19  ;;  %845 = vrot.lane.b32.xlu0 %v5974_v4, %s5506_s19 }
  0x8a   : > { %843 = vrot.lane.b32.xlu1 %v5977_v5, %s5506_s19  ;;  %849 = vrot.lane.b32.xlu0 %v5981_v6, %s5506_s19 }
  0x8e   : > { %847 = vrot.lane.b32.xlu1 %v5985_v7, %s5506_s19  ;;  %853 = vrot.lane.b32.xlu0 %v5989_v8, %s5506_s19 }
  0x8f   : > { %v6063_v33 = vpop.permute.xlu0 %709 }
  0x90   : > { %9429 = vst [vmem:[#allocation7_spill] sm:$0xff] %v6063_v33  ;;  %v6099_v33 = vld [vmem:[#allocation2 + $0x172] sm:$0xff] }
  0x91   : > { %9438 = vst [vmem:[#allocation16_spill] sm:$0xff] %v6099_v33 }
  0x92   : > { %851 = vrot.lane.b32.xlu1 %v5993_v9, %s5506_s19  ;;  %857 = vrot.lane.b32.xlu0 %v5997_v10, %s5506_s19 }
  0x93   : > { %v6073_v36 = vpop.permute.xlu0 %711 }
  0x94   : > { %9430 = vst [vmem:[#allocation8_spill] sm:$0xff] %v6073_v36 }
  0x96   : > { %855 = vrot.lane.b32.xlu1 %v6001_v11, %s5506_s19  ;;  %861 = vrot.lane.b32.xlu0 %v6005_v12, %s5506_s19 }
  0x9a   : > { %859 = vrot.lane.b32.xlu1 %v6009_v13, %s5506_s19  ;;  %865 = vrot.lane.b32.xlu0 %v6013_v14, %s5506_s19 }
  0x9e   : > { %863 = vrot.lane.b32.xlu1 %v6017_v15, %s5506_s19  ;;  %869 = vrot.lane.b32.xlu0 %v6021_v16, %s5506_s19 }
  0xa2   : > { %867 = vrot.lane.b32.xlu1 %v6025_v17, %s5506_s19  ;;  %873 = vrot.lane.b32.xlu0 %v6029_v18, %s5506_s19 }
  0xa6   : > { %871 = vrot.lane.b32.xlu1 %v6033_v19, %s5506_s19  ;;  %877 = vrot.lane.b32.xlu0 %v6037_v20, %s5506_s19 }
  0xaa   : > { %875 = vrot.lane.b32.xlu1 %v6041_v21, %s5506_s19  ;;  %881 = vrot.lane.b32.xlu0 %v6045_v22, %s5506_s19 }
  0xae   : > { %879 = vrot.lane.b32.xlu1 %v6049_v23, %s5506_s19  ;;  %885 = vrot.lane.b32.xlu0 %v6053_v24, %s5506_s19 }
  0xb2   : > { %883 = vrot.lane.b32.xlu1 %v6057_v28, %s5506_s19  ;;  %889 = vrot.lane.b32.xlu0 %v6061_v29, %s5506_s19 }
  0xb6   : > { %887 = vrot.lane.b32.xlu1 %v6067_v34, %s5506_s19  ;;  %893 = vrot.lane.b32.xlu0 %v6071_v35, %s5506_s19 }
  0xb8   : > { %v6081_v39 = vpop.permute.xlu1 %713  ;;  %v6085_v62 = vpop.permute.xlu0 %717 }
  0xb9   : > { %9432 = vst [vmem:[#allocation10_spill] sm:$0xff] %v6081_v39  ;;  %9434 = vst [vmem:[#allocation12_spill] sm:$0xff] %v6085_v62  ;;  %v390_v39 = vld [vmem:[#allocation2 + $0x18] sm:$0xff] }
  0xba   : > { %891 = vrot.lane.b32.xlu1 %v6077_v37, %s5506_s19  ;;  %897 = vrot.lane.b32.xlu0 %v6083_v58, %s5506_s19  ;;  %v6108_v58 = vld [vmem:[#allocation2 + $0x30] sm:$0xff] }
  0xbb   : > { %9441 = vst [vmem:[#allocation19_spill] sm:$0xff] %v6108_v58 }
  0xbc   : > { %v6093_v3 = vpop.permute.xlu1 %715  ;;  %v6095_v36 = vpop.permute.xlu0 %721 }
  0xbd   : > { %9436 = vst [vmem:[#allocation14_spill] sm:$0xff] %v6093_v3  ;;  %9437 = vst [vmem:[#allocation15_spill] sm:$0xff] %v6095_v36  ;;  %v391_v3 = vld [vmem:[#allocation2 + $0x20] sm:$0xff] }
  0xbe   : > { %895 = vrot.lane.b32.xlu1 %v6089_v0, %s5506_s19  ;;  %965 = vrot.lane.b32.xlu0 %v390_v39, %s5507_s20  ;;  %v6117_v39 = vld [vmem:[#allocation2 + $0x48] sm:$0xff] }
  0xbf   : > { %9444 = vst [vmem:[#allocation22_spill] sm:$0xff] %v6117_v39 }
  0xc0   : > { %v6102_v62 = vpop.permute.xlu1 %719  ;;  %v6104_v37 = vpop.permute.xlu0 %725 }
  0xc1   : > { %9439 = vst [vmem:[#allocation17_spill] sm:$0xff] %v6102_v62  ;;  %9440 = vst [vmem:[#allocation18_spill] sm:$0xff] %v6104_v37  ;;  %v6123_v62 = vld [vmem:[#allocation2 + $0x38] sm:$0xff] }
  0xc2   : > { %899 = vrot.lane.b32.xlu1 %v6099_v33, %s5506_s19  ;;  %969 = vrot.lane.b32.xlu0 %v6108_v58, %s5507_s20  ;;  %9446 = vst [vmem:[#allocation24_spill] sm:$0xff] %v6123_v62 }
  0xc4   : > { %v6112_v36 = vpop.permute.xlu1 %723  ;;  %v6114_v0 = vpop.permute.xlu0 %729 }
  0xc5   : > { %9442 = vst [vmem:[#allocation20_spill] sm:$0xff] %v6112_v36  ;;  %9443 = vst [vmem:[#allocation21_spill] sm:$0xff] %v6114_v0  ;;  %v6129_v36 = vld [vmem:[#allocation2 + $0x60] sm:$0xff]  ;;  %v6135_v0 = vld [vmem:[#allocation2 + $0x50] sm:$0xff] }
  0xc6   : > { %967 = vrot.lane.b32.xlu1 %v391_v3, %s5507_s20  ;;  %973 = vrot.lane.b32.xlu0 %v6117_v39, %s5507_s20  ;;  %9448 = vst [vmem:[#allocation26_spill] sm:$0xff] %v6129_v36  ;;  %9450 = vst [vmem:[#allocation28_spill] sm:$0xff] %v6135_v0 }
  0xc8   : > { %v6121_v37 = vpop.permute.xlu1 %727  ;;  %v6125_v33 = vpop.permute.xlu0 %733 }
  0xc9   : > { %9445 = vst [vmem:[#allocation23_spill] sm:$0xff] %v6121_v37  ;;  %9447 = vst [vmem:[#allocation25_spill] sm:$0xff] %v6125_v33  ;;  %v6141_v37 = vld [vmem:[#allocation2 + $0x78] sm:$0xff] }
  0xca   : > { %971 = vrot.lane.b32.xlu1 %v6123_v62, %s5507_s20  ;;  %977 = vrot.lane.b32.xlu0 %v6129_v36, %s5507_s20  ;;  %9452 = vst [vmem:[#allocation30_spill] sm:$0xff] %v6141_v37  ;;  %v6147_v62 = vld [vmem:[#allocation2 + $0x68] sm:$0xff] }
  0xcb   : > { %9454 = vst [vmem:[#allocation32_spill] sm:$0xff] %v6147_v62 }
  0xcc   : > { %v6133_v3 = vpop.permute.xlu1 %731  ;;  %v6137_v58 = vpop.permute.xlu0 %737 }
  0xcd   : > { %9449 = vst [vmem:[#allocation27_spill] sm:$0xff] %v6133_v3  ;;  %9451 = vst [vmem:[#allocation29_spill] sm:$0xff] %v6137_v58  ;;  %v6153_v3 = vld [vmem:[#allocation2 + $0x90] sm:$0xff] }
  0xce   : > { %975 = vrot.lane.b32.xlu1 %v6135_v0, %s5507_s20  ;;  %981 = vrot.lane.b32.xlu0 %v6141_v37, %s5507_s20  ;;  %9456 = vst [vmem:[#allocation34_spill] sm:$0xff] %v6153_v3  ;;  %v6159_v0 = vld [vmem:[#allocation2 + $0x80] sm:$0xff] }
  0xcf   : > { %9458 = vst [vmem:[#allocation36_spill] sm:$0xff] %v6159_v0 }
  0xd0   : > { %v6145_v33 = vpop.permute.xlu1 %735  ;;  %v6149_v39 = vpop.permute.xlu0 %741 }
  0xd1   : > { %9453 = vst [vmem:[#allocation31_spill] sm:$0xff] %v6145_v33  ;;  %9455 = vst [vmem:[#allocation33_spill] sm:$0xff] %v6149_v39  ;;  %v6165_v33 = vld [vmem:[#allocation2 + $0xa8] sm:$0xff] }
  0xd2   : > { %979 = vrot.lane.b32.xlu1 %v6147_v62, %s5507_s20  ;;  %985 = vrot.lane.b32.xlu0 %v6153_v3, %s5507_s20  ;;  %9460 = vst [vmem:[#allocation38_spill] sm:$0xff] %v6165_v33  ;;  %v6171_v62 = vld [vmem:[#allocation2 + $0x98] sm:$0xff] }
  0xd3   : > { %9462 = vst [vmem:[#allocation40_spill] sm:$0xff] %v6171_v62 }
  0xd4   : > { %v6157_v58 = vpop.permute.xlu1 %739  ;;  %v6161_v36 = vpop.permute.xlu0 %745 }
  0xd5   : > { %9457 = vst [vmem:[#allocation35_spill] sm:$0xff] %v6157_v58  ;;  %9459 = vst [vmem:[#allocation37_spill] sm:$0xff] %v6161_v36  ;;  %v6177_v58 = vld [vmem:[#allocation2 + $0xc0] sm:$0xff] }
  0xd6   : > { %983 = vrot.lane.b32.xlu1 %v6159_v0, %s5507_s20  ;;  %989 = vrot.lane.b32.xlu0 %v6165_v33, %s5507_s20  ;;  %9464 = vst [vmem:[#allocation42_spill] sm:$0xff] %v6177_v58  ;;  %v6183_v0 = vld [vmem:[#allocation2 + $0xb0] sm:$0xff] }
  0xd7   : > { %9466 = vst [vmem:[#allocation44_spill] sm:$0xff] %v6183_v0 }
  0xd8   : > { %v6169_v39 = vpop.permute.xlu1 %743  ;;  %v6173_v37 = vpop.permute.xlu0 %749 }
  0xd9   : > { %9461 = vst [vmem:[#allocation39_spill] sm:$0xff] %v6169_v39  ;;  %9463 = vst [vmem:[#allocation41_spill] sm:$0xff] %v6173_v37  ;;  %v6189_v39 = vld [vmem:[#allocation2 + $0xd8] sm:$0xff] }
  0xda   : > { %987 = vrot.lane.b32.xlu1 %v6171_v62, %s5507_s20  ;;  %993 = vrot.lane.b32.xlu0 %v6177_v58, %s5507_s20  ;;  %9468 = vst [vmem:[#allocation46_spill] sm:$0xff] %v6189_v39  ;;  %v6195_v62 = vld [vmem:[#allocation2 + $0xc8] sm:$0xff] }
  0xdb   : > { %9470 = vst [vmem:[#allocation48_spill] sm:$0xff] %v6195_v62 }
  0xdc   : > { %v6181_v36 = vpop.permute.xlu1 %747  ;;  %v6185_v3 = vpop.permute.xlu0 %753 }
  0xdd   : > { %9465 = vst [vmem:[#allocation43_spill] sm:$0xff] %v6181_v36  ;;  %9467 = vst [vmem:[#allocation45_spill] sm:$0xff] %v6185_v3  ;;  %v6201_v36 = vld [vmem:[#allocation2 + $0xf0] sm:$0xff] }
  0xde   : > { %991 = vrot.lane.b32.xlu1 %v6183_v0, %s5507_s20  ;;  %997 = vrot.lane.b32.xlu0 %v6189_v39, %s5507_s20  ;;  %9472 = vst [vmem:[#allocation50_spill] sm:$0xff] %v6201_v36  ;;  %v6207_v0 = vld [vmem:[#allocation2 + $0xe0] sm:$0xff] }
  0xdf   : > { %9474 = vst [vmem:[#allocation52_spill] sm:$0xff] %v6207_v0 }
  0xe0   : > { %v6193_v37 = vpop.permute.xlu1 %751  ;;  %v6197_v33 = vpop.permute.xlu0 %757 }
  0xe1   : > { %9469 = vst [vmem:[#allocation47_spill] sm:$0xff] %v6193_v37  ;;  %9471 = vst [vmem:[#allocation49_spill] sm:$0xff] %v6197_v33  ;;  %v6213_v37 = vld [vmem:[#allocation2 + $0x108] sm:$0xff] }
  0xe2   : > { %995 = vrot.lane.b32.xlu1 %v6195_v62, %s5507_s20  ;;  %1001 = vrot.lane.b32.xlu0 %v6201_v36, %s5507_s20  ;;  %9476 = vst [vmem:[#allocation54_spill] sm:$0xff] %v6213_v37  ;;  %v6219_v62 = vld [vmem:[#allocation2 + $0xf8] sm:$0xff] }
  0xe3   : > { %9478 = vst [vmem:[#allocation56_spill] sm:$0xff] %v6219_v62 }
  0xe4   : > { %v6205_v3 = vpop.permute.xlu1 %755  ;;  %v6209_v58 = vpop.permute.xlu0 %761 }
  0xe5   : > { %9473 = vst [vmem:[#allocation51_spill] sm:$0xff] %v6205_v3  ;;  %9475 = vst [vmem:[#allocation53_spill] sm:$0xff] %v6209_v58  ;;  %v6225_v3 = vld [vmem:[#allocation2 + $0x120] sm:$0xff] }
  0xe6   : > { %999 = vrot.lane.b32.xlu1 %v6207_v0, %s5507_s20  ;;  %1005 = vrot.lane.b32.xlu0 %v6213_v37, %s5507_s20  ;;  %9480 = vst [vmem:[#allocation58_spill] sm:$0xff] %v6225_v3  ;;  %v6231_v0 = vld [vmem:[#allocation2 + $0x110] sm:$0xff] }
  0xe7   : > { %9482 = vst [vmem:[#allocation60_spill] sm:$0xff] %v6231_v0 }
  0xe8   : > { %v6217_v33 = vpop.permute.xlu1 %759  ;;  %v6221_v39 = vpop.permute.xlu0 %765 }
  0xe9   : > { %9477 = vst [vmem:[#allocation55_spill] sm:$0xff] %v6217_v33  ;;  %9479 = vst [vmem:[#allocation57_spill] sm:$0xff] %v6221_v39  ;;  %v6237_v33 = vld [vmem:[#allocation2 + $0x138] sm:$0xff] }
  0xea   : > { %1003 = vrot.lane.b32.xlu1 %v6219_v62, %s5507_s20  ;;  %1009 = vrot.lane.b32.xlu0 %v6225_v3, %s5507_s20  ;;  %9484 = vst [vmem:[#allocation62_spill] sm:$0xff] %v6237_v33  ;;  %v6243_v62 = vld [vmem:[#allocation2 + $0x128] sm:$0xff] }
  0xeb   : > { %9486 = vst [vmem:[#allocation64_spill] sm:$0xff] %v6243_v62 }
  0xec   : > { %v6229_v58 = vpop.permute.xlu1 %763  ;;  %v6233_v36 = vpop.permute.xlu0 %769 }
  0xed   : > { %9481 = vst [vmem:[#allocation59_spill] sm:$0xff] %v6229_v58  ;;  %9483 = vst [vmem:[#allocation61_spill] sm:$0xff] %v6233_v36  ;;  %v6249_v58 = vld [vmem:[#allocation2 + $0x150] sm:$0xff] }
  0xee   : > { %1007 = vrot.lane.b32.xlu1 %v6231_v0, %s5507_s20  ;;  %1013 = vrot.lane.b32.xlu0 %v6237_v33, %s5507_s20  ;;  %9488 = vst [vmem:[#allocation66_spill] sm:$0xff] %v6249_v58  ;;  %v6255_v0 = vld [vmem:[#allocation2 + $0x140] sm:$0xff] }
  0xef   : > { %9490 = vst [vmem:[#allocation68_spill] sm:$0xff] %v6255_v0  ;;  %v6269_v33 = vld [vmem:[#allocation2 + $0x180] sm:$0xff] }
  0xf0   : > { %v6241_v39 = vpop.permute.xlu1 %767  ;;  %v6245_v37 = vpop.permute.xlu0 %837 }
  0xf1   : > { %9485 = vst [vmem:[#allocation63_spill] sm:$0xff] %v6241_v39  ;;  %9487 = vst [vmem:[#allocation65_spill] sm:$0xff] %v6245_v37  ;;  %v6261_v39 = vld [vmem:[#allocation2 + $0x168] sm:$0xff] }
  0xf2   : > { %1011 = vrot.lane.b32.xlu1 %v6243_v62, %s5507_s20  ;;  %1017 = vrot.lane.b32.xlu0 %v6249_v58, %s5507_s20  ;;  %v6267_v62 = vld [vmem:[#allocation2 + $0x158] sm:$0xff] }
  0xf3   : > { %9493 = vst [vmem:[#allocation71_spill] sm:$0xff] %v6267_v62 }
  0xf4   : > { %v6253_v36 = vpop.permute.xlu1 %771  ;;  %v6257_v3 = vpop.permute.xlu0 %841 }
  0xf5   : > { %9489 = vst [vmem:[#allocation67_spill] sm:$0xff] %v6253_v36  ;;  %9491 = vst [vmem:[#allocation69_spill] sm:$0xff] %v6257_v3  ;;  %v6279_v3 = vld [vmem:[#allocation2 + $0x170] sm:$0xff] }
  0xf6   : > { %1015 = vrot.lane.b32.xlu1 %v6255_v0, %s5507_s20  ;;  %1021 = vrot.lane.b32.xlu0 %v6261_v39, %s5507_s20 }
  0xf8   : > { %v6265_v37 = vpop.permute.xlu1 %839  ;;  %v6271_v58 = vpop.permute.xlu0 %845 }
  0xf9   : > { %9492 = vst [vmem:[#allocation70_spill] sm:$0xff] %v6265_v37  ;;  %9494 = vst [vmem:[#allocation72_spill] sm:$0xff] %v6271_v58  ;;  %v6285_v37 = vld [vmem:[#allocation2 + $0x188] sm:$0xff] }
  0xfa   : > { %1019 = vrot.lane.b32.xlu1 %v6267_v62, %s5507_s20  ;;  %1025 = vrot.lane.b32.xlu0 %v6269_v33, %s5507_s20 }
  0xfc   : > { %v6277_v36 = vpop.permute.xlu1 %843  ;;  %v6281_v0 = vpop.permute.xlu0 %849 }
  0xfd   : > { %9495 = vst [vmem:[#allocation73_spill] sm:$0xff] %v6277_v36  ;;  %9496 = vst [vmem:[#allocation74_spill] sm:$0xff] %v6281_v0 }
  0xfe   : > { %1023 = vrot.lane.b32.xlu1 %v6279_v3, %s5507_s20  ;;  %1093 = vrot.lane.b32.xlu0 %v5826_v25, %s5508_s21 }
 0x100   : > { %v6289_v58 = vpop.permute.xlu1 %847  ;;  %v6291_v62 = vpop.permute.xlu0 %853 }
 0x101   : > { %9497 = vst [vmem:[#allocation75_spill] sm:$0xff] %v6289_v58  ;;  %9498 = vst [vmem:[#allocation76_spill] sm:$0xff] %v6291_v62 }
 0x102   : > { %1027 = vrot.lane.b32.xlu1 %v6285_v37, %s5507_s20  ;;  %1097 = vrot.lane.b32.xlu0 %v5828_v26, %s5508_s21 }
 0x104   : > { %v6297_v0 = vpop.permute.xlu1 %851  ;;  %v6299_v36 = vpop.permute.xlu0 %857 }
 0x106   : > { %1095 = vrot.lane.b32.xlu1 %v5835_v27, %s5508_s21  ;;  %1101 = vrot.lane.b32.xlu0 %v5843_v30, %s5508_s21 }
 0x108   : > { %v6305_v25 = vpop.permute.xlu1 %855  ;;  %v6307_v58 = vpop.permute.xlu0 %861 }
 0x109   : > { %9499 = vst [vmem:[#allocation77_spill] sm:$0xff] %v6307_v58 }
 0x10a   : > { %1099 = vrot.lane.b32.xlu1 %v5847_v31, %s5508_s21  ;;  %1105 = vrot.lane.b32.xlu0 %v5851_v32, %s5508_s21 }
 0x10c   : > { %v6313_v26 = vpop.permute.xlu1 %859  ;;  %v6315_v62 = vpop.permute.xlu0 %865 }
 0x10d   : > { %9500 = vst [vmem:[#allocation78_spill] sm:$0xff] %v6313_v26  ;;  %9501 = vst [vmem:[#allocation79_spill] sm:$0xff] %v6315_v62  ;;  %v5396_v26 = vld [vmem:[#allocation2 + $0x30] sm:$0xff] }
 0x10e   : > { %1103 = vrot.lane.b32.xlu1 %v5863_v38, %s5508_s21  ;;  %1109 = vrot.lane.b32.xlu0 %v5871_v40, %s5508_s21 }
 0x110   : > { %v6321_v27 = vpop.permute.xlu1 %863  ;;  %v6323_v30 = vpop.permute.xlu0 %869 }
 0x111   : > { %9502 = vst [vmem:[#allocation80_spill] sm:$0xff] %v6321_v27  ;;  %9503 = vst [vmem:[#allocation81_spill] sm:$0xff] %v6323_v30 }
 0x112   : > { %1107 = vrot.lane.b32.xlu1 %v5875_v41, %s5508_s21  ;;  %1113 = vrot.lane.b32.xlu0 %v5879_v42, %s5508_s21 }
 0x114   : > { %v6329_v31 = vpop.permute.xlu1 %867  ;;  %v6331_v32 = vpop.permute.xlu0 %873 }
 0x115   : > { %9504 = vst [vmem:[#allocation82_spill] sm:$0xff] %v6329_v31  ;;  %9505 = vst [vmem:[#allocation83_spill] sm:$0xff] %v6331_v32 }
 0x116   : > { %1111 = vrot.lane.b32.xlu1 %v5883_v43, %s5508_s21  ;;  %1117 = vrot.lane.b32.xlu0 %v5887_v44, %s5508_s21 }
 0x118   : > { %v6337_v38 = vpop.permute.xlu1 %871  ;;  %v6339_v40 = vpop.permute.xlu0 %877 }
 0x119   : > { %9506 = vst [vmem:[#allocation84_spill] sm:$0xff] %v6337_v38  ;;  %9507 = vst [vmem:[#allocation85_spill] sm:$0xff] %v6339_v40  ;;  %v621_v38 = vld [vmem:[#allocation2 + $0x91] sm:$0xff] }
 0x11a   : > { %1115 = vrot.lane.b32.xlu1 %v5891_v45, %s5508_s21  ;;  %1121 = vrot.lane.b32.xlu0 %v5895_v46, %s5508_s21 }
 0x11c   : > { %v6345_v41 = vpop.permute.xlu1 %875  ;;  %v6347_v42 = vpop.permute.xlu0 %881 }
 0x11d   : > { %9508 = vst [vmem:[#allocation86_spill] sm:$0xff] %v6345_v41  ;;  %9509 = vst [vmem:[#allocation87_spill] sm:$0xff] %v6347_v42 }
 0x11e   : > { %1119 = vrot.lane.b32.xlu1 %v5899_v47, %s5508_s21  ;;  %1125 = vrot.lane.b32.xlu0 %v5903_v48, %s5508_s21 }
 0x120   : > { %v6353_v43 = vpop.permute.xlu1 %879  ;;  %v6355_v44 = vpop.permute.xlu0 %885 }
 0x121   : > { %9510 = vst [vmem:[#allocation88_spill] sm:$0xff] %v6353_v43  ;;  %9511 = vst [vmem:[#allocation89_spill] sm:$0xff] %v6355_v44  ;;  %v9552_v44 = vld [vmem:[#allocation28_spill] sm:$0xff] }
 0x122   : > { %1123 = vrot.lane.b32.xlu1 %v5907_v49, %s5508_s21  ;;  %1129 = vrot.lane.b32.xlu0 %v5911_v50, %s5508_s21  ;;  %v9564_v43 = vld [vmem:[#allocation40_spill] sm:$0xff] }
 0x124   : > { %v6361_v45 = vpop.permute.xlu1 %883  ;;  %v6363_v46 = vpop.permute.xlu0 %889 }
 0x125   : > { %9512 = vst [vmem:[#allocation90_spill] sm:$0xff] %v6361_v45  ;;  %9513 = vst [vmem:[#allocation91_spill] sm:$0xff] %v6363_v46  ;;  %v9556_v45 = vld [vmem:[#allocation32_spill] sm:$0xff] }
 0x126   : > { %1127 = vrot.lane.b32.xlu1 %v5915_v51, %s5508_s21  ;;  %1133 = vrot.lane.b32.xlu0 %v5919_v52, %s5508_s21 }
 0x128   : > { %v6369_v47 = vpop.permute.xlu1 %887  ;;  %v6371_v48 = vpop.permute.xlu0 %893 }
 0x129   : > { %9514 = vst [vmem:[#allocation92_spill] sm:$0xff] %v6369_v47  ;;  %9515 = vst [vmem:[#allocation93_spill] sm:$0xff] %v6371_v48 }
 0x12a   : > { %1131 = vrot.lane.b32.xlu1 %v5923_v53, %s5508_s21  ;;  %1137 = vrot.lane.b32.xlu0 %v5927_v54, %s5508_s21 }
 0x12c   : > { %v6377_v49 = vpop.permute.xlu1 %891  ;;  %v6379_v50 = vpop.permute.xlu0 %897 }
 0x12d   : > { %9516 = vst [vmem:[#allocation94_spill] sm:$0xff] %v6377_v49  ;;  %9517 = vst [vmem:[#allocation95_spill] sm:$0xff] %v6379_v50 }
 0x12e   : > { %1135 = vrot.lane.b32.xlu1 %v5931_v55, %s5508_s21  ;;  %1141 = vrot.lane.b32.xlu0 %v5935_v56, %s5508_s21  ;;  %v6403_v56 = vld [vmem:[#allocation2 + $0x181] sm:$0xff] }
 0x130   : > { %v6385_v51 = vpop.permute.xlu1 %895  ;;  %v6387_v52 = vpop.permute.xlu0 %965 }
 0x131   : > { %9518 = vst [vmem:[#allocation96_spill] sm:$0xff] %v6385_v51 }
 0x132   : > { %1139 = vrot.lane.b32.xlu1 %v5939_v57, %s5508_s21  ;;  %1145 = vrot.lane.b32.xlu0 %v5945_v59, %s5508_s21 }
 0x134   : > { %v6393_v53 = vpop.permute.xlu1 %899  ;;  %v6395_v54 = vpop.permute.xlu0 %969 }
 0x135   : > { %9519 = vst [vmem:[#allocation97_spill] sm:$0xff] %v6393_v53 }
 0x136   : > { %1143 = vrot.lane.b32.xlu1 %v5949_v60, %s5508_s21  ;;  %1149 = vrot.lane.b32.xlu0 %v5953_v61, %s5508_s21  ;;  %v6417_v60 = vld [vmem:[#allocation2 + $0x189] sm:$0xff] }
 0x138   : > { %v6401_v55 = vpop.permute.xlu1 %967  ;;  %v6405_v50 = vpop.permute.xlu0 %973 }
 0x13a   : > { %1147 = vrot.lane.b32.xlu1 %v5959_v63, %s5508_s21  ;;  %1153 = vrot.lane.b32.xlu0 %v6403_v56, %s5508_s21 }
 0x13c   : > { %v6411_v57 = vpop.permute.xlu1 %971  ;;  %v6413_v59 = vpop.permute.xlu0 %977 }
 0x13e   : > { %1151 = vrot.lane.b32.xlu1 %v5965_v1, %s5508_s21  ;;  %1221 = vrot.lane.b32.xlu0 %v5968_v2, %s5509_s22 }
 0x140   : > { %v6421_v61 = vpop.permute.xlu1 %975  ;;  %v6423_v53 = vpop.permute.xlu0 %981 }
 0x142   : > { %1155 = vrot.lane.b32.xlu1 %v6417_v60, %s5508_s21  ;;  %1225 = vrot.lane.b32.xlu0 %v5974_v4, %s5509_s22 }
 0x144   : > { %v6429_v63 = vpop.permute.xlu1 %979  ;;  %v6431_v51 = vpop.permute.xlu0 %985 }
 0x145   : > { %9520 = vst [vmem:[#allocation98_spill] sm:$0xff] %v6431_v51 }
 0x146   : > { %1223 = vrot.lane.b32.xlu1 %v5977_v5, %s5509_s22  ;;  %1229 = vrot.lane.b32.xlu0 %v5981_v6, %s5509_s22 }
 0x148   : > { %v6437_v1 = vpop.permute.xlu1 %983  ;;  %v6439_v2 = vpop.permute.xlu0 %989 }
 0x149   : > { %9521 = vst [vmem:[#allocation99_spill] sm:$0xff] %v6439_v2  ;;  %v656_v2 = vld [vmem:[#allocation2 + $0xb2] sm:$0xff] }
 0x14a   : > { %1227 = vrot.lane.b32.xlu1 %v5985_v7, %s5509_s22  ;;  %1233 = vrot.lane.b32.xlu0 %v5989_v8, %s5509_s22 }
 0x14c   : > { %v6445_v4 = vpop.permute.xlu1 %987  ;;  %v6447_v49 = vpop.permute.xlu0 %993 }
 0x14d   : > { %9522 = vst [vmem:[#allocation100_spill] sm:$0xff] %v6445_v4  ;;  %9523 = vst [vmem:[#allocation101_spill] sm:$0xff] %v6447_v49 }
 0x14e   : > { %1231 = vrot.lane.b32.xlu1 %v5993_v9, %s5509_s22  ;;  %1237 = vrot.lane.b32.xlu0 %v5997_v10, %s5509_s22 }
 0x150   : > { %v6453_v5 = vpop.permute.xlu1 %991  ;;  %v6455_v6 = vpop.permute.xlu0 %997 }
 0x151   : > { %9524 = vst [vmem:[#allocation102_spill] sm:$0xff] %v6453_v5  ;;  %9525 = vst [vmem:[#allocation103_spill] sm:$0xff] %v6455_v6 }
 0x152   : > { %1235 = vrot.lane.b32.xlu1 %v6001_v11, %s5509_s22  ;;  %1241 = vrot.lane.b32.xlu0 %v6005_v12, %s5509_s22 }
 0x154   : > { %v6461_v7 = vpop.permute.xlu1 %995  ;;  %v6463_v8 = vpop.permute.xlu0 %1001 }
 0x155   : > { %9526 = vst [vmem:[#allocation104_spill] sm:$0xff] %v6461_v7  ;;  %9527 = vst [vmem:[#allocation105_spill] sm:$0xff] %v6463_v8  ;;  %v625_v7 = vld [vmem:[#allocation2 + $0xc1] sm:$0xff] }
 0x156   : > { %1239 = vrot.lane.b32.xlu1 %v6009_v13, %s5509_s22  ;;  %1245 = vrot.lane.b32.xlu0 %v6013_v14, %s5509_s22 }
 0x158   : > { %v6469_v9 = vpop.permute.xlu1 %999  ;;  %v6471_v10 = vpop.permute.xlu0 %1005 }
 0x159   : > { %9528 = vst [vmem:[#allocation106_spill] sm:$0xff] %v6469_v9  ;;  %9529 = vst [vmem:[#allocation107_spill] sm:$0xff] %v6471_v10  ;;  %v619_v9 = vld [vmem:[#allocation2 + $0x79] sm:$0xff] }
 0x15a   : > { %1243 = vrot.lane.b32.xlu1 %v6017_v15, %s5509_s22  ;;  %1249 = vrot.lane.b32.xlu0 %v6021_v16, %s5509_s22 }
 0x15c   : > { %v6477_v11 = vpop.permute.xlu1 %1003  ;;  %v6479_v12 = vpop.permute.xlu0 %1009 }
 0x15d   : > { %9530 = vst [vmem:[#allocation108_spill] sm:$0xff] %v6477_v11  ;;  %9531 = vst [vmem:[#allocation109_spill] sm:$0xff] %v6479_v12  ;;  %v9568_v11 = vld [vmem:[#allocation44_spill] sm:$0xff] }
 0x15e   : > { %1247 = vrot.lane.b32.xlu1 %v6025_v17, %s5509_s22  ;;  %1253 = vrot.lane.b32.xlu0 %v6029_v18, %s5509_s22 }
 0x160   : > { %v6485_v13 = vpop.permute.xlu1 %1007  ;;  %v6487_v14 = vpop.permute.xlu0 %1013 }
 0x161   : > { %9532 = vst [vmem:[#allocation110_spill] sm:$0xff] %v6485_v13  ;;  %9533 = vst [vmem:[#allocation111_spill] sm:$0xff] %v6487_v14  ;;  %v9550_v14 = vld [vmem:[#allocation26_spill] sm:$0xff]  ;;  %v9560_v13 = vld [vmem:[#allocation36_spill] sm:$0xff] }
 0x162   : > { %1251 = vrot.lane.b32.xlu1 %v6033_v19, %s5509_s22  ;;  %1257 = vrot.lane.b32.xlu0 %v6037_v20, %s5509_s22 }
 0x164   : > { %v6493_v15 = vpop.permute.xlu1 %1011  ;;  %v6495_v16 = vpop.permute.xlu0 %1017 }
 0x165   : > { %9534 = vst [vmem:[#allocation112_spill] sm:$0xff] %v6493_v15  ;;  %9535 = vst [vmem:[#allocation113_spill] sm:$0xff] %v6495_v16  ;;  %v9553_v15 = vld [vmem:[#allocation30_spill] sm:$0xff] }
 0x166   : > { %1255 = vrot.lane.b32.xlu1 %v6041_v21, %s5509_s22  ;;  %1261 = vrot.lane.b32.xlu0 %v6045_v22, %s5509_s22 }
 0x168   : > { %v6501_v17 = vpop.permute.xlu1 %1015  ;;  %v6503_v18 = vpop.permute.xlu0 %1021 }
 0x169   : > { %9536 = vst [vmem:[#allocation114_spill] sm:$0xff] %v6501_v17  ;;  %9537 = vst [vmem:[#allocation115_spill] sm:$0xff] %v6503_v18 }
 0x16a   : > { %1259 = vrot.lane.b32.xlu1 %v6049_v23, %s5509_s22  ;;  %1265 = vrot.lane.b32.xlu0 %v6053_v24, %s5509_s22 }
 0x16c   : > { %v6509_v19 = vpop.permute.xlu1 %1019  ;;  %v6511_v20 = vpop.permute.xlu0 %1025 }
 0x16d   : > { %9538 = vst [vmem:[#allocation116_spill] sm:$0xff] %v6509_v19  ;;  %9539 = vst [vmem:[#allocation117_spill] sm:$0xff] %v6511_v20  ;;  %v9542_v20 = vld [vmem:[#allocation9_spill] sm:$0xff]  ;;  %v9546_v19 = vld [vmem:[#allocation19_spill] sm:$0xff] }
 0x16e   : > { %1263 = vrot.lane.b32.xlu1 %v6057_v28, %s5509_s22  ;;  %1269 = vrot.lane.b32.xlu0 %v6061_v29, %s5509_s22  ;;  %v9543_v28 = vld [vmem:[#allocation11_spill] sm:$0xff] }
 0x170   : > { %v6517_v21 = vpop.permute.xlu1 %1023  ;;  %v6519_v22 = vpop.permute.xlu0 %1093 }
 0x171   : > { %9540 = vst [vmem:[#allocation118_spill] sm:$0xff] %v6517_v21  ;;  %v6535_v21 = vld [vmem:[#allocation2 + $0x182] sm:$0xff] }
 0x172   : > { %1267 = vrot.lane.b32.xlu1 %v6067_v34, %s5509_s22  ;;  %1273 = vrot.lane.b32.xlu0 %v6071_v35, %s5509_s22  ;;  %v9544_v34 = vld [vmem:[#allocation13_spill] sm:$0xff] }
 0x174   : > { %v6525_v23 = vpop.permute.xlu1 %1027  ;;  %v6527_v24 = vpop.permute.xlu0 %1097 }
 0x175   : > { %9541 = vst [vmem:[#allocation119_spill] sm:$0xff] %v6525_v23 }
 0x176   : > { %1271 = vrot.lane.b32.xlu1 %v9542_v20, %s5509_s22  ;;  %1277 = vrot.lane.b32.xlu0 %v9543_v28, %s5509_s22  ;;  %v9545_v20 = vld [vmem:[#allocation16_spill] sm:$0xff] }
 0x177   : > { %v6549_v28 = vld [vmem:[#allocation2 + $0x18a] sm:$0xff] }
 0x178   : > { %v6533_v29 = vpop.permute.xlu1 %1095  ;;  %v6537_v18 = vpop.permute.xlu0 %1101 }
 0x17a   : > { %1275 = vrot.lane.b32.xlu1 %v9544_v34, %s5509_s22  ;;  %1281 = vrot.lane.b32.xlu0 %v6535_v21, %s5509_s22  ;;  %v9547_v34 = vld [vmem:[#allocation22_spill] sm:$0xff] }
 0x17c   : > { %v6543_v35 = vpop.permute.xlu1 %1099  ;;  %v6545_v23 = vpop.permute.xlu0 %1105 }
 0x17e   : > { %1279 = vrot.lane.b32.xlu1 %v9545_v20, %s5509_s22  ;;  %1349 = vrot.lane.b32.xlu0 %v9546_v19, %s5510_s23  ;;  %v9549_v20 = vld [vmem:[#allocation24_spill] sm:$0xff] }
 0x180   : > { %v6553_v16 = vpop.permute.xlu1 %1103  ;;  %v6555_v48 = vpop.permute.xlu0 %1109 }
 0x182   : > { %1283 = vrot.lane.b32.xlu1 %v6549_v28, %s5509_s22  ;;  %1353 = vrot.lane.b32.xlu0 %v9547_v34, %s5510_s23 }
 0x184   : > { %v6561_v46 = vpop.permute.xlu1 %1107  ;;  %v6563_v17 = vpop.permute.xlu0 %1113 }
 0x185   : > { %9548 = vst [vmem:[#allocation9_spill] sm:$0xff] %v6563_v17 }
 0x186   : > { %1351 = vrot.lane.b32.xlu1 %v9549_v20, %s5510_s23  ;;  %1357 = vrot.lane.b32.xlu0 %v9550_v14, %s5510_s23  ;;  %v9557_v20 = vld [vmem:[#allocation34_spill] sm:$0xff] }
 0x188   : > { %v6569_v19 = vpop.permute.xlu1 %1111  ;;  %v6571_v47 = vpop.permute.xlu0 %1117 }
 0x189   : > { %9551 = vst [vmem:[#allocation11_spill] sm:$0xff] %v6571_v47  ;;  %v654_v47 = vld [vmem:[#allocation2 + $0x9a] sm:$0xff] }
 0x18a   : > { %1355 = vrot.lane.b32.xlu1 %v9552_v44, %s5510_s23  ;;  %1361 = vrot.lane.b32.xlu0 %v9553_v15, %s5510_s23  ;;  %v9561_v44 = vld [vmem:[#allocation38_spill] sm:$0xff] }
 0x18c   : > { %v6577_v34 = vpop.permute.xlu1 %1115  ;;  %v6579_v12 = vpop.permute.xlu0 %1121 }
 0x18d   : > { %9554 = vst [vmem:[#allocation13_spill] sm:$0xff] %v6577_v34  ;;  %9555 = vst [vmem:[#allocation16_spill] sm:$0xff] %v6579_v12 }
 0x18e   : > { %1359 = vrot.lane.b32.xlu1 %v9556_v45, %s5510_s23  ;;  %1365 = vrot.lane.b32.xlu0 %v9557_v20, %s5510_s23  ;;  %v9565_v45 = vld [vmem:[#allocation42_spill] sm:$0xff] }
 0x190   : > { %v6585_v14 = vpop.permute.xlu1 %1119  ;;  %v6587_v42 = vpop.permute.xlu0 %1125 }
 0x191   : > { %9558 = vst [vmem:[#allocation19_spill] sm:$0xff] %v6585_v14  ;;  %9559 = vst [vmem:[#allocation22_spill] sm:$0xff] %v6587_v42 }
 0x192   : > { %1363 = vrot.lane.b32.xlu1 %v9560_v13, %s5510_s23  ;;  %1369 = vrot.lane.b32.xlu0 %v9561_v44, %s5510_s23  ;;  %v9569_v13 = vld [vmem:[#allocation46_spill] sm:$0xff] }
 0x194   : > { %v6593_v15 = vpop.permute.xlu1 %1123  ;;  %v6595_v10 = vpop.permute.xlu0 %1129 }
 0x195   : > { %9562 = vst [vmem:[#allocation24_spill] sm:$0xff] %v6593_v15  ;;  %9563 = vst [vmem:[#allocation26_spill] sm:$0xff] %v6595_v10  ;;  %v9572_v10 = vld [vmem:[#allocation48_spill] sm:$0xff] }
 0x196   : > { %1367 = vrot.lane.b32.xlu1 %v9564_v43, %s5510_s23  ;;  %1373 = vrot.lane.b32.xlu0 %v9565_v45, %s5510_s23  ;;  %v9573_v43 = vld [vmem:[#allocation50_spill] sm:$0xff]  ;;  %v623_v15 = vld [vmem:[#allocation2 + $0xa9] sm:$0xff] }
 0x198   : > { %v6601_v20 = vpop.permute.xlu1 %1127  ;;  %v6603_v40 = vpop.permute.xlu0 %1133 }
 0x199   : > { %9566 = vst [vmem:[#allocation28_spill] sm:$0xff] %v6601_v20  ;;  %9567 = vst [vmem:[#allocation30_spill] sm:$0xff] %v6603_v40  ;;  %v9576_v40 = vld [vmem:[#allocation52_spill] sm:$0xff] }
 0x19a   : > { %1371 = vrot.lane.b32.xlu1 %v9568_v11, %s5510_s23  ;;  %1377 = vrot.lane.b32.xlu0 %v9569_v13, %s5510_s23  ;;  %v9577_v11 = vld [vmem:[#allocation54_spill] sm:$0xff]  ;;  %v617_v20 = vld [vmem:[#allocation2 + $0x61] sm:$0xff] }
 0x19c   : > { %v6609_v44 = vpop.permute.xlu1 %1131  ;;  %v6611_v8 = vpop.permute.xlu0 %1137 }
 0x19d   : > { %9570 = vst [vmem:[#allocation32_spill] sm:$0xff] %v6609_v44  ;;  %9571 = vst [vmem:[#allocation34_spill] sm:$0xff] %v6611_v8  ;;  %v9580_v8 = vld [vmem:[#allocation56_spill] sm:$0xff] }
 0x19e   : > { %1375 = vrot.lane.b32.xlu1 %v9572_v10, %s5510_s23  ;;  %1381 = vrot.lane.b32.xlu0 %v9573_v43, %s5510_s23  ;;  %v9581_v10 = vld [vmem:[#allocation58_spill] sm:$0xff] }
 0x1a0   : > { %v6617_v45 = vpop.permute.xlu1 %1135  ;;  %v6619_v41 = vpop.permute.xlu0 %1141 }
 0x1a1   : > { %9574 = vst [vmem:[#allocation36_spill] sm:$0xff] %v6617_v45  ;;  %9575 = vst [vmem:[#allocation38_spill] sm:$0xff] %v6619_v41  ;;  %v9584_v41 = vld [vmem:[#allocation60_spill] sm:$0xff] }
 0x1a2   : > { %1379 = vrot.lane.b32.xlu1 %v9576_v40, %s5510_s23  ;;  %1385 = vrot.lane.b32.xlu0 %v9577_v11, %s5510_s23  ;;  %v9585_v40 = vld [vmem:[#allocation62_spill] sm:$0xff] }
 0x1a4   : > { %v6625_v13 = vpop.permute.xlu1 %1139  ;;  %v6627_v44 = vpop.permute.xlu0 %1145 }
 0x1a5   : > { %9578 = vst [vmem:[#allocation40_spill] sm:$0xff] %v6625_v13  ;;  %9579 = vst [vmem:[#allocation42_spill] sm:$0xff] %v6627_v44  ;;  %v9588_v44 = vld [vmem:[#allocation64_spill] sm:$0xff] }
 0x1a6   : > { %1383 = vrot.lane.b32.xlu1 %v9580_v8, %s5510_s23  ;;  %1389 = vrot.lane.b32.xlu0 %v9581_v10, %s5510_s23  ;;  %v9589_v8 = vld [vmem:[#allocation66_spill] sm:$0xff] }
 0x1a8   : > { %v6633_v43 = vpop.permute.xlu1 %1143  ;;  %v6635_v45 = vpop.permute.xlu0 %1149 }
 0x1a9   : > { %9582 = vst [vmem:[#allocation44_spill] sm:$0xff] %v6633_v43  ;;  %9583 = vst [vmem:[#allocation46_spill] sm:$0xff] %v6635_v45  ;;  %v9591_v45 = vld [vmem:[#allocation68_spill] sm:$0xff] }
 0x1aa   : > { %1387 = vrot.lane.b32.xlu1 %v9584_v41, %s5510_s23  ;;  %1393 = vrot.lane.b32.xlu0 %v9585_v40, %s5510_s23 }
 0x1ac   : > { %v6641_v11 = vpop.permute.xlu1 %1147  ;;  %v6643_v13 = vpop.permute.xlu0 %1153 }
 0x1ad   : > { %9586 = vst [vmem:[#allocation48_spill] sm:$0xff] %v6641_v11  ;;  %9587 = vst [vmem:[#allocation50_spill] sm:$0xff] %v6643_v13  ;;  %v9593_v13 = vld [vmem:[#allocation71_spill] sm:$0xff]  ;;  %v615_v11 = vld [vmem:[#allocation2 + $0x49] sm:$0xff] }
 0x1ae   : > { %1391 = vrot.lane.b32.xlu1 %v9588_v44, %s5510_s23  ;;  %1397 = vrot.lane.b32.xlu0 %v9589_v8, %s5510_s23  ;;  %v611_v8 = vld [vmem:[#allocation2 + $0x198] sm:$0xff] }
 0x1b0   : > { %v6649_v10 = vpop.permute.xlu1 %1151  ;;  %v6651_v43 = vpop.permute.xlu0 %1221 }
 0x1b1   : > { %9590 = vst [vmem:[#allocation52_spill] sm:$0xff] %v6649_v10 }
 0x1b2   : > { %1395 = vrot.lane.b32.xlu1 %v9591_v45, %s5510_s23  ;;  %1401 = vrot.lane.b32.xlu0 %v6261_v39, %s5510_s23  ;;  %v613_v45 = vld [vmem:[#allocation2 + $0x31] sm:$0xff] }
 0x1b4   : > { %v6657_v41 = vpop.permute.xlu1 %1155  ;;  %v6659_v40 = vpop.permute.xlu0 %1225 }
 0x1b5   : > { %9592 = vst [vmem:[#allocation54_spill] sm:$0xff] %v6657_v41 }
 0x1b6   : > { %1399 = vrot.lane.b32.xlu1 %v9593_v13, %s5510_s23  ;;  %1405 = vrot.lane.b32.xlu0 %v6269_v33, %s5510_s23  ;;  %v612_v13 = vld [vmem:[#allocation2 + $0x1a0] sm:$0xff] }
 0x1b8   : > { %v6665_v44 = vpop.permute.xlu1 %1223  ;;  %v6667_v10 = vpop.permute.xlu0 %1229 }
 0x1ba   : > { %1403 = vrot.lane.b32.xlu1 %v6279_v3, %s5510_s23  ;;  %1409 = vrot.lane.b32.xlu0 %v611_v8, %s5510_s23  ;;  %v614_v3 = vld [vmem:[#allocation2 + $0x39] sm:$0xff] }
 0x1bc   : > { %v6672_v39 = vpop.permute.xlu1 %1227  ;;  %v6674_v41 = vpop.permute.xlu0 %1233 }
 0x1be   : > { %1407 = vrot.lane.b32.xlu1 %v6285_v37, %s5510_s23  ;;  %1477 = vrot.lane.b32.xlu0 %v613_v45, %s5511_s29  ;;  %v616_v37 = vld [vmem:[#allocation2 + $0x51] sm:$0xff] }
 0x1c0   : > { %v6679_v33 = vpop.permute.xlu1 %1231  ;;  %v6681_v32 = vpop.permute.xlu0 %1237 }
 0x1c2   : > { %1411 = vrot.lane.b32.xlu1 %v612_v13, %s5510_s23  ;;  %1481 = vrot.lane.b32.xlu0 %v615_v11, %s5511_s29  ;;  %v618_v13 = vld [vmem:[#allocation2 + $0x69] sm:$0xff] }
 0x1c4   : > { %v6685_v8 = vpop.permute.xlu1 %1235  ;;  %v6687_v42 = vpop.permute.xlu0 %1241 }
 0x1c5   : > { %9594 = vst [vmem:[#allocation56_spill] sm:$0xff] %v6687_v42 }
 0x1c6   : > { %1479 = vrot.lane.b32.xlu1 %v614_v3, %s5511_s29  ;;  %1485 = vrot.lane.b32.xlu0 %v617_v20, %s5511_s29  ;;  %v620_v3 = vld [vmem:[#allocation2 + $0x81] sm:$0xff] }
 0x1c8   : > { %v6691_v45 = vpop.permute.xlu1 %1239  ;;  %v6693_v6 = vpop.permute.xlu0 %1245 }
 0x1c9   : > { %9595 = vst [vmem:[#allocation58_spill] sm:$0xff] %v6691_v45  ;;  %9596 = vst [vmem:[#allocation60_spill] sm:$0xff] %v6693_v6  ;;  %v652_v6 = vld [vmem:[#allocation2 + $0x82] sm:$0xff]  ;;  %v9666_v45 = vld [vmem:[#allocation70_spill] sm:$0xff] }
 0x1ca   : > { %1483 = vrot.lane.b32.xlu1 %v616_v37, %s5511_s29  ;;  %1489 = vrot.lane.b32.xlu0 %v619_v9, %s5511_s29  ;;  %v622_v37 = vld [vmem:[#allocation2 + $0x99] sm:$0xff] }
 0x1cc   : > { %v6697_v11 = vpop.permute.xlu1 %1243  ;;  %v6699_v30 = vpop.permute.xlu0 %1249 }
 0x1cd   : > { %9597 = vst [vmem:[#allocation62_spill] sm:$0xff] %v6697_v11  ;;  %9598 = vst [vmem:[#allocation64_spill] sm:$0xff] %v6699_v30  ;;  %v627_v30 = vld [vmem:[#allocation2 + $0xd9] sm:$0xff] }
 0x1ce   : > { %1487 = vrot.lane.b32.xlu1 %v618_v13, %s5511_s29  ;;  %1493 = vrot.lane.b32.xlu0 %v621_v38, %s5511_s29  ;;  %v624_v13 = vld [vmem:[#allocation2 + $0xb1] sm:$0xff] }
 0x1d0   : > { %v6703_v20 = vpop.permute.xlu1 %1247  ;;  %v6705_v12 = vpop.permute.xlu0 %1253 }
 0x1d1   : > { %9599 = vst [vmem:[#allocation66_spill] sm:$0xff] %v6703_v20  ;;  %9600 = vst [vmem:[#allocation68_spill] sm:$0xff] %v6705_v12  ;;  %v629_v12 = vld [vmem:[#allocation2 + $0xf1] sm:$0xff] }
 0x1d2   : > { %1491 = vrot.lane.b32.xlu1 %v620_v3, %s5511_s29  ;;  %1497 = vrot.lane.b32.xlu0 %v623_v15, %s5511_s29  ;;  %v626_v3 = vld [vmem:[#allocation2 + $0xc9] sm:$0xff] }
 0x1d3   : > { %v650_v20 = vld [vmem:[#allocation2 + $0x6a] sm:$0xff] }
 0x1d4   : > { %v6709_v9 = vpop.permute.xlu1 %1251  ;;  %v6711_v49 = vpop.permute.xlu0 %1257 }
 0x1d5   : > { %9601 = vst [vmem:[#allocation71_spill] sm:$0xff] %v6709_v9  ;;  %9602 = vst [vmem:[#allocation120_spill] sm:$0xff] %v6711_v49  ;;  %v631_v49 = vld [vmem:[#allocation2 + $0x109] sm:$0xff] }
 0x1d6   : > { %1495 = vrot.lane.b32.xlu1 %v622_v37, %s5511_s29  ;;  %1501 = vrot.lane.b32.xlu0 %v625_v7, %s5511_s29  ;;  %v628_v37 = vld [vmem:[#allocation2 + $0xe1] sm:$0xff] }
 0x1d8   : > { %v6715_v38 = vpop.permute.xlu1 %1255  ;;  %v6717_v31 = vpop.permute.xlu0 %1261 }
 0x1d9   : > { %9603 = vst [vmem:[#allocation121_spill] sm:$0xff] %v6715_v38  ;;  %9604 = vst [vmem:[#allocation122_spill] sm:$0xff] %v6717_v31  ;;  %v633_v31 = vld [vmem:[#allocation2 + $0x121] sm:$0xff] }
 0x1da   : > { %1499 = vrot.lane.b32.xlu1 %v624_v13, %s5511_s29  ;;  %1505 = vrot.lane.b32.xlu0 %v627_v30, %s5511_s29  ;;  %v630_v13 = vld [vmem:[#allocation2 + $0xf9] sm:$0xff] }
 0x1dc   : > { %v6721_v15 = vpop.permute.xlu1 %1259  ;;  %v6723_v9 = vpop.permute.xlu0 %1265 }
 0x1dd   : > { %9605 = vst [vmem:[#allocation123_spill] sm:$0xff] %v6721_v15  ;;  %9606 = vst [vmem:[#allocation124_spill] sm:$0xff] %v6723_v9  ;;  %v646_v9 = vld [vmem:[#allocation2 + $0x3a] sm:$0xff] }
 0x1de   : > { %1503 = vrot.lane.b32.xlu1 %v626_v3, %s5511_s29  ;;  %1509 = vrot.lane.b32.xlu0 %v629_v12, %s5511_s29  ;;  %v632_v3 = vld [vmem:[#allocation2 + $0x111] sm:$0xff] }
 0x1e0   : > { %v6727_v7 = vpop.permute.xlu1 %1263  ;;  %v6729_v38 = vpop.permute.xlu0 %1269 }
 0x1e1   : > { %9607 = vst [vmem:[#allocation125_spill] sm:$0xff] %v6727_v7  ;;  %9608 = vst [vmem:[#allocation126_spill] sm:$0xff] %v6729_v38  ;;  %v1968_v38 = vld [vmem:[%s9384_s1 + $0x20] sm:$0xf] }
 0x1e2   : > { %1507 = vrot.lane.b32.xlu1 %v628_v37, %s5511_s29  ;;  %1513 = vrot.lane.b32.xlu0 %v631_v49, %s5511_s29  ;;  %v635_v37 = vld [vmem:[#allocation2 + $0x139] sm:$0xff] }
 0x1e3   : > { %5223 = vmatprep.subr.msk.mxu0 %vm2066_vm3, %v1968_v38 }
 0x1e4   : > { %v6733_v30 = vpop.permute.xlu1 %1267  ;;  %v6735_v15 = vpop.permute.xlu0 %1273  ;;  %5224 = vmatpush3.msk.msra.mxu0 %vm2066_vm3, %v1968_v38  ;;  %v1965_v38 = vld [vmem:[%s9384_s1 + $0x8] sm:$0xff] }
 0x1e5   : > { %9609 = vst [vmem:[#allocation127_spill] sm:$0xff] %v6733_v30  ;;  %9610 = vst [vmem:[#allocation128_spill] sm:$0xff] %v6735_v15  ;;  %v636_v30 = vld [vmem:[#allocation2 + $0x141] sm:$0xff] }
 0x1e6   : > { %1511 = vrot.lane.b32.xlu1 %v630_v13, %s5511_s29  ;;  %1517 = vrot.lane.b32.xlu0 %v633_v31, %s5511_s29  ;;  %v1967_v31 = vld [vmem:[%s9384_s1 + $0x18] sm:$0xff]  ;;  %v634_v13 = vld [vmem:[#allocation2 + $0x129] sm:$0xff] }
 0x1e7   : > { %5225 = vmatprep.subr.mxu0 %v1967_v31 }
 0x1e8   : > { %v6739_v12 = vpop.permute.xlu1 %1271  ;;  %v6745_v49 = vpop.permute.xlu0 %1277  ;;  %5226 = vmatpush3.msra.mxu0 %v1967_v31  ;;  %v1964_v31 = vld [vmem:[%s9384_s1] sm:$0xff] }
 0x1e9   : > { %9611 = vst [vmem:[#allocation129_spill] sm:$0xff] %v6739_v12  ;;  %9612 = vst [vmem:[#allocation130_spill] sm:$0xff] %v6745_v49  ;;  %v1966_v12 = vld [vmem:[%s9384_s1 + $0x10] sm:$0xff] }
 0x1ea   : > { %1515 = vrot.lane.b32.xlu1 %v632_v3, %s5511_s29  ;;  %1521 = vrot.lane.b32.xlu0 %v635_v37, %s5511_s29  ;;  %v637_v49 = vld [vmem:[#allocation2 + $0x151] sm:$0xff] }
 0x1eb   : > { %5227 = vmatprep.subr.mxu0 %v1966_v12 }
 0x1ec   : > { %v6753_v15 = vpop.permute.xlu1 %1275  ;;  %v6758_v3 = vpop.permute.xlu0 %1281  ;;  %5228 = vmatpush3.msra.mxu0 %v1966_v12  ;;  %v638_v12 = vld [vmem:[#allocation2 + $0x159] sm:$0xff] }
 0x1ed   : > { %9613 = vst [vmem:[#allocation131_spill] sm:$0xff] %v6753_v15  ;;  %9614 = vst [vmem:[#allocation132_spill] sm:$0xff] %v6758_v3  ;;  %5229 = vmatprep.subr.mxu0 %v1965_v38  ;;  %v639_v15 = vld [vmem:[#allocation2 + $0x169] sm:$0xff] }
 0x1ee   : > { %1519 = vrot.lane.b32.xlu1 %v634_v13, %s5511_s29  ;;  %1525 = vrot.lane.b32.xlu0 %v637_v49, %s5511_s29 }
 0x1ef   : > { %5230 = vmatpush3.msra.mxu0 %v1965_v38  ;;  %v640_v38 = vld [vmem:[#allocation2 + $0x171] sm:$0xff] }
 0x1f0   : > { %v6765_v37 = vpop.permute.xlu1 %1279  ;;  %5231 = vmatprep.subr.mxu0 %v1964_v31  ;;  %v6770_v3 = vpop.permute.xlu0 %1349 }
 0x1f1   : > { %9615 = vst [vmem:[#allocation133_spill] sm:$0xff] %v6765_v37  ;;  %5232 = vmatpush3.msra.mxu0 %v1964_v31  ;;  %v648_v31 = vld [vmem:[#allocation2 + $0x52] sm:$0xff] }
 0x1f2   : > { %1523 = vrot.lane.b32.xlu1 %v636_v30, %s5511_s29  ;;  %1529 = vrot.lane.b32.xlu0 %v639_v15, %s5511_s29  ;;  %v645_v30 = vld [vmem:[#allocation2 + $0x32] sm:$0xff] }
 0x1f4   : > { %v6774_v13 = vpop.permute.xlu1 %1283  ;;  %v6776_v49 = vpop.permute.xlu0 %1353 }
 0x1f5   : > { %9616 = vst [vmem:[#allocation134_spill] sm:$0xff] %v6774_v13 }
 0x1f6   : > { %1527 = vrot.lane.b32.xlu1 %v638_v12, %s5511_s29  ;;  %1533 = vrot.lane.b32.xlu0 %v6403_v56, %s5511_s29  ;;  %v647_v12 = vld [vmem:[#allocation2 + $0x4a] sm:$0xff] }
 0x1f8   : > { %v6781_v37 = vpop.permute.xlu1 %1351  ;;  %v6783_v7 = vpop.permute.xlu0 %1357 }
 0x1fa   : > { %1531 = vrot.lane.b32.xlu1 %v640_v38, %s5511_s29  ;;  %1607 = vrot.lane.b32.xlu0 %v646_v9, %s5512_s14  ;;  %v649_v38 = vld [vmem:[#allocation2 + $0x62] sm:$0xff] }
 0x1fc   : > { %v6787_v15 = vpop.permute.xlu1 %1355  ;;  %v6789_v13 = vpop.permute.xlu0 %1361 }
 0x1fe   : > { %1605 = vrot.lane.b32.xlu1 %v645_v30, %s5512_s14  ;;  %1611 = vrot.lane.b32.xlu0 %v648_v31, %s5512_s14  ;;  %v651_v30 = vld [vmem:[#allocation2 + $0x7a] sm:$0xff] }
 0x200   : > { %v6793_v56 = vpop.permute.xlu1 %1359  ;;  %v6795_v62 = vpop.permute.xlu0 %1365 }
 0x201   : > { %9617 = vst [vmem:[#allocation135_spill] sm:$0xff] %v6795_v62 }
 0x202   : > { %1609 = vrot.lane.b32.xlu1 %v647_v12, %s5512_s14  ;;  %1615 = vrot.lane.b32.xlu0 %v650_v20, %s5512_s14  ;;  %v653_v12 = vld [vmem:[#allocation2 + $0x92] sm:$0xff] }
 0x204   : > { %v6799_v9 = vpop.permute.xlu1 %1363  ;;  %v6801_v14 = vpop.permute.xlu0 %1369 }
 0x205   : > { %9618 = vst [vmem:[#allocation136_spill] sm:$0xff] %v6801_v14  ;;  %v658_v14 = vld [vmem:[#allocation2 + $0xca] sm:$0xff] }
 0x206   : > { %1613 = vrot.lane.b32.xlu1 %v649_v38, %s5512_s14  ;;  %1619 = vrot.lane.b32.xlu0 %v652_v6, %s5512_s14  ;;  %v655_v38 = vld [vmem:[#allocation2 + $0xaa] sm:$0xff] }
 0x208   : > { %v6805_v31 = vpop.permute.xlu1 %1367  ;;  %v6807_v5 = vpop.permute.xlu0 %1373 }
 0x209   : > { %9619 = vst [vmem:[#allocation137_spill] sm:$0xff] %v6805_v31  ;;  %9620 = vst [vmem:[#allocation138_spill] sm:$0xff] %v6807_v5  ;;  %v660_v5 = vld [vmem:[#allocation2 + $0xe2] sm:$0xff]  ;;  %v9663_v31 = vld [vmem:[#allocation10_spill] sm:$0xff] }
 0x20a   : > { %1617 = vrot.lane.b32.xlu1 %v651_v30, %s5512_s14  ;;  %1623 = vrot.lane.b32.xlu0 %v654_v47, %s5512_s14  ;;  %v657_v30 = vld [vmem:[#allocation2 + $0xc2] sm:$0xff] }
 0x20c   : > { %v6811_v20 = vpop.permute.xlu1 %1371  ;;  %v6813_v27 = vpop.permute.xlu0 %1377 }
 0x20d   : > { %9621 = vst [vmem:[#allocation139_spill] sm:$0xff] %v6811_v20  ;;  %9622 = vst [vmem:[#allocation140_spill] sm:$0xff] %v6813_v27  ;;  %v662_v27 = vld [vmem:[#allocation2 + $0xfa] sm:$0xff] }
 0x20e   : > { %1621 = vrot.lane.b32.xlu1 %v653_v12, %s5512_s14  ;;  %1627 = vrot.lane.b32.xlu0 %v656_v2, %s5512_s14  ;;  %v659_v12 = vld [vmem:[#allocation2 + $0xda] sm:$0xff] }
 0x210   : > { %v6817_v6 = vpop.permute.xlu1 %1375  ;;  %v6819_v11 = vpop.permute.xlu0 %1381 }
 0x211   : > { %9623 = vst [vmem:[#allocation141_spill] sm:$0xff] %v6817_v6  ;;  %9624 = vst [vmem:[#allocation142_spill] sm:$0xff] %v6819_v11  ;;  %v664_v11 = vld [vmem:[#allocation2 + $0x112] sm:$0xff] }
 0x212   : > { %1625 = vrot.lane.b32.xlu1 %v655_v38, %s5512_s14  ;;  %1631 = vrot.lane.b32.xlu0 %v658_v14, %s5512_s14  ;;  %v661_v38 = vld [vmem:[#allocation2 + $0xf2] sm:$0xff] }
 0x214   : > { %v6823_v47 = vpop.permute.xlu1 %1379  ;;  %v6825_v20 = vpop.permute.xlu0 %1385 }
 0x215   : > { %9625 = vst [vmem:[#allocation143_spill] sm:$0xff] %v6823_v47  ;;  %9626 = vst [vmem:[#allocation144_spill] sm:$0xff] %v6825_v20  ;;  %v666_v20 = vld [vmem:[#allocation2 + $0x12a] sm:$0xff] }
 0x216   : > { %1629 = vrot.lane.b32.xlu1 %v657_v30, %s5512_s14  ;;  %1635 = vrot.lane.b32.xlu0 %v660_v5, %s5512_s14  ;;  %v663_v30 = vld [vmem:[#allocation2 + $0x10a] sm:$0xff] }
 0x218   : > { %v6829_v2 = vpop.permute.xlu1 %1383  ;;  %v6831_v6 = vpop.permute.xlu0 %1389 }
 0x219   : > { %9627 = vst [vmem:[#allocation145_spill] sm:$0xff] %v6829_v2  ;;  %9628 = vst [vmem:[#allocation146_spill] sm:$0xff] %v6831_v6  ;;  %v668_v6 = vld [vmem:[#allocation2 + $0x142] sm:$0xff] }
 0x21a   : > { %1633 = vrot.lane.b32.xlu1 %v659_v12, %s5512_s14  ;;  %1639 = vrot.lane.b32.xlu0 %v662_v27, %s5512_s14  ;;  %v665_v12 = vld [vmem:[#allocation2 + $0x122] sm:$0xff] }
 0x21c   : > { %v6835_v14 = vpop.permute.xlu1 %1387  ;;  %v6837_v47 = vpop.permute.xlu0 %1393 }
 0x21d   : > { %9629 = vst [vmem:[#allocation147_spill] sm:$0xff] %v6835_v14  ;;  %9630 = vst [vmem:[#allocation148_spill] sm:$0xff] %v6837_v47  ;;  %v670_v47 = vld [vmem:[#allocation2 + $0x15a] sm:$0xff] }
 0x21e   : > { %1637 = vrot.lane.b32.xlu1 %v661_v38, %s5512_s14  ;;  %1643 = vrot.lane.b32.xlu0 %v664_v11, %s5512_s14  ;;  %v667_v38 = vld [vmem:[#allocation2 + $0x13a] sm:$0xff] }
 0x220   : > { %v6841_v5 = vpop.permute.xlu1 %1391  ;;  %v6843_v2 = vpop.permute.xlu0 %1397 }
 0x221   : > { %9631 = vst [vmem:[#allocation149_spill] sm:$0xff] %v6841_v5  ;;  %9632 = vst [vmem:[#allocation150_spill] sm:$0xff] %v6843_v2  ;;  %v672_v2 = vld [vmem:[#allocation2 + $0x172] sm:$0xff] }
 0x222   : > { %1641 = vrot.lane.b32.xlu1 %v663_v30, %s5512_s14  ;;  %1647 = vrot.lane.b32.xlu0 %v666_v20, %s5512_s14  ;;  %v669_v30 = vld [vmem:[#allocation2 + $0x152] sm:$0xff] }
 0x224   : > { %v6847_v27 = vpop.permute.xlu1 %1395  ;;  %v6849_v14 = vpop.permute.xlu0 %1401 }
 0x225   : > { %9633 = vst [vmem:[#allocation151_spill] sm:$0xff] %v6847_v27  ;;  %9634 = vst [vmem:[#allocation152_spill] sm:$0xff] %v6849_v14 }
 0x226   : > { %1645 = vrot.lane.b32.xlu1 %v665_v12, %s5512_s14  ;;  %1651 = vrot.lane.b32.xlu0 %v668_v6, %s5512_s14  ;;  %v671_v12 = vld [vmem:[#allocation2 + $0x16a] sm:$0xff] }
 0x228   : > { %v6853_v11 = vpop.permute.xlu1 %1399  ;;  %v6855_v5 = vpop.permute.xlu0 %1405 }
 0x229   : > { %9635 = vst [vmem:[#allocation153_spill] sm:$0xff] %v6853_v11  ;;  %9636 = vst [vmem:[#allocation154_spill] sm:$0xff] %v6855_v5 }
 0x22a   : > { %1649 = vrot.lane.b32.xlu1 %v667_v38, %s5512_s14  ;;  %1655 = vrot.lane.b32.xlu0 %v670_v47, %s5512_s14  ;;  %v643_v38 = vld [vmem:[#allocation2 + $0x199] sm:$0xff] }
 0x22c   : > { %v6859_v20 = vpop.permute.xlu1 %1403  ;;  %v6861_v27 = vpop.permute.xlu0 %1409 }
 0x22d   : > { %9637 = vst [vmem:[#allocation155_spill] sm:$0xff] %v6859_v20  ;;  %9638 = vst [vmem:[#allocation156_spill] sm:$0xff] %v6861_v27 }
 0x22e   : > { %1653 = vrot.lane.b32.xlu1 %v669_v30, %s5512_s14  ;;  %1659 = vrot.lane.b32.xlu0 %v672_v2, %s5512_s14  ;;  %v675_v30 = vld [vmem:[#allocation2 + $0x19a] sm:$0xff] }
 0x230   : > { %v6865_v6 = vpop.permute.xlu1 %1407  ;;  %v6867_v14 = vpop.permute.xlu0 %1477 }
 0x231   : > { %9639 = vst [vmem:[#allocation157_spill] sm:$0xff] %v6865_v6 }
 0x232   : > { %1657 = vrot.lane.b32.xlu1 %v671_v12, %s5512_s14  ;;  %1661 = vrot.lane.b32.xlu0 %v6535_v21, %s5512_s14  ;;  %v644_v12 = vld [vmem:[#allocation2 + $0x1a1] sm:$0xff] }
 0x234   : > { %v6872_v47 = vpop.permute.xlu1 %1411  ;;  %v6874_v5 = vpop.permute.xlu0 %1481 }
 0x235   : > { %9640 = vst [vmem:[#allocation158_spill] sm:$0xff] %v6872_v47 }
 0x236   : > { %1535 = vrot.lane.b32.xlu1 %v6417_v60, %s5511_s29  ;;  %1537 = vrot.lane.b32.xlu0 %v643_v38, %s5511_s29  ;;  %v676_v60 = vld [vmem:[#allocation2 + $0x1a2] sm:$0xff] }
 0x238   : > { %v6879_v2 = vpop.permute.xlu1 %1479  ;;  %v6881_v27 = vpop.permute.xlu0 %1485 }
 0x23a   : > { %1663 = vrot.lane.b32.xlu1 %v6549_v28, %s5512_s14  ;;  %1665 = vrot.lane.b32.xlu0 %v675_v30, %s5512_s14 }
 0x23c   : > { %v6886_v21 = vpop.permute.xlu1 %1483  ;;  %v6888_v47 = vpop.permute.xlu0 %1489 }
 0x23e   : > { %1539 = vrot.lane.b32.xlu1 %v644_v12, %s5511_s29 }
 0x240   : > { %v6891_v6 = vpop.permute.xlu1 %1487  ;;  %v6893_v38 = vpop.permute.xlu0 %1493 }
 0x241   : > { %9641 = vst [vmem:[#allocation159_spill] sm:$0xff] %v6893_v38 }
 0x242   : > { %1667 = vrot.lane.b32.xlu1 %v676_v60, %s5512_s14 }
 0x244   : > { %v6896_v20 = vpop.permute.xlu1 %1491  ;;  %v6898_v11 = vpop.permute.xlu0 %1497 }
 0x245   : > { %9642 = vst [vmem:[#allocation160_spill] sm:$0xff] %v6898_v11 }
 0x248   : > { %v6900_v28 = vpop.permute.xlu1 %1495  ;;  %v6902_v30 = vpop.permute.xlu0 %1501 }
 0x249   : > { %9643 = vst [vmem:[#allocation161_spill] sm:$0xff] %v6900_v28  ;;  %9644 = vst [vmem:[#allocation162_spill] sm:$0xff] %v6902_v30 }
 0x24c   : > { %v6904_v58 = vpop.permute.xlu1 %1499  ;;  %v6906_v42 = vpop.permute.xlu0 %1505 }
 0x24d   : > { %9645 = vst [vmem:[#allocation163_spill] sm:$0xff] %v6904_v58  ;;  %9646 = vst [vmem:[#allocation164_spill] sm:$0xff] %v6906_v42 }
 0x250   : > { %v6908_v12 = vpop.permute.xlu1 %1503  ;;  %v6910_v34 = vpop.permute.xlu0 %1509 }
 0x251   : > { %9647 = vst [vmem:[#allocation165_spill] sm:$0xff] %v6908_v12  ;;  %9648 = vst [vmem:[#allocation166_spill] sm:$0xff] %v6910_v34  ;;  %v388_v34 = vld [vmem:[#allocation2] sm:$0xff] }
 0x254   : > { %v6912_v17 = vpop.permute.xlu1 %1507  ;;  %v6914_v4 = vpop.permute.xlu0 %1513 }
 0x255   : > { %9649 = vst [vmem:[#allocation167_spill] sm:$0xff] %v6912_v17  ;;  %9650 = vst [vmem:[#allocation168_spill] sm:$0xff] %v6914_v4  ;;  %v389_v17 = vld [vmem:[#allocation2 + $0x8] sm:$0xff] }
 0x258   : > { %v6916_v60 = vpop.permute.xlu1 %1511  ;;  %v6918_v38 = vpop.permute.xlu0 %1517 }
 0x259   : > { %9651 = vst [vmem:[#allocation169_spill] sm:$0xff] %v6916_v60  ;;  %9652 = vst [vmem:[#allocation170_spill] sm:$0xff] %v6918_v38  ;;  %v9660_v60 = vld [vmem:[#allocation7_spill] sm:$0xff] }
 0x25a   : > { %v1701_v38 = vsel %vm309_vm0, %v388_v34, %v9660_v60 }
 0x25c   : > { %v6920_v11 = vpop.permute.xlu1 %1515  ;;  %v6922_v28 = vpop.permute.xlu0 %1521 }
 0x25d   : > { %9653 = vst [vmem:[#allocation171_spill] sm:$0xff] %v6920_v11  ;;  %9654 = vst [vmem:[#allocation172_spill] sm:$0xff] %v6922_v28  ;;  %v9662_v28 = vld [vmem:[#allocation8_spill] sm:$0xff] }
 0x260   : > { %v6924_v30 = vpop.permute.xlu1 %1519  ;;  %v6926_v58 = vpop.permute.xlu0 %1525 }
 0x261   : > { %9655 = vst [vmem:[#allocation173_spill] sm:$0xff] %v6924_v30  ;;  %9656 = vst [vmem:[#allocation174_spill] sm:$0xff] %v6926_v58  ;;  %v1702_v30 = vsel %vm309_vm0, %v389_v17, %v9662_v28  ;;  %v5395_v58 = vld [vmem:[#allocation2 + $0x18] sm:$0xff]  ;;  %v5397_v28 = vld [vmem:[#allocation2 + $0x20] sm:$0xff] }
 0x262   : > { %v1735_v34 = vsel %vm1733_vm4, %v1702_v30, %v9666_v45  ;;  %v9669_v30 = vld [vmem:[#allocation69_spill] sm:$0xff] }
 0x264   : > { %v6928_v42 = vpop.permute.xlu1 %1523  ;;  %v6930_v12 = vpop.permute.xlu0 %1529 }
 0x265   : > { %9657 = vst [vmem:[#allocation175_spill] sm:$0xff] %v6928_v42  ;;  %9658 = vst [vmem:[#allocation176_spill] sm:$0xff] %v6930_v12  ;;  %v1703_v42 = vsel %vm309_vm0, %v5395_v58, %v9663_v31  ;;  %v9664_v12 = vld [vmem:[#allocation65_spill] sm:$0xff]  ;;  %v1768_v31 = vsel %vm1766_vm5, %v1735_v34, %v6401_v55 }
 0x266   : > { %v1734_v51 = vsel %vm1733_vm4, %v1701_v38, %v9664_v12  ;;  %v9670_v34 = vld [vmem:[#allocation73_spill] sm:$0xff] }
 0x267   : > { %v1767_v60 = vsel %vm1766_vm5, %v1734_v51, %v6387_v52  ;;  %v1736_v51 = vsel %vm1733_vm4, %v1703_v42, %v9669_v30  ;;  %v1801_v52 = vsel %vm1799_vm6, %v1768_v31, %v6533_v29  ;;  %v9672_v30 = vld [vmem:[#allocation18_spill] sm:$0xff] }
 0x268   : > { %v6932_v4 = vpop.permute.xlu1 %1527  ;;  %v6936_v11 = vpop.permute.xlu0 %1533  ;;  %v1800_v38 = vsel %vm1799_vm6, %v1767_v60, %v6519_v22  ;;  %v1834_v55 = vsel %vm1832_vm7, %v1801_v52, %v6665_v44  ;;  %v1769_v42 = vsel %vm1766_vm5, %v1736_v51, %v6395_v54  ;;  %v9671_v54 = vld [vmem:[#allocation17_spill] sm:$0xff]  ;;  %v9673_v51 = vld [vmem:[#allocation72_spill] sm:$0xff] }
 0x269   : > { %9659 = vst [vmem:[#allocation177_spill] sm:$0xff] %v6932_v4  ;;  %9661 = vst [vmem:[#allocation7_spill] sm:$0xff] %v6936_v11  ;;  %v9665_v4 = vld [vmem:[#allocation12_spill] sm:$0xff]  ;;  %v9667_v11 = vld [vmem:[#allocation14_spill] sm:$0xff]  ;;  %v1867_v29 = vsel %vm1865_vm8, %v1834_v55, %v6781_v37 }
 0x26a   : > { %v1705_v62 = vsel %vm309_vm0, %v5396_v26, %v9665_v4  ;;  %v1704_v58 = vsel %vm309_vm0, %v5397_v28, %v9667_v11  ;;  %v5398_v26 = vld [vmem:[#allocation2 + $0x48] sm:$0xff]  ;;  %v9668_v4 = vld [vmem:[#allocation15_spill] sm:$0xff]  ;;  %v1833_v11 = vsel %vm1832_vm7, %v1800_v38, %v6651_v43  ;;  %v1900_v31 = vsel %vm1898_vm9, %v1867_v29, %v6879_v2  ;;  %v5399_v38 = vld [vmem:[#allocation2 + $0x38] sm:$0xff] }
 0x26b   : > { %v1707_v45 = vsel %vm309_vm0, %v5398_v26, %v9668_v4  ;;  %v1866_v22 = vsel %vm1865_vm8, %v1833_v11, %v6770_v3  ;;  %v1737_v60 = vsel %vm1733_vm4, %v1704_v58, %v9670_v34  ;;  %v1802_v3 = vsel %vm1799_vm6, %v1769_v42, %v6527_v24  ;;  %v5400_v24 = vld [vmem:[#allocation2 + $0x60] sm:$0xff]  ;;  %v5401_v29 = vld [vmem:[#allocation2 + $0x50] sm:$0xff] }
 0x26c   : > { %v6950_v17 = vpop.permute.xlu1 %1531  ;;  %v1608_v12 = vpop.permute.xlu0 %1607  ;;  %v1899_v43 = vsel %vm1898_vm9, %v1866_v22, %v6867_v14  ;;  %v1770_v44 = vsel %vm1766_vm5, %v1737_v60, %v6411_v57  ;;  %v1706_v26 = vsel %vm309_vm0, %v5399_v38, %v9671_v54  ;;  %v1835_v14 = vsel %vm1832_vm7, %v1802_v3, %v6659_v40  ;;  %v9674_v40 = vld [vmem:[#allocation75_spill] sm:$0xff]  ;;  %v9677_v3 = vld [vmem:[#allocation74_spill] sm:$0xff] }
 0x26d   : > { %v1803_v37 = vsel %vm1799_vm6, %v1770_v44, %v6543_v35  ;;  %v1933_v57 = vsel %vm1931_vm10, %v1900_v31, %v1608_v12  ;;  %v1709_v2 = vsel %vm309_vm0, %v5400_v24, %v9672_v30  ;;  %v1738_v52 = vsel %vm1733_vm4, %v1705_v62, %v9673_v51  ;;  %v9676_v44 = vld [vmem:[#allocation21_spill] sm:$0xff]  ;;  %v9680_v30 = vld [vmem:[#allocation76_spill] sm:$0xff] }
 0x26e   : > { %v1836_v11 = vsel %vm1832_vm7, %v1803_v37, %v6672_v39  ;;  %v1868_v35 = vsel %vm1865_vm8, %v1835_v14, %v6776_v49  ;;  %v1739_v12 = vsel %vm1733_vm4, %v1706_v26, %v9674_v40  ;;  %v1771_v55 = vsel %vm1766_vm5, %v1738_v52, %v6405_v50  ;;  %v9675_v50 = vld [vmem:[#allocation20_spill] sm:$0xff]  ;;  %v9679_v24 = vld [vmem:[#allocation25_spill] sm:$0xff] }
 0x26f   : > { %v1869_v22 = vsel %vm1865_vm8, %v1836_v11, %v6787_v15  ;;  %v1901_v62 = vsel %vm1898_vm9, %v1868_v35, %v6874_v5  ;;  %v1772_v39 = vsel %vm1766_vm5, %v1739_v12, %v6421_v61  ;;  %v1804_v49 = vsel %vm1799_vm6, %v1771_v55, %v6537_v18  ;;  %v5402_v18 = vld [vmem:[#allocation2 + $0x78] sm:$0xff]  ;;  %v5403_v14 = vld [vmem:[#allocation2 + $0x68] sm:$0xff]  ;;  %v5405_v55 = vld [vmem:[#allocation2 + $0x80] sm:$0xff] }
 0x270   : > { %v1606_v28 = vpop.permute.xlu1 %1605  ;;  %v1612_v4 = vpop.permute.xlu0 %1611  ;;  %v1902_v60 = vsel %vm1898_vm9, %v1869_v22, %v6886_v21  ;;  %v1805_v15 = vsel %vm1799_vm6, %v1772_v39, %v6553_v16  ;;  %v1837_v5 = vsel %vm1832_vm7, %v1804_v49, %v6667_v10  ;;  %v1711_v21 = vsel %vm309_vm0, %v5402_v18, %v9676_v44  ;;  %v9683_v49 = vld [vmem:[#allocation58_spill] sm:$0xff]  ;;  %v9689_v18 = vld [vmem:[#allocation100_spill] sm:$0xff] }
 0x271   : > { %v1932_v58 = vsel %vm1931_vm10, %v1899_v43, %v1606_v28  ;;  %v1708_v43 = vsel %vm309_vm0, %v5401_v29, %v9675_v50  ;;  %v1935_v61 = vsel %vm1931_vm10, %v1902_v60, %v1612_v4  ;;  %v1740_v31 = vsel %vm1733_vm4, %v1707_v45, %v9677_v3  ;;  %v9686_v50 = vld [vmem:[#allocation98_spill] sm:$0xff] }
 0x272   : > { %5233 = vmatprep.mubr.msk.f32.mxu0 %vm1969_vm11, %v1932_v58  ;;  %v1838_v58 = vsel %vm1832_vm7, %v1805_v15, %v6679_v33  ;;  %v1870_v16 = vsel %vm1865_vm8, %v1837_v5, %v6783_v7  ;;  %v1741_v10 = vsel %vm1733_vm4, %v1708_v43, %v6297_v0  ;;  %v1773_v38 = vsel %vm1766_vm5, %v1740_v31, %v6413_v59  ;;  %v9678_v59 = vld [vmem:[#allocation23_spill] sm:$0xff]  ;;  %v9687_v15 = vld [vmem:[#allocation137_spill] sm:$0xff] }
 0x273   : > { %5234 = vmatmul.mubr.msk.f32.vlgmr.msra.gmra.mxu0 %vm1969_vm11, %v1933_v57  ;;  %v1871_v54 = vsel %vm1865_vm8, %v1838_v58, %v6793_v56  ;;  %v1903_v45 = vsel %vm1898_vm9, %v1870_v16, %v6881_v27  ;;  %v1774_v33 = vsel %vm1766_vm5, %v1741_v10, %v6429_v63  ;;  %v1806_v7 = vsel %vm1799_vm6, %v1773_v38, %v6545_v23  ;;  %v5404_v23 = vld [vmem:[#allocation2 + $0x90] sm:$0xff]  ;;  %v5407_v10 = vld [vmem:[#allocation2 + $0x98] sm:$0xff]  ;;  %v9692_v38 = vld [vmem:[#allocation31_spill] sm:$0xff] }
 0x274   : > { %v1610_v34 = vpop.permute.xlu1 %1609  ;;  %v1616_v28 = vpop.permute.xlu0 %1615  ;;  %v1904_v37 = vsel %vm1898_vm9, %v1871_v54, %v6891_v6  ;;  %v1710_v57 = vsel %vm309_vm0, %v5403_v14, %v9678_v59  ;;  %v1807_v56 = vsel %vm1799_vm6, %v1774_v33, %v6561_v46  ;;  %v1839_v27 = vsel %vm1832_vm7, %v1806_v7, %v6674_v41  ;;  %v9691_v31 = vld [vmem:[#allocation161_spill] sm:$0xff]  ;;  %v9694_v33 = vld [vmem:[#allocation56_spill] sm:$0xff]  ;;  %v5408_v14 = vld [vmem:[#allocation2 + $0xc0] sm:$0xff] }
 0x275   : > { %v1934_v42 = vsel %vm1931_vm10, %v1901_v62, %v1610_v34  ;;  %v1937_v63 = vsel %vm1931_vm10, %v1904_v37, %v1616_v28  ;;  %v1713_v6 = vsel %vm309_vm0, %v5404_v23, %v9679_v24  ;;  %v1742_v51 = vsel %vm1733_vm4, %v1709_v2, %v9680_v30  ;;  %v9682_v34 = vld [vmem:[#allocation29_spill] sm:$0xff]  ;;  %v9698_v23 = vld [vmem:[#allocation136_spill] sm:$0xff] }
 0x276   : > { %5236 = vmatprep.mubr.msk.f32.mxu0 %vm1969_vm11, %v1934_v42  ;;  %v1840_v52 = vsel %vm1832_vm7, %v1807_v56, %v6685_v8  ;;  %v1872_v46 = vsel %vm1865_vm8, %v1839_v27, %v6789_v13  ;;  %v1743_v41 = vsel %vm1733_vm4, %v1710_v57, %v6305_v25  ;;  %v1775_v11 = vsel %vm1766_vm5, %v1742_v51, %v6423_v53  ;;  %v9681_v53 = vld [vmem:[#allocation27_spill] sm:$0xff]  ;;  %v9695_v59 = vld [vmem:[#allocation33_spill] sm:$0xff]  ;;  %v9699_v30 = vld [vmem:[#allocation80_spill] sm:$0xff] }
 0x277   : > { %5237 = vmatmul.mubr.msk.f32.gmra.mxu0 %vm1969_vm11, %v1935_v61  ;;  %v1873_v35 = vsel %vm1865_vm8, %v1840_v52, %v6799_v9  ;;  %v1905_v2 = vsel %vm1898_vm9, %v1872_v46, %v6888_v47  ;;  %v1776_v8 = vsel %vm1766_vm5, %v1743_v41, %v6437_v1  ;;  %v1808_v13 = vsel %vm1799_vm6, %v1775_v11, %v6555_v48  ;;  %v5406_v48 = vld [vmem:[#allocation2 + $0xa8] sm:$0xff]  ;;  %v9684_v42 = vld [vmem:[#allocation135_spill] sm:$0xff]  ;;  %v9696_v56 = vld [vmem:[#allocation77_spill] sm:$0xff] }
 0x278   : > { %v1614_v26 = vpop.permute.xlu1 %1613  ;;  %v1620_v4 = vpop.permute.xlu0 %1619  ;;  %v1906_v12 = vsel %vm1898_vm9, %v1873_v35, %v6896_v20  ;;  %v1712_v22 = vsel %vm309_vm0, %v5405_v55, %v9681_v53  ;;  %v1809_v9 = vsel %vm1799_vm6, %v1776_v8, %v6569_v19  ;;  %v1841_v47 = vsel %vm1832_vm7, %v1808_v13, %v6681_v32  ;;  %v9685_v32 = vld [vmem:[#allocation78_spill] sm:$0xff]  ;;  %v9688_v61 = vld [vmem:[#allocation159_spill] sm:$0xff]  ;;  %v9702_v35 = vld [vmem:[#allocation160_spill] sm:$0xff] }
 0x279   : > { %v1936_v0 = vsel %vm1931_vm10, %v1903_v45, %v1614_v26  ;;  %v1939_v1 = vsel %vm1931_vm10, %v1906_v12, %v1620_v4  ;;  %v1715_v20 = vsel %vm309_vm0, %v5406_v48, %v9682_v34  ;;  %v1744_v39 = vsel %vm1733_vm4, %v1711_v21, %v6299_v36  ;;  %v9690_v21 = vld [vmem:[#allocation9_spill] sm:$0xff]  ;;  %v9700_v52 = vld [vmem:[#allocation99_spill] sm:$0xff]  ;;  %v9708_v48 = vld [vmem:[#allocation60_spill] sm:$0xff] }
 0x27a   : > { %5239 = vmatprep.mubr.msk.f32.mxu0 %vm1969_vm11, %v1936_v0  ;;  %v1842_v60 = vsel %vm1832_vm7, %v1809_v9, %v9683_v49  ;;  %v1874_v19 = vsel %vm1865_vm8, %v1841_v47, %v9684_v42  ;;  %v1745_v29 = vsel %vm1733_vm4, %v1712_v22, %v9685_v32  ;;  %v1777_v43 = vsel %vm1766_vm5, %v1744_v39, %v9686_v50  ;;  %v9693_v45 = vld [vmem:[#allocation13_spill] sm:$0xff]  ;;  %v9701_v41 = vld [vmem:[#allocation139_spill] sm:$0xff]  ;;  %v9711_v50 = vld [vmem:[#allocation66_spill] sm:$0xff] }
 0x27b   : > { %5240 = vmatmul.mubr.msk.f32.gmra.mxu0 %vm1969_vm11, %v1937_v63  ;;  %v1875_v5 = vsel %vm1865_vm8, %v1842_v60, %v9687_v15  ;;  %v1907_v36 = vsel %vm1898_vm9, %v1874_v19, %v9688_v61  ;;  %v1778_v44 = vsel %vm1766_vm5, %v1745_v29, %v9689_v18  ;;  %v1810_v3 = vsel %vm1799_vm6, %v1777_v43, %v9690_v21  ;;  %v9697_v63 = vld [vmem:[#allocation62_spill] sm:$0xff]  ;;  %v9704_v13 = vld [vmem:[#allocation11_spill] sm:$0xff]  ;;  %v5409_v22 = vld [vmem:[#allocation2 + $0xb0] sm:$0xff] }
 0x27c   : > { %v1618_v40 = vpop.permute.xlu1 %1617  ;;  %v1624_v62 = vpop.permute.xlu0 %1623  ;;  %v1908_v58 = vsel %vm1898_vm9, %v1875_v5, %v9691_v31  ;;  %v1714_v54 = vsel %vm309_vm0, %v5407_v10, %v9692_v38  ;;  %v1811_v26 = vsel %vm1799_vm6, %v1778_v44, %v9693_v45  ;;  %v1843_v7 = vsel %vm1832_vm7, %v1810_v3, %v9694_v33  ;;  %v9706_v9 = vld [vmem:[#allocation35_spill] sm:$0xff]  ;;  %v5410_v60 = vld [vmem:[#allocation2 + $0xd8] sm:$0xff]  ;;  %v9709_v42 = vld [vmem:[#allocation37_spill] sm:$0xff] }
 0x27d   : > { %v1938_v25 = vsel %vm1931_vm10, %v1905_v2, %v1618_v40  ;;  %v1941_v37 = vsel %vm1931_vm10, %v1908_v58, %v1624_v62  ;;  %v1717_v57 = vsel %vm309_vm0, %v5408_v14, %v9695_v59  ;;  %v1746_v27 = vsel %vm1733_vm4, %v1713_v6, %v9696_v56  ;;  %v9703_v40 = vld [vmem:[#allocation102_spill] sm:$0xff]  ;;  %v9710_v32 = vld [vmem:[#allocation79_spill] sm:$0xff]  ;;  %v9715_v44 = vld [vmem:[#allocation141_spill] sm:$0xff] }
 0x27e   : > { %5242 = vmatprep.mubr.msk.f32.mxu0 %vm1969_vm11, %v1938_v25  ;;  %v1844_v4 = vsel %vm1832_vm7, %v1811_v26, %v9697_v63  ;;  %v1876_v24 = vsel %vm1865_vm8, %v1843_v7, %v9698_v23  ;;  %v1747_v51 = vsel %vm1733_vm4, %v1714_v54, %v9699_v30  ;;  %v1779_v46 = vsel %vm1766_vm5, %v1746_v27, %v9700_v52  ;;  %v9705_v25 = vld [vmem:[#allocation163_spill] sm:$0xff]  ;;  %v9712_v15 = vld [vmem:[#allocation138_spill] sm:$0xff]  ;;  %v9717_v58 = vld [vmem:[#allocation104_spill] sm:$0xff] }
 0x27f   : > { %5243 = vmatmul.mubr.msk.f32.gmra.mxu0 %vm1969_vm11, %v1939_v1  ;;  %v1877_v11 = vsel %vm1865_vm8, %v1844_v4, %v9701_v41  ;;  %v1909_v6 = vsel %vm1898_vm9, %v1876_v24, %v9702_v35  ;;  %v1780_v8 = vsel %vm1766_vm5, %v1747_v51, %v9703_v40  ;;  %v1812_v12 = vsel %vm1799_vm6, %v1779_v46, %v9704_v13  ;;  %v9707_v1 = vld [vmem:[#allocation19_spill] sm:$0xff]  ;;  %v9713_v61 = vld [vmem:[#allocation82_spill] sm:$0xff]  ;;  %v9718_v10 = vld [vmem:[#allocation16_spill] sm:$0xff] }
 0x280   : > { %v1622_v28 = vpop.permute.xlu1 %1621  ;;  %v1628_v0 = vpop.permute.xlu0 %1627  ;;  %v1910_v55 = vsel %vm1898_vm9, %v1877_v11, %v9705_v25  ;;  %v1716_v47 = vsel %vm309_vm0, %v5409_v22, %v9706_v9  ;;  %v1813_v62 = vsel %vm1799_vm6, %v1780_v8, %v9707_v1  ;;  %v1845_v34 = vsel %vm1832_vm7, %v1812_v12, %v9708_v48  ;;  %v9716_v3 = vld [vmem:[#allocation162_spill] sm:$0xff]  ;;  %v9719_v54 = vld [vmem:[#allocation165_spill] sm:$0xff]  ;;  %v5411_v33 = vld [vmem:[#allocation2 + $0xc8] sm:$0xff] }
 0x281   : > { %v1940_v16 = vsel %vm1931_vm10, %v1907_v36, %v1622_v28  ;;  %v1943_v39 = vsel %vm1931_vm10, %v1910_v55, %v1628_v0  ;;  %v1719_v19 = vsel %vm309_vm0, %v5410_v60, %v9709_v42  ;;  %v1748_v29 = vsel %vm1733_vm4, %v1715_v20, %v9710_v32  ;;  %v9714_v28 = vld [vmem:[#allocation101_spill] sm:$0xff]  ;;  %v9720_v7 = vld [vmem:[#allocation39_spill] sm:$0xff]  ;;  %v9721_v0 = vld [vmem:[#allocation24_spill] sm:$0xff] }
 0x282   : > { %5245 = vmatprep.mubr.msk.f32.mxu0 %vm1969_vm11, %v1940_v16  ;;  %v1846_v43 = vsel %vm1832_vm7, %v1813_v62, %v9711_v50  ;;  %v1878_v5 = vsel %vm1865_vm8, %v1845_v34, %v9712_v15  ;;  %v1749_v36 = vsel %vm1733_vm4, %v1716_v47, %v9713_v61  ;;  %v1781_v18 = vsel %vm1766_vm5, %v1748_v29, %v9714_v28  ;;  %v9722_v59 = vld [vmem:[#allocation64_spill] sm:$0xff]  ;;  %v5412_v4 = vld [vmem:[#allocation2 + $0xf0] sm:$0xff]  ;;  %v9725_v52 = vld [vmem:[#allocation71_spill] sm:$0xff] }
 0x283   : > { %5246 = vmatmul.mubr.msk.f32.gmra.mxu0 %vm1969_vm11, %v1941_v37  ;;  %v1879_v21 = vsel %vm1865_vm8, %v1846_v43, %v9715_v44  ;;  %v1911_v20 = vsel %vm1898_vm9, %v1878_v5, %v9716_v3  ;;  %v1782_v16 = vsel %vm1766_vm5, %v1749_v36, %v9717_v58  ;;  %v1814_v38 = vsel %vm1799_vm6, %v1781_v18, %v9718_v10  ;;  %v9723_v23 = vld [vmem:[#allocation41_spill] sm:$0xff]  ;;  %v9726_v41 = vld [vmem:[#allocation140_spill] sm:$0xff]  ;;  %v9729_v8 = vld [vmem:[#allocation143_spill] sm:$0xff] }
 0x284   : > { %v1626_v2 = vpop.permute.xlu1 %1625  ;;  %v1632_v49 = vpop.permute.xlu0 %1631  ;;  %v1912_v45 = vsel %vm1898_vm9, %v1879_v21, %v9719_v54  ;;  %v1718_v37 = vsel %vm309_vm0, %v5411_v33, %v9720_v7  ;;  %v1815_v14 = vsel %vm1799_vm6, %v1782_v16, %v9721_v0  ;;  %v1847_v56 = vsel %vm1832_vm7, %v1814_v38, %v9722_v59  ;;  %v9724_v30 = vld [vmem:[#allocation81_spill] sm:$0xff]  ;;  %v9727_v35 = vld [vmem:[#allocation84_spill] sm:$0xff]  ;;  %v9731_v55 = vld [vmem:[#allocation106_spill] sm:$0xff] }
 0x285   : > { %v1942_v53 = vsel %vm1931_vm10, %v1909_v6, %v1626_v2  ;;  %v1945_v27 = vsel %vm1931_vm10, %v1912_v45, %v1632_v49  ;;  %v1721_v24 = vsel %vm309_vm0, %v5412_v4, %v9723_v23  ;;  %v1750_v51 = vsel %vm1733_vm4, %v1717_v57, %v9724_v30  ;;  %v9728_v2 = vld [vmem:[#allocation103_spill] sm:$0xff]  ;;  %v9730_v12 = vld [vmem:[#allocation164_spill] sm:$0xff]  ;;  %v9732_v22 = vld [vmem:[#allocation22_spill] sm:$0xff] }
 0x286   : > { %5248 = vmatprep.mubr.msk.f32.mxu0 %vm1969_vm11, %v1942_v53  ;;  %v1848_v46 = vsel %vm1832_vm7, %v1815_v14, %v9725_v52  ;;  %v1880_v11 = vsel %vm1865_vm8, %v1847_v56, %v9726_v41  ;;  %v1751_v6 = vsel %vm1733_vm4, %v1718_v37, %v9727_v35  ;;  %v1783_v40 = vsel %vm1766_vm5, %v1750_v51, %v9728_v2  ;;  %v9733_v47 = vld [vmem:[#allocation167_spill] sm:$0xff]  ;;  %v9735_v49 = vld [vmem:[#allocation28_spill] sm:$0xff]  ;;  %v9737_v15 = vld [vmem:[#allocation45_spill] sm:$0xff] }
 0x287   : > { %5249 = vmatmul.mubr.msk.f32.gmra.mxu0 %vm1969_vm11, %v1943_v39  ;;  %v1881_v13 = vsel %vm1865_vm8, %v1848_v46, %v9729_v8  ;;  %v1913_v57 = vsel %vm1898_vm9, %v1880_v11, %v9730_v12  ;;  %v1784_v53 = vsel %vm1766_vm5, %v1751_v6, %v9731_v55  ;;  %v1816_v9 = vsel %vm1799_vm6, %v1783_v40, %v9732_v22  ;;  %v5413_v48 = vld [vmem:[#allocation2 + $0xe0] sm:$0xff]  ;;  %v9736_v42 = vld [vmem:[#allocation68_spill] sm:$0xff]  ;;  %v9739_v28 = vld [vmem:[#allocation121_spill] sm:$0xff] }
 0x288   : > { %v1630_v31 = vpop.permute.xlu1 %1629  ;;  %v1636_v63 = vpop.permute.xlu0 %1635  ;;  %v1914_v1 = vsel %vm1898_vm9, %v1881_v13, %v9733_v47  ;;  %v9734_v34 = vld [vmem:[#allocation43_spill] sm:$0xff]  ;;  %v1817_v60 = vsel %vm1799_vm6, %v1784_v53, %v9735_v49  ;;  %v1849_v32 = vsel %vm1832_vm7, %v1816_v9, %v9736_v42  ;;  %v5414_v43 = vld [vmem:[#allocation2 + $0x108] sm:$0xff]  ;;  %v9740_v44 = vld [vmem:[#allocation142_spill] sm:$0xff] }
 0x289   : > { %v1944_v26 = vsel %vm1931_vm10, %v1911_v20, %v1630_v31  ;;  %v1720_v39 = vsel %vm309_vm0, %v5413_v48, %v9734_v34  ;;  %v1947_v29 = vsel %vm1931_vm10, %v1914_v1, %v1636_v63  ;;  %v1723_v5 = vsel %vm309_vm0, %v5414_v43, %v9737_v15  ;;  %v9738_v61 = vld [vmem:[#allocation83_spill] sm:$0xff]  ;;  %v9741_v3 = vld [vmem:[#allocation86_spill] sm:$0xff]  ;;  %v9742_v31 = vld [vmem:[#allocation105_spill] sm:$0xff] }
 0x28a   : > { %5251 = vmatprep.mubr.msk.f32.mxu0 %vm1969_vm11, %v1944_v26  ;;  %v1752_v36 = vsel %vm1733_vm4, %v1719_v19, %v9738_v61  ;;  %v1850_v18 = vsel %vm1832_vm7, %v1817_v60, %v9739_v28  ;;  %v1882_v21 = vsel %vm1865_vm8, %v1849_v32, %v9740_v44  ;;  %v1753_v20 = vsel %vm1733_vm4, %v1720_v39, %v9741_v3  ;;  %v9743_v16 = vld [vmem:[#allocation145_spill] sm:$0xff]  ;;  %v9744_v38 = vld [vmem:[#allocation166_spill] sm:$0xff]  ;;  %v9745_v45 = vld [vmem:[#allocation108_spill] sm:$0xff] }
 0x28b   : > { %5252 = vmatmul.mubr.msk.f32.gmra.mxu0 %vm1969_vm11, %v1945_v27  ;;  %v1785_v58 = vsel %vm1766_vm5, %v1752_v36, %v9742_v31  ;;  %v1883_v10 = vsel %vm1865_vm8, %v1850_v18, %v9743_v16  ;;  %v1915_v19 = vsel %vm1898_vm9, %v1882_v21, %v9744_v38  ;;  %v1786_v26 = vsel %vm1766_vm5, %v1753_v20, %v9745_v45  ;;  %v9746_v33 = vld [vmem:[#allocation26_spill] sm:$0xff]  ;;  %v9747_v37 = vld [vmem:[#allocation169_spill] sm:$0xff]  ;;  %v9748_v56 = vld [vmem:[#allocation47_spill] sm:$0xff] }
 0x28c   : > { %v1634_v25 = vpop.permute.xlu1 %1633  ;;  %v1640_v50 = vpop.permute.xlu0 %1639  ;;  %v1818_v7 = vsel %vm1799_vm6, %v1785_v58, %v9746_v33  ;;  %v1916_v0 = vsel %vm1898_vm9, %v1883_v10, %v9747_v37  ;;  %v5415_v59 = vld [vmem:[#allocation2 + $0xf8] sm:$0xff]  ;;  %v9749_v63 = vld [vmem:[#allocation32_spill] sm:$0xff]  ;;  %v5416_v46 = vld [vmem:[#allocation2 + $0x120] sm:$0xff] }
 0x28d   : > { %v1946_v62 = vsel %vm1931_vm10, %v1913_v57, %v1634_v25  ;;  %v1722_v27 = vsel %vm309_vm0, %v5415_v59, %v9748_v56  ;;  %v1819_v4 = vsel %vm1799_vm6, %v1786_v26, %v9749_v63  ;;  %v9750_v23 = vld [vmem:[#allocation120_spill] sm:$0xff]  ;;  %v1949_v51 = vsel %vm1931_vm10, %v1916_v0, %v1640_v50  ;;  %v9751_v41 = vld [vmem:[#allocation49_spill] sm:$0xff]  ;;  %v9753_v2 = vld [vmem:[#allocation123_spill] sm:$0xff] }
 0x28e   : > { %5254 = vmatprep.mubr.msk.f32.mxu0 %vm1969_vm11, %v1946_v62  ;;  %v1851_v30 = vsel %vm1832_vm7, %v1818_v7, %v9750_v23  ;;  %v1725_v11 = vsel %vm309_vm0, %v5416_v46, %v9751_v41  ;;  %v9752_v35 = vld [vmem:[#allocation85_spill] sm:$0xff]  ;;  %v1852_v40 = vsel %vm1832_vm7, %v1819_v4, %v9753_v2  ;;  %v9754_v8 = vld [vmem:[#allocation144_spill] sm:$0xff]  ;;  %v9756_v25 = vld [vmem:[#allocation107_spill] sm:$0xff] }
 0x28f   : > { %5255 = vmatmul.mubr.msk.f32.gmra.mxu0 %vm1969_vm11, %v1947_v29  ;;  %v1754_v6 = vsel %vm1733_vm4, %v1721_v24, %v9752_v35  ;;  %v1884_v13 = vsel %vm1865_vm8, %v1851_v30, %v9754_v8  ;;  %v9755_v12 = vld [vmem:[#allocation88_spill] sm:$0xff]  ;;  %v9757_v53 = vld [vmem:[#allocation147_spill] sm:$0xff]  ;;  %v9759_v1 = vld [vmem:[#allocation110_spill] sm:$0xff] }
 0x290   : > { %v1638_v54 = vpop.permute.xlu1 %1637  ;;  %v1644_v52 = vpop.permute.xlu0 %1643  ;;  %v1755_v57 = vsel %vm1733_vm4, %v1722_v27, %v9755_v12  ;;  %v1787_v55 = vsel %vm1766_vm5, %v1754_v6, %v9756_v25  ;;  %v1885_v22 = vsel %vm1865_vm8, %v1852_v40, %v9757_v53  ;;  %v9758_v9 = vld [vmem:[#allocation168_spill] sm:$0xff]  ;;  %v9760_v48 = vld [vmem:[#allocation30_spill] sm:$0xff]  ;;  %v9761_v39 = vld [vmem:[#allocation171_spill] sm:$0xff] }
 0x291   : > { %v1948_v14 = vsel %vm1931_vm10, %v1915_v19, %v1638_v54  ;;  %v1917_v24 = vsel %vm1898_vm9, %v1884_v13, %v9758_v9  ;;  %v1788_v62 = vsel %vm1766_vm5, %v1755_v57, %v9759_v1  ;;  %v1820_v34 = vsel %vm1799_vm6, %v1787_v55, %v9760_v48  ;;  %v5417_v42 = vld [vmem:[#allocation2 + $0x110] sm:$0xff]  ;;  %v9762_v32 = vld [vmem:[#allocation51_spill] sm:$0xff]  ;;  %v9763_v50 = vld [vmem:[#allocation36_spill] sm:$0xff] }
 0x292   : > { %5257 = vmatprep.mubr.msk.f32.mxu0 %vm1969_vm11, %v1948_v14  ;;  %v1918_v49 = vsel %vm1898_vm9, %v1885_v22, %v9761_v39  ;;  %v1724_v29 = vsel %vm309_vm0, %v5417_v42, %v9762_v32  ;;  %v1821_v43 = vsel %vm1799_vm6, %v1788_v62, %v9763_v50  ;;  %v9764_v15 = vld [vmem:[#allocation122_spill] sm:$0xff]  ;;  %v9765_v44 = vld [vmem:[#allocation53_spill] sm:$0xff]  ;;  %v9766_v3 = vld [vmem:[#allocation87_spill] sm:$0xff] }
 0x293   : > { %5258 = vmatmul.mubr.msk.f32.gmra.mxu0 %vm1969_vm11, %v1949_v51  ;;  %v1853_v61 = vsel %vm1832_vm7, %v1820_v34, %v9764_v15  ;;  %v1951_v36 = vsel %vm1931_vm10, %v1918_v49, %v1644_v52  ;;  %v5418_v18 = vld [vmem:[#allocation2 + $0x138] sm:$0xff]  ;;  %v1756_v20 = vsel %vm1733_vm4, %v1723_v5, %v9766_v3  ;;  %v9767_v31 = vld [vmem:[#allocation125_spill] sm:$0xff]  ;;  %v9773_v0 = vld [vmem:[#allocation112_spill] sm:$0xff] }
 0x294   : > { %v1642_v47 = vpop.permute.xlu1 %1641  ;;  %v1648_v28 = vpop.permute.xlu0 %1647  ;;  %v1727_v21 = vsel %vm309_vm0, %v5418_v18, %v9765_v44  ;;  %v1854_v58 = vsel %vm1832_vm7, %v1821_v43, %v9767_v31  ;;  %v9768_v16 = vld [vmem:[#allocation146_spill] sm:$0xff]  ;;  %v9770_v54 = vld [vmem:[#allocation109_spill] sm:$0xff]  ;;  %v5419_v23 = vld [vmem:[#allocation2 + $0x128] sm:$0xff] }
 0x295   : > { %v1950_v60 = vsel %vm1931_vm10, %v1917_v24, %v1642_v47  ;;  %v1886_v10 = vsel %vm1865_vm8, %v1853_v61, %v9768_v16  ;;  %v9769_v38 = vld [vmem:[#allocation90_spill] sm:$0xff]  ;;  %v1789_v45 = vsel %vm1766_vm5, %v1756_v20, %v9770_v54  ;;  %v9771_v26 = vld [vmem:[#allocation149_spill] sm:$0xff]  ;;  %v9776_v30 = vld [vmem:[#allocation55_spill] sm:$0xff] }
 0x296   : > { %5260 = vmatprep.mubr.msk.f32.mxu0 %vm1969_vm11, %v1950_v60  ;;  %v1757_v19 = vsel %vm1733_vm4, %v1724_v29, %v9769_v38  ;;  %v1887_v33 = vsel %vm1865_vm8, %v1854_v58, %v9771_v26  ;;  %v9772_v7 = vld [vmem:[#allocation170_spill] sm:$0xff]  ;;  %v9775_v27 = vld [vmem:[#allocation173_spill] sm:$0xff]  ;;  %v1726_v51 = vsel %vm309_vm0, %v5419_v23, %v9776_v30  ;;  %v9777_v52 = vld [vmem:[#allocation40_spill] sm:$0xff] }
 0x297   : > { %5261 = vmatmul.mubr.msk.f32.gmra.mxu0 %vm1969_vm11, %v1951_v36  ;;  %v1919_v5 = vsel %vm1898_vm9, %v1886_v10, %v9772_v7  ;;  %v1790_v14 = vsel %vm1766_vm5, %v1757_v19, %v9773_v0  ;;  %v9774_v59 = vld [vmem:[#allocation34_spill] sm:$0xff]  ;;  %v1920_v63 = vsel %vm1898_vm9, %v1887_v33, %v9775_v27  ;;  %v9778_v41 = vld [vmem:[#allocation124_spill] sm:$0xff]  ;;  %v5420_v40 = vld [vmem:[#allocation2 + $0x150] sm:$0xff] }
 0x298   : > { %v1646_v37 = vpop.permute.xlu1 %1645  ;;  %v1822_v56 = vsel %vm1799_vm6, %v1789_v45, %v9774_v59  ;;  %v1823_v46 = vsel %vm1799_vm6, %v1790_v14, %v9777_v52  ;;  %v1953_v6 = vsel %vm1931_vm10, %v1920_v63, %v1648_v28  ;;  %v1652_v2 = vpop.permute.xlu0 %1651  ;;  %v9779_v8 = vld [vmem:[#allocation57_spill] sm:$0xff]  ;;  %v9781_v25 = vld [vmem:[#allocation127_spill] sm:$0xff]  ;;  %v9782_v53 = vld [vmem:[#allocation148_spill] sm:$0xff] }
 0x299   : > { %v1952_v4 = vsel %vm1931_vm10, %v1919_v5, %v1646_v37  ;;  %v1855_v35 = vsel %vm1832_vm7, %v1822_v56, %v9778_v41  ;;  %v1729_v13 = vsel %vm309_vm0, %v5420_v40, %v9779_v8  ;;  %v9780_v12 = vld [vmem:[#allocation89_spill] sm:$0xff]  ;;  %v1856_v55 = vsel %vm1832_vm7, %v1823_v46, %v9781_v25  ;;  %v9783_v9 = vld [vmem:[#allocation92_spill] sm:$0xff]  ;;  %v9784_v47 = vld [vmem:[#allocation111_spill] sm:$0xff] }
 0x29a   : > { %5263 = vmatprep.mubr.msk.f32.mxu0 %vm1969_vm11, %v1952_v4  ;;  %v1758_v57 = vsel %vm1733_vm4, %v1725_v11, %v9780_v12  ;;  %v1888_v22 = vsel %vm1865_vm8, %v1855_v35, %v9782_v53  ;;  %v1759_v24 = vsel %vm1733_vm4, %v1726_v51, %v9783_v9  ;;  %v9785_v62 = vld [vmem:[#allocation151_spill] sm:$0xff]  ;;  %v9786_v34 = vld [vmem:[#allocation172_spill] sm:$0xff]  ;;  %v9787_v49 = vld [vmem:[#allocation114_spill] sm:$0xff] }
 0x29b   : > { %5264 = vmatmul.mubr.msk.f32.gmra.mxu0 %vm1969_vm11, %v1953_v6  ;;  %v1791_v1 = vsel %vm1766_vm5, %v1758_v57, %v9784_v47  ;;  %v1889_v48 = vsel %vm1865_vm8, %v1856_v55, %v9785_v62  ;;  %v1921_v11 = vsel %vm1898_vm9, %v1888_v22, %v9786_v34  ;;  %v1792_v60 = vsel %vm1766_vm5, %v1759_v24, %v9787_v49  ;;  %v9788_v42 = vld [vmem:[#allocation38_spill] sm:$0xff]  ;;  %v9789_v29 = vld [vmem:[#allocation175_spill] sm:$0xff]  ;;  %v9791_v28 = vld [vmem:[#allocation44_spill] sm:$0xff] }
 0x29c   : > { %v1650_v39 = vpop.permute.xlu1 %1649  ;;  %v1824_v32 = vsel %vm1799_vm6, %v1791_v1, %v9788_v42  ;;  %v1922_v50 = vsel %vm1898_vm9, %v1889_v48, %v9789_v29  ;;  %v5421_v15 = vld [vmem:[#allocation2 + $0x140] sm:$0xff]  ;;  %v1825_v18 = vsel %vm1799_vm6, %v1792_v60, %v9791_v28  ;;  %v9792_v44 = vld [vmem:[#allocation126_spill] sm:$0xff]  ;;  %v1656_v31 = vpop.permute.xlu0 %1655  ;;  %v9794_v10 = vld [vmem:[#allocation93_spill] sm:$0xff] }
 0x29d   : > { %v1954_v43 = vsel %vm1931_vm10, %v1921_v11, %v1650_v39  ;;  %v9790_v61 = vld [vmem:[#allocation59_spill] sm:$0xff]  ;;  %v1857_v3 = vsel %vm1832_vm7, %v1824_v32, %v9792_v44  ;;  %v1955_v20 = vsel %vm1931_vm10, %v1922_v50, %v1652_v2  ;;  %v1762_v38 = vsel %vm1733_vm4, %v1729_v13, %v9794_v10  ;;  %v9795_v19 = vld [vmem:[#allocation129_spill] sm:$0xff]  ;;  %v9796_v45 = vld [vmem:[#allocation150_spill] sm:$0xff] }
 0x29e   : > { %v1728_v36 = vsel %vm309_vm0, %v5421_v15, %v9790_v61  ;;  %5266 = vmatprep.mubr.msk.f32.mxu0 %vm1969_vm11, %v1954_v43  ;;  %v9793_v58 = vld [vmem:[#allocation91_spill] sm:$0xff]  ;;  %v1858_v54 = vsel %vm1832_vm7, %v1825_v18, %v9795_v19  ;;  %v1890_v26 = vsel %vm1865_vm8, %v1857_v3, %v9796_v45  ;;  %v9797_v33 = vld [vmem:[#allocation94_spill] sm:$0xff]  ;;  %v9798_v5 = vld [vmem:[#allocation113_spill] sm:$0xff] }
 0x29f   : > { %v1760_v16 = vsel %vm1733_vm4, %v1727_v21, %v9793_v58  ;;  %5267 = vmatmul.mubr.msk.f32.gmra.mxu0 %vm1969_vm11, %v1955_v20  ;;  %v1761_v7 = vsel %vm1733_vm4, %v1728_v36, %v9797_v33  ;;  %v9799_v0 = vld [vmem:[#allocation153_spill] sm:$0xff]  ;;  %v9800_v14 = vld [vmem:[#allocation174_spill] sm:$0xff]  ;;  %v9801_v27 = vld [vmem:[#allocation116_spill] sm:$0xff] }
 0x2a0   : > { %v1793_v37 = vsel %vm1766_vm5, %v1760_v16, %v9798_v5  ;;  %v1891_v21 = vsel %vm1865_vm8, %v1858_v54, %v9799_v0  ;;  %v1923_v59 = vsel %vm1898_vm9, %v1890_v26, %v9800_v14  ;;  %v1654_v56 = vpop.permute.xlu1 %1653  ;;  %v1794_v63 = vsel %vm1766_vm5, %v1761_v7, %v9801_v27  ;;  %v9802_v4 = vld [vmem:[#allocation42_spill] sm:$0xff]  ;;  %v9803_v30 = vld [vmem:[#allocation177_spill] sm:$0xff]  ;;  %v9804_v46 = vld [vmem:[#allocation115_spill] sm:$0xff]  ;;  %v1660_v13 = vpop.permute.xlu0 %1659 }
 0x2a1   : > { %v1826_v23 = vsel %vm1799_vm6, %v1793_v37, %v9802_v4  ;;  %v1924_v51 = vsel %vm1898_vm9, %v1891_v21, %v9803_v30  ;;  %v1956_v52 = vsel %vm1931_vm10, %v1923_v59, %v1654_v56  ;;  %v1795_v41 = vsel %vm1766_vm5, %v1762_v38, %v9804_v46  ;;  %v9805_v35 = vld [vmem:[#allocation48_spill] sm:$0xff]  ;;  %v9807_v12 = vld [vmem:[#allocation46_spill] sm:$0xff]  ;;  %v9808_v25 = vld [vmem:[#allocation131_spill] sm:$0xff] }
 0x2a2   : > { %v1827_v6 = vsel %vm1799_vm6, %v1794_v63, %v9805_v35  ;;  %v9806_v2 = vld [vmem:[#allocation128_spill] sm:$0xff]  ;;  %v1957_v8 = vsel %vm1931_vm10, %v1924_v51, %v1656_v31  ;;  %5269 = vmatprep.mubr.msk.f32.mxu0 %vm1969_vm11, %v1956_v52  ;;  %v1828_v57 = vsel %vm1799_vm6, %v1795_v41, %v9807_v12  ;;  %v9810_v9 = vld [vmem:[#allocation130_spill] sm:$0xff]  ;;  %v9811_v47 = vld [vmem:[#allocation155_spill] sm:$0xff] }
 0x2a3   : > { %v1859_v40 = vsel %vm1832_vm7, %v1826_v23, %v9806_v2  ;;  %v1860_v55 = vsel %vm1832_vm7, %v1827_v6, %v9808_v25  ;;  %v9809_v53 = vld [vmem:[#allocation152_spill] sm:$0xff]  ;;  %5270 = vmatmul.mubr.msk.f32.gmra.mxu0 %vm1969_vm11, %v1957_v8  ;;  %v1861_v24 = vsel %vm1832_vm7, %v1828_v57, %v9810_v9  ;;  %v9813_v11 = vld [vmem:[#allocation154_spill] sm:$0xff]  ;;  %v9814_v32 = vld [vmem:[#allocation63_spill] sm:$0xff] }
 0x2a4   : > { %v1892_v22 = vsel %vm1865_vm8, %v1859_v40, %v9809_v53  ;;  %v1893_v1 = vsel %vm1865_vm8, %v1860_v55, %v9811_v47  ;;  %v9812_v62 = vld [vmem:[#allocation176_spill] sm:$0xff]  ;;  %v1658_v34 = vpop.permute.xlu1 %1657  ;;  %v1894_v39 = vsel %vm1865_vm8, %v1861_v24, %v9813_v11  ;;  %v5422_v42 = vld [vmem:[#allocation2 + $0x158] sm:$0xff]  ;;  %v9815_v50 = vld [vmem:[#allocation7_spill] sm:$0xff]  ;;  %v1662_v61 = vpop.permute.xlu0 %1661 }
 0x2a5   : > { %v1925_v48 = vsel %vm1898_vm9, %v1892_v22, %v9812_v62  ;;  %v1926_v49 = vsel %vm1898_vm9, %v1893_v1, %v6950_v17  ;;  %v1730_v29 = vsel %vm309_vm0, %v5422_v42, %v9814_v32  ;;  %v1927_v43 = vsel %vm1898_vm9, %v1894_v39, %v9815_v50  ;;  %v9816_v36 = vld [vmem:[#allocation96_spill] sm:$0xff]  ;;  %v9817_v44 = vld [vmem:[#allocation61_spill] sm:$0xff]  ;;  %v9818_v20 = vld [vmem:[#allocation118_spill] sm:$0xff] }
 0x2a6   : > { %v1958_v60 = vsel %vm1931_vm10, %v1925_v48, %v1658_v34  ;;  %v1959_v15 = vsel %vm1931_vm10, %v1926_v49, %v1660_v13  ;;  %v1763_v28 = vsel %vm1733_vm4, %v1730_v29, %v9816_v36  ;;  %v1960_v18 = vsel %vm1931_vm10, %v1927_v43, %v1662_v61  ;;  %v5423_v17 = vld [vmem:[#allocation2 + $0x168] sm:$0xff]  ;;  %v9819_v16 = vld [vmem:[#allocation95_spill] sm:$0xff]  ;;  %v9821_v54 = vld [vmem:[#allocation117_spill] sm:$0xff] }
 0x2a7   : > { %5272 = vmatprep.mubr.msk.f32.mxu0 %vm1969_vm11, %v1958_v60  ;;  %v1731_v3 = vsel %vm309_vm0, %v5423_v17, %v9817_v44  ;;  %v1796_v31 = vsel %vm1766_vm5, %v1763_v28, %v9818_v20  ;;  %v9820_v38 = vld [vmem:[#allocation52_spill] sm:$0xff]  ;;  %v9822_v26 = vld [vmem:[#allocation133_spill] sm:$0xff]  ;;  %v9823_v5 = vld [vmem:[#allocation50_spill] sm:$0xff] }
 0x2a8   : > { %5273 = vmatmul.mubr.msk.f32.gmra.mxu0 %vm1969_vm11, %v1959_v15  ;;  %v1536_v58 = vpop.permute.xlu1 %1535  ;;  %v1764_v10 = vsel %vm1733_vm4, %v1731_v3, %v9819_v16  ;;  %v1829_v19 = vsel %vm1799_vm6, %v1796_v31, %v9820_v38  ;;  %v1538_v7 = vpop.permute.xlu0 %1537  ;;  %v9824_v0 = vld [vmem:[#allocation157_spill] sm:$0xff]  ;;  %v9825_v14 = vld [vmem:[#allocation132_spill] sm:$0xff]  ;;  %v9827_v51 = vld [vmem:[#allocation67_spill] sm:$0xff] }
 0x2a9   : > { %5275 = vmatprep.mubr.msk.f32.mxu0 %vm1969_vm11, %v1960_v18  ;;  %v1797_v45 = vsel %vm1766_vm5, %v1764_v10, %v9821_v54  ;;  %v1862_v33 = vsel %vm1832_vm7, %v1829_v19, %v9822_v26  ;;  %v9826_v63 = vld [vmem:[#allocation156_spill] sm:$0xff]  ;;  %v5424_v30 = vld [vmem:[#allocation2 + $0x170] sm:$0xff]  ;;  %v9829_v40 = vld [vmem:[#allocation119_spill] sm:$0xff] }
 0x2aa   : > { %v1830_v37 = vsel %vm1799_vm6, %v1797_v45, %v9823_v5  ;;  %v1895_v21 = vsel %vm1865_vm8, %v1862_v33, %v9824_v0  ;;  %v1732_v52 = vsel %vm309_vm0, %v5424_v30, %v9827_v51  ;;  %v9828_v35 = vld [vmem:[#allocation97_spill] sm:$0xff]  ;;  %v9830_v12 = vld [vmem:[#allocation54_spill] sm:$0xff]  ;;  %v7452_v48 = vld [vmem:[%s9385_s2] ss:$0 sm:$0xff] }
 0x2ab   : > { %v1863_v59 = vsel %vm1832_vm7, %v1830_v37, %v9825_v14  ;;  %v1928_v56 = vsel %vm1898_vm9, %v1895_v21, %v1536_v58  ;;  %v1765_v6 = vsel %vm1733_vm4, %v1732_v52, %v9828_v35  ;;  %v9831_v25 = vld [vmem:[#allocation134_spill] sm:$0xff]  ;;  %v7457_v11 = vld [vmem:[%s9386_s3] ss:$0 sm:$0xff] }
 0x2ac   : > { %v1664_v27 = vpop.permute.xlu1 %1663  ;;  %v1896_v4 = vsel %vm1865_vm8, %v1863_v59, %v9826_v63  ;;  %v1666_v41 = vpop.permute.xlu0 %1665  ;;  %v1798_v8 = vsel %vm1766_vm5, %v1765_v6, %v9829_v40  ;;  %v9832_v53 = vld [vmem:[#allocation158_spill] sm:$0xff] }
 0x2ad   : > { %v1961_v23 = vsel %vm1931_vm10, %v1928_v56, %v1664_v27  ;;  %v1929_v46 = vsel %vm1898_vm9, %v1896_v4, %v1538_v7  ;;  %v1831_v57 = vsel %vm1799_vm6, %v1798_v8, %v9830_v12  ;;  %v2514_v1 = vld [vmem:[#allocation3 + $0x9] sm:$0xff]  ;;  %v2513_v62 = vld [vmem:[#allocation3 + $0x1] sm:$0xff] }
 0x2ae   : > { %5276 = vmatmul.mubr.msk.f32.gmra.mxu0 %vm1969_vm11, %v1961_v23  ;;  %v1962_v2 = vsel %vm1931_vm10, %v1929_v46, %v1666_v41  ;;  %v1864_v55 = vsel %vm1832_vm7, %v1831_v57, %v9831_v25  ;;  %2804 = vrot.lane.b32.xlu1 %v2514_v1, %s5505_s18 }
 0x2af   : > { %5278 = vmatprep.mubr.msk.f32.mxu0 %vm1969_vm11, %v1962_v2  ;;  %v1897_v22 = vsel %vm1865_vm8, %v1864_v55, %v9832_v53  ;;  %2802 = vrot.lane.b32.xlu0 %v2513_v62, %s5505_s18 }
 0x2b0   : > { %v1540_v13 = vpop.permute.xlu1 %1539 }
 0x2b1   : > { %v1930_v9 = vsel %vm1898_vm9, %v1897_v22, %v1540_v13 }
 0x2b4   : > { %v1668_v24 = vpop.permute.xlu1 %1667 }
 0x2b5   : > { %v1963_v47 = vsel %vm1931_vm10, %v1930_v9, %v1668_v24 }
 0x2b6   : > { %5279 = vmatmul.mubr.msk.f32.gmra.mxu0 %vm1969_vm11, %v1963_v47 }
 0x333   : > { %v5235_v34 = vpop.f32.mrf.mxu0 }
 0x334   : > { %v2303_v39 = vmul.f32 %v5235_v34, %v7452_v48 }
 0x335   : > { %v2136_v49 = vpop.f32.mrf.mxu0 }
 0x336   : > { %v2342_v60 = vadd.f32 %v7457_v11, %v2303_v39  ;;  %v2302_v42 = vmul.f32 %v7452_v48, %v2136_v49 }
 0x337   : > { %v5238_v32 = vpop.f32.mrf.mxu0 }
 0x338   : > { %v2374_v29 = vmax.f32 %v2342_v60, 0.0  ;;  %v2341_v50 = vadd.f32 %v7457_v11, %v2302_v42  ;;  %v2305_v43 = vmul.f32 %v5238_v32, %v7452_v48 }
 0x339   : > { %v2146_v15 = vpop.f32.mrf.mxu0 }
 0x33a   : > { %2450 = vst.msk [vmem:[#allocation3 + $0x21] sm:$0xff] %vm309_vm0, %v2374_v29  ;;  %v2373_v61 = vmax.f32 %v2341_v50, 0.0  ;;  %v2344_v36 = vadd.f32 %v7457_v11, %v2305_v43  ;;  %v2304_v28 = vmul.f32 %v7452_v48, %v2146_v15 }
 0x33b   : > { %v5241_v18 = vpop.f32.mrf.mxu0 }
 0x33c   : > { %2449 = vst.msk [vmem:[#allocation3 + $0x19] sm:$0xff] %vm309_vm0, %v2373_v61  ;;  %v2376_v17 = vmax.f32 %v2344_v36, 0.0  ;;  %v2343_v44 = vadd.f32 %v7457_v11, %v2304_v28  ;;  %v2307_v3 = vmul.f32 %v5241_v18, %v7452_v48 }
 0x33d   : > { %v2156_v20 = vpop.f32.mrf.mxu0 }
 0x33e   : > { %2452 = vst.msk [vmem:[#allocation3 + $0x39] sm:$0xff] %vm309_vm0, %v2376_v17  ;;  %v2375_v31 = vmax.f32 %v2343_v44, 0.0  ;;  %v2346_v58 = vadd.f32 %v7457_v11, %v2307_v3  ;;  %v2306_v16 = vmul.f32 %v7452_v48, %v2156_v20 }
 0x33f   : > { %v5244_v10 = vpop.f32.mrf.mxu0 }
 0x340   : > { %2451 = vst.msk [vmem:[#allocation3 + $0x31] sm:$0xff] %vm309_vm0, %v2375_v31  ;;  %v2378_v38 = vmax.f32 %v2346_v58, 0.0  ;;  %v2345_v19 = vadd.f32 %v7457_v11, %v2306_v16  ;;  %v2309_v54 = vmul.f32 %v5244_v10, %v7452_v48 }
 0x341   : > { %v2166_v45 = vpop.f32.mrf.mxu0  ;;  %v7476_v26 = vld [vmem:[#allocation3 + $0x21] sm:$0xff] }
 0x342   : > { %2454 = vst.msk [vmem:[#allocation3 + $0x51] sm:$0xff] %vm309_vm0, %v2378_v38  ;;  %v2377_v33 = vmax.f32 %v2345_v19, 0.0  ;;  %v2348_v7 = vadd.f32 %v7457_v11, %v2309_v54  ;;  %v2308_v5 = vmul.f32 %v7452_v48, %v2166_v45  ;;  %2808 = vrot.lane.b32.xlu1 %v7476_v26, %s5505_s18 }
 0x343   : > { %v5247_v37 = vpop.f32.mrf.mxu0  ;;  %v7483_v0 = vld [vmem:[#allocation3 + $0x19] sm:$0xff] }
 0x344   : > { %2453 = vst.msk [vmem:[#allocation3 + $0x49] sm:$0xff] %vm309_vm0, %v2377_v33  ;;  %v2380_v21 = vmax.f32 %v2348_v7, 0.0  ;;  %v2347_v14 = vadd.f32 %v7457_v11, %v2308_v5  ;;  %v2311_v59 = vmul.f32 %v5247_v37, %v7452_v48  ;;  %2806 = vrot.lane.b32.xlu0 %v7483_v0, %s5505_s18 }
 0x345   : > { %v2176_v56 = vpop.f32.mrf.mxu0  ;;  %v7490_v27 = vld [vmem:[#allocation3 + $0x39] sm:$0xff] }
 0x346   : > { %2456 = vst.msk [vmem:[#allocation3 + $0x69] sm:$0xff] %vm309_vm0, %v2380_v21  ;;  %v2379_v63 = vmax.f32 %v2347_v14, 0.0  ;;  %v2350_v4 = vadd.f32 %v7457_v11, %v2311_v59  ;;  %v2310_v23 = vmul.f32 %v7452_v48, %v2176_v56  ;;  %2812 = vrot.lane.b32.xlu1 %v7490_v27, %s5505_s18 }
 0x347   : > { %v5250_v30 = vpop.f32.mrf.mxu0  ;;  %v7497_v51 = vld [vmem:[#allocation3 + $0x31] sm:$0xff] }
 0x348   : > { %2455 = vst.msk [vmem:[#allocation3 + $0x61] sm:$0xff] %vm309_vm0, %v2379_v63  ;;  %v2382_v52 = vmax.f32 %v2350_v4, 0.0  ;;  %v2349_v46 = vadd.f32 %v7457_v11, %v2310_v23  ;;  %v2313_v41 = vmul.f32 %v5250_v30, %v7452_v48  ;;  %2810 = vrot.lane.b32.xlu0 %v7497_v51, %s5505_s18 }
 0x349   : > { %v2186_v35 = vpop.f32.mrf.mxu0  ;;  %v7504_v6 = vld [vmem:[#allocation3 + $0x51] sm:$0xff] }
 0x34a   : > { %2458 = vst.msk [vmem:[#allocation3 + $0x81] sm:$0xff] %vm309_vm0, %v2382_v52  ;;  %v2381_v2 = vmax.f32 %v2349_v46, 0.0  ;;  %v2352_v40 = vadd.f32 %v7457_v11, %v2313_v41  ;;  %v2312_v8 = vmul.f32 %v7452_v48, %v2186_v35  ;;  %2816 = vrot.lane.b32.xlu1 %v7504_v6, %s5505_s18 }
 0x34b   : > { %v5253_v13 = vpop.f32.mrf.mxu0  ;;  %v7511_v12 = vld [vmem:[#allocation3 + $0x49] sm:$0xff] }
 0x34c   : > { %2457 = vst.msk [vmem:[#allocation3 + $0x79] sm:$0xff] %vm309_vm0, %v2381_v2  ;;  %v2384_v57 = vmax.f32 %v2352_v40, 0.0  ;;  %v2351_v25 = vadd.f32 %v7457_v11, %v2312_v8  ;;  %v2315_v55 = vmul.f32 %v5253_v13, %v7452_v48  ;;  %2814 = vrot.lane.b32.xlu0 %v7511_v12, %s5505_s18 }
 0x34d   : > { %v2196_v53 = vpop.f32.mrf.mxu0  ;;  %v7518_v22 = vld [vmem:[#allocation3 + $0x69] sm:$0xff] }
 0x34e   : > { %2460 = vst.msk [vmem:[#allocation3 + $0x99] sm:$0xff] %vm309_vm0, %v2384_v57  ;;  %v2383_v9 = vmax.f32 %v2351_v25, 0.0  ;;  %v2354_v24 = vadd.f32 %v7457_v11, %v2315_v55  ;;  %v2314_v47 = vmul.f32 %v7452_v48, %v2196_v53  ;;  %2820 = vrot.lane.b32.xlu1 %v7518_v22, %s5505_s18 }
 0x34f   : > { %v5256_v1 = vpop.f32.mrf.mxu0  ;;  %v7525_v62 = vld [vmem:[#allocation3 + $0x61] sm:$0xff] }
 0x350   : > { %2459 = vst.msk [vmem:[#allocation3 + $0x91] sm:$0xff] %vm309_vm0, %v2383_v9  ;;  %v2386_v34 = vmax.f32 %v2354_v24, 0.0  ;;  %v2353_v39 = vadd.f32 %v7457_v11, %v2314_v47  ;;  %v2317_v49 = vmul.f32 %v5256_v1, %v7452_v48  ;;  %2818 = vrot.lane.b32.xlu0 %v7525_v62, %s5505_s18 }
 0x351   : > { %v2206_v60 = vpop.f32.mrf.mxu0  ;;  %v2524_v42 = vld [vmem:[#allocation3 + $0x81] sm:$0xff] }
 0x352   : > { %2462 = vst.msk [vmem:[#allocation3 + $0xb1] sm:$0xff] %vm309_vm0, %v2386_v34  ;;  %v2385_v32 = vmax.f32 %v2353_v39, 0.0  ;;  %v2356_v29 = vadd.f32 %v7457_v11, %v2317_v49  ;;  %v2316_v50 = vmul.f32 %v7452_v48, %v2206_v60  ;;  %2824 = vrot.lane.b32.xlu1 %v2524_v42, %s5505_s18 }
 0x353   : > { %v5259_v43 = vpop.f32.mrf.mxu0  ;;  %v7536_v15 = vld [vmem:[#allocation3 + $0x79] sm:$0xff] }
 0x354   : > { %2461 = vst.msk [vmem:[#allocation3 + $0xa9] sm:$0xff] %vm309_vm0, %v2385_v32  ;;  %v2388_v61 = vmax.f32 %v2356_v29, 0.0  ;;  %v2355_v36 = vadd.f32 %v7457_v11, %v2316_v50  ;;  %v2319_v28 = vmul.f32 %v5259_v43, %v7452_v48  ;;  %2822 = vrot.lane.b32.xlu0 %v7536_v15, %s5505_s18 }
 0x355   : > { %v2216_v18 = vpop.f32.mrf.mxu0  ;;  %v2526_v17 = vld [vmem:[#allocation3 + $0x99] sm:$0xff] }
 0x356   : > { %2464 = vst.msk [vmem:[#allocation3 + $0xc9] sm:$0xff] %vm309_vm0, %v2388_v61  ;;  %v2387_v44 = vmax.f32 %v2355_v36, 0.0  ;;  %v2358_v3 = vadd.f32 %v7457_v11, %v2319_v28  ;;  %v2318_v20 = vmul.f32 %v7452_v48, %v2216_v18  ;;  %2828 = vrot.lane.b32.xlu1 %v2526_v17, %s5505_s18 }
 0x357   : > { %v5262_v31 = vpop.f32.mrf.mxu0  ;;  %v2525_v58 = vld [vmem:[#allocation3 + $0x91] sm:$0xff] }
 0x358   : > { %2463 = vst.msk [vmem:[#allocation3 + $0xc1] sm:$0xff] %vm309_vm0, %v2387_v44  ;;  %v2390_v16 = vmax.f32 %v2358_v3, 0.0  ;;  %v2357_v10 = vadd.f32 %v7457_v11, %v2318_v20  ;;  %v2321_v38 = vmul.f32 %v5262_v31, %v7452_v48  ;;  %2826 = vrot.lane.b32.xlu0 %v2525_v58, %s5505_s18 }
 0x359   : > { %v2226_v19 = vpop.f32.mrf.mxu0  ;;  %v2528_v54 = vld [vmem:[#allocation3 + $0xb1] sm:$0xff] }
 0x35a   : > { %2466 = vst.msk [vmem:[#allocation3 + $0xe1] sm:$0xff] %vm309_vm0, %v2390_v16  ;;  %v2389_v45 = vmax.f32 %v2357_v10, 0.0  ;;  %v2360_v33 = vadd.f32 %v7457_v11, %v2321_v38  ;;  %v2320_v7 = vmul.f32 %v7452_v48, %v2226_v19  ;;  %2832 = vrot.lane.b32.xlu1 %v2528_v54, %s5505_s18 }
 0x35b   : > { %v5265_v5 = vpop.f32.mrf.mxu0  ;;  %v2527_v37 = vld [vmem:[#allocation3 + $0xa9] sm:$0xff] }
 0x35c   : > { %2465 = vst.msk [vmem:[#allocation3 + $0xd9] sm:$0xff] %vm309_vm0, %v2389_v45  ;;  %v2392_v21 = vmax.f32 %v2360_v33, 0.0  ;;  %v2359_v14 = vadd.f32 %v7457_v11, %v2320_v7  ;;  %v2323_v59 = vmul.f32 %v5265_v5, %v7452_v48  ;;  %2830 = vrot.lane.b32.xlu0 %v2527_v37, %s5505_s18 }
 0x35d   : > { %v2236_v56 = vpop.f32.mrf.mxu0  ;;  %v2530_v63 = vld [vmem:[#allocation3 + $0xc9] sm:$0xff] }
 0x35e   : > { %2468 = vst.msk [vmem:[#allocation3 + $0xf9] sm:$0xff] %vm309_vm0, %v2392_v21  ;;  %v2391_v4 = vmax.f32 %v2359_v14, 0.0  ;;  %v2362_v23 = vadd.f32 %v7457_v11, %v2323_v59  ;;  %v2322_v30 = vmul.f32 %v7452_v48, %v2236_v56  ;;  %2836 = vrot.lane.b32.xlu1 %v2530_v63, %s5505_s18 }
 0x35f   : > { %v5268_v52 = vpop.f32.mrf.mxu0  ;;  %v2529_v46 = vld [vmem:[#allocation3 + $0xc1] sm:$0xff] }
 0x360   : > { %2467 = vst.msk [vmem:[#allocation3 + $0xf1] sm:$0xff] %vm309_vm0, %v2391_v4  ;;  %v2394_v41 = vmax.f32 %v2362_v23, 0.0  ;;  %v2361_v35 = vadd.f32 %v7457_v11, %v2322_v30  ;;  %v2325_v2 = vmul.f32 %v5268_v52, %v7452_v48  ;;  %2834 = vrot.lane.b32.xlu0 %v2529_v46, %s5505_s18 }
 0x361   : > { %v2246_v40 = vpop.f32.mrf.mxu0  ;;  %v2532_v8 = vld [vmem:[#allocation3 + $0xe1] sm:$0xff] }
 0x362   : > { %2470 = vst.msk [vmem:[#allocation3 + $0x111] sm:$0xff] %vm309_vm0, %v2394_v41  ;;  %v2393_v13 = vmax.f32 %v2361_v35, 0.0  ;;  %v2364_v57 = vadd.f32 %v7457_v11, %v2325_v2  ;;  %v2324_v25 = vmul.f32 %v7452_v48, %v2246_v40  ;;  %2840 = vrot.lane.b32.xlu1 %v2532_v8, %s5505_s18  ;;  %v2546_v40 = vld [vmem:[#allocation3 + $0xa] sm:$0xff]  ;;  %v2545_v8 = vld [vmem:[#allocation3 + $0x2] sm:$0xff] }
 0x363   : > { %v5271_v55 = vpop.f32.mrf.mxu0  ;;  %v2531_v53 = vld [vmem:[#allocation3 + $0xd9] sm:$0xff] }
 0x364   : > { %2469 = vst.msk [vmem:[#allocation3 + $0x109] sm:$0xff] %vm309_vm0, %v2393_v13  ;;  %v2396_v9 = vmax.f32 %v2364_v57, 0.0  ;;  %v2363_v24 = vadd.f32 %v7457_v11, %v2324_v25  ;;  %v2327_v47 = vmul.f32 %v5271_v55, %v7452_v48  ;;  %2838 = vrot.lane.b32.xlu0 %v2531_v53, %s5505_s18  ;;  %v7622_v13 = vld [vmem:[#allocation3 + $0x3a] sm:$0xff]  ;;  %v7626_v57 = vld [vmem:[#allocation3 + $0x32] sm:$0xff]  ;;  %v7634_v55 = vld [vmem:[#allocation3 + $0x4a] sm:$0xff] }
 0x365   : > { %v2256_v1 = vpop.f32.mrf.mxu0  ;;  %v2534_v34 = vld [vmem:[#allocation3 + $0xf9] sm:$0xff]  ;;  %v7638_v53 = vld [vmem:[#allocation3 + $0x6a] sm:$0xff] }
 0x366   : > { %2472 = vst.msk [vmem:[#allocation3 + $0x129] sm:$0xff] %vm309_vm0, %v2396_v9  ;;  %v2395_v39 = vmax.f32 %v2363_v24, 0.0  ;;  %v2366_v49 = vadd.f32 %v7457_v11, %v2327_v47  ;;  %v2326_v60 = vmul.f32 %v7452_v48, %v2256_v1  ;;  %2844 = vrot.lane.b32.xlu1 %v2534_v34, %s5505_s18  ;;  %v7630_v25 = vld [vmem:[#allocation3 + $0x52] sm:$0xff]  ;;  %v7642_v9 = vld [vmem:[#allocation3 + $0x62] sm:$0xff]  ;;  %v7650_v47 = vld [vmem:[#allocation3 + $0x7a] sm:$0xff] }
 0x367   : > { %v2533_v32 = vld [vmem:[#allocation3 + $0xf1] sm:$0xff]  ;;  %v7646_v24 = vld [vmem:[#allocation3 + $0x82] sm:$0xff]  ;;  %v7654_v1 = vld [vmem:[#allocation3 + $0x9a] sm:$0xff] }
 0x368   : > { %v5274_v42 = vpop.f32.mrf.mxu0  ;;  %2471 = vst.msk [vmem:[#allocation3 + $0x121] sm:$0xff] %vm309_vm0, %v2395_v39  ;;  %v2398_v29 = vmax.f32 %v2366_v49, 0.0  ;;  %v2365_v50 = vadd.f32 %v7457_v11, %v2326_v60  ;;  %2842 = vrot.lane.b32.xlu0 %v2533_v32, %s5505_s18  ;;  %v7658_v34 = vld [vmem:[#allocation3 + $0x92] sm:$0xff]  ;;  %v7666_v49 = vld [vmem:[#allocation3 + $0xaa] sm:$0xff]  ;;  %v2564_v32 = vld [vmem:[#allocation3 + $0xe2] sm:$0xff] }
 0x369   : > { %v2329_v43 = vmul.f32 %v5274_v42, %v7452_v48  ;;  %v2536_v36 = vld [vmem:[#allocation3 + $0x111] sm:$0xff]  ;;  %v7674_v42 = vld [vmem:[#allocation3 + $0xc2] sm:$0xff] }
 0x36a   : > { %v2266_v61 = vpop.f32.mrf.mxu0  ;;  %2474 = vst.msk [vmem:[#allocation3 + $0x141] sm:$0xff] %vm309_vm0, %v2398_v29  ;;  %v2397_v28 = vmax.f32 %v2365_v50, 0.0  ;;  %2848 = vrot.lane.b32.xlu1 %v2536_v36, %s5505_s18  ;;  %v7662_v39 = vld [vmem:[#allocation3 + $0xb2] sm:$0xff]  ;;  %v7670_v60 = vld [vmem:[#allocation3 + $0xca] sm:$0xff]  ;;  %v2563_v29 = vld [vmem:[#allocation3 + $0xda] sm:$0xff] }
 0x36b   : > { %v2368_v18 = vadd.f32 %v7457_v11, %v2329_v43  ;;  %v2328_v17 = vmul.f32 %v7452_v48, %v2266_v61  ;;  %v2535_v44 = vld [vmem:[#allocation3 + $0x109] sm:$0xff]  ;;  %v2566_v50 = vld [vmem:[#allocation3 + $0xfa] sm:$0xff]  ;;  %v2565_v43 = vld [vmem:[#allocation3 + $0xf2] sm:$0xff] }
 0x36c   : > { %2473 = vst.msk [vmem:[#allocation3 + $0x139] sm:$0xff] %vm309_vm0, %v2397_v28  ;;  %2846 = vrot.lane.b32.xlu0 %v2535_v44, %s5505_s18  ;;  %v2568_v61 = vld [vmem:[#allocation3 + $0x112] sm:$0xff]  ;;  %v2567_v36 = vld [vmem:[#allocation3 + $0x10a] sm:$0xff]  ;;  %v7683_v28 = vpop.permute.xlu1 %2804 }
 0x36d   : > { %v2400_v3 = vmax.f32 %v2368_v18, 0.0  ;;  %v2367_v20 = vadd.f32 %v7457_v11, %v2328_v17  ;;  %v2538_v31 = vld [vmem:[#allocation3 + $0x129] sm:$0xff]  ;;  %v7686_v17 = vpop.permute.xlu0 %2802 }
 0x36e   : > { %2852 = vrot.lane.b32.xlu1 %v2538_v31, %s5505_s18  ;;  %v5277_v16 = vpop.f32.mrf.mxu0  ;;  %v2570_v18 = vld [vmem:[#allocation3 + $0x12a] sm:$0xff] }
 0x36f   : > { %2476 = vst.msk [vmem:[#allocation3 + $0x159] sm:$0xff] %vm309_vm0, %v2400_v3  ;;  %v2399_v58 = vmax.f32 %v2367_v20, 0.0  ;;  %v2331_v10 = vmul.f32 %v5277_v16, %v7452_v48  ;;  %v2537_v38 = vld [vmem:[#allocation3 + $0x121] sm:$0xff] }
 0x370   : > { %2850 = vrot.lane.b32.xlu0 %v2537_v38, %s5505_s18  ;;  %v2276_v19 = vpop.f32.mrf.mxu0  ;;  %v2569_v44 = vld [vmem:[#allocation3 + $0x122] sm:$0xff] }
 0x371   : > { %2475 = vst.msk [vmem:[#allocation3 + $0x151] sm:$0xff] %vm309_vm0, %v2399_v58  ;;  %v2370_v54 = vadd.f32 %v7457_v11, %v2331_v10  ;;  %v2330_v45 = vmul.f32 %v7452_v48, %v2276_v19  ;;  %v2540_v33 = vld [vmem:[#allocation3 + $0x141] sm:$0xff] }
 0x372   : > { %2856 = vrot.lane.b32.xlu1 %v2540_v33, %s5505_s18  ;;  %v2572_v20 = vld [vmem:[#allocation3 + $0x142] sm:$0xff] }
 0x373   : > { %v2402_v7 = vmax.f32 %v2370_v54, 0.0  ;;  %v2369_v5 = vadd.f32 %v7457_v11, %v2330_v45  ;;  %v2539_v37 = vld [vmem:[#allocation3 + $0x139] sm:$0xff] }
 0x374   : > { %2854 = vrot.lane.b32.xlu0 %v2539_v37, %s5505_s18  ;;  %v2571_v58 = vld [vmem:[#allocation3 + $0x13a] sm:$0xff] }
 0x375   : > { %2478 = vst.msk [vmem:[#allocation3 + $0x171] sm:$0xff] %vm309_vm0, %v2402_v7  ;;  %v2401_v21 = vmax.f32 %v2369_v5, 0.0  ;;  %v7708_v5 = vld [vmem:[#allocation3 + $0x20] sm:$0xff] }
 0x376   : > { %v2542_v14 = vld [vmem:[#allocation3 + $0x159] sm:$0xff]  ;;  %v5280_v59 = vpop.f32.mrf.mxu0 }
 0x377   : > { %2860 = vrot.lane.b32.xlu1 %v2542_v14, %s5505_s18  ;;  %2477 = vst.msk [vmem:[#allocation3 + $0x169] sm:$0xff] %vm309_vm0, %v2401_v21  ;;  %v2333_v56 = vmul.f32 %v5280_v59, %v7452_v48  ;;  %v2574_v10 = vld [vmem:[#allocation3 + $0x15a] sm:$0xff] }
 0x378   : > { %v2541_v63 = vld [vmem:[#allocation3 + $0x151] sm:$0xff]  ;;  %v2286_v4 = vpop.f32.mrf.mxu0 }
 0x379   : > { %2858 = vrot.lane.b32.xlu0 %v2541_v63, %s5505_s18  ;;  %v2372_v23 = vadd.f32 %v7457_v11, %v2333_v56  ;;  %v2332_v30 = vmul.f32 %v7452_v48, %v2286_v4  ;;  %v7614_v48 = vld [vmem:[#allocation3 + $0x22] sm:$0xff]  ;;  %v2573_v19 = vld [vmem:[#allocation3 + $0x152] sm:$0xff] }
 0x37a   : > { %v7714_v21 = vld [vmem:[#allocation3 + $0x18] sm:$0xff]  ;;  %v7726_v63 = vld [vmem:[#allocation3 + $0x30] sm:$0xff] }
 0x37b   : > { %v2404_v52 = vmax.f32 %v2372_v23, 0.0  ;;  %v2371_v46 = vadd.f32 %v7457_v11, %v2332_v30  ;;  %v7618_v11 = vld [vmem:[#allocation3 + $0x1a] sm:$0xff]  ;;  %v7732_v23 = vld [vmem:[#allocation3 + $0x50] sm:$0xff] }
 0x37c   : > { %v2544_v41 = vld [vmem:[#allocation3 + $0x171] sm:$0xff] }
 0x37d   : > { %2480 = vst.msk [vmem:[#allocation3 + $0x189] sm:$0xff] %vm309_vm0, %v2404_v52  ;;  %v2403_v35 = vmax.f32 %v2371_v46, 0.0  ;;  %2864 = vrot.lane.b32.xlu1 %v2544_v41, %s5505_s18  ;;  %v2576_v45 = vld [vmem:[#allocation3 + $0x172] sm:$0xff]  ;;  %v7738_v52 = vld [vmem:[#allocation3 + $0x48] sm:$0xff] }
 0x37e   : > { %v2543_v2 = vld [vmem:[#allocation3 + $0x169] sm:$0xff]  ;;  %v7720_v59 = vld [vmem:[#allocation3 + $0x38] sm:$0xff] }
 0x37f   : > { %2479 = vst.msk [vmem:[#allocation3 + $0x181] sm:$0xff] %vm309_vm0, %v2403_v35  ;;  %2862 = vrot.lane.b32.xlu0 %v2543_v2, %s5505_s18  ;;  %v2575_v7 = vld [vmem:[#allocation3 + $0x16a] sm:$0xff]  ;;  %v7750_v2 = vld [vmem:[#allocation3 + $0x60] sm:$0xff] }
 0x380   : > { %v7744_v41 = vld [vmem:[#allocation3 + $0x68] sm:$0xff] }
 0x381   : > { %2932 = vrot.lane.b32.xlu1 %v2546_v40, %s5506_s19 }
 0x383   : > { %2930 = vrot.lane.b32.xlu0 %v2545_v8, %s5506_s19  ;;  %v7756_v8 = vld [vmem:[#allocation3 + $0x80] sm:$0xff] }
 0x385   : > { %2936 = vrot.lane.b32.xlu1 %v7614_v48, %s5506_s19 }
 0x387   : > { %2934 = vrot.lane.b32.xlu0 %v7618_v11, %s5506_s19 }
 0x389   : > { %2940 = vrot.lane.b32.xlu1 %v7622_v13, %s5506_s19 }
 0x38b   : > { %2938 = vrot.lane.b32.xlu0 %v7626_v57, %s5506_s19 }
 0x38d   : > { %2944 = vrot.lane.b32.xlu1 %v7630_v25, %s5506_s19 }
 0x38f   : > { %2942 = vrot.lane.b32.xlu0 %v7634_v55, %s5506_s19 }
 0x391   : > { %2948 = vrot.lane.b32.xlu1 %v7638_v53, %s5506_s19 }
 0x393   : > { %2946 = vrot.lane.b32.xlu0 %v7642_v9, %s5506_s19 }
 0x395   : > { %2952 = vrot.lane.b32.xlu1 %v7646_v24, %s5506_s19 }
 0x397   : > { %2950 = vrot.lane.b32.xlu0 %v7650_v47, %s5506_s19 }
 0x399   : > { %2956 = vrot.lane.b32.xlu1 %v7654_v1, %s5506_s19 }
 0x39b   : > { %2954 = vrot.lane.b32.xlu0 %v7658_v34, %s5506_s19 }
 0x39d   : > { %2960 = vrot.lane.b32.xlu1 %v7662_v39, %s5506_s19 }
 0x39f   : > { %2958 = vrot.lane.b32.xlu0 %v7666_v49, %s5506_s19 }
 0x3a1   : > { %2964 = vrot.lane.b32.xlu1 %v7670_v60, %s5506_s19 }
 0x3a3   : > { %2962 = vrot.lane.b32.xlu0 %v7674_v42, %s5506_s19 }
 0x3a5   : > { %2968 = vrot.lane.b32.xlu1 %v2564_v32, %s5506_s19 }
 0x3a7   : > { %2966 = vrot.lane.b32.xlu0 %v2563_v29, %s5506_s19  ;;  %v7762_v29 = vld [vmem:[#allocation3 + $0x78] sm:$0xff] }
 0x3a9   : > { %2972 = vrot.lane.b32.xlu1 %v2566_v50, %s5506_s19 }
 0x3ab   : > { %2970 = vrot.lane.b32.xlu0 %v2565_v43, %s5506_s19  ;;  %v7768_v43 = vld [vmem:[#allocation3 + $0x98] sm:$0xff] }
 0x3ac   : > { %9844 = vst [vmem:[#allocation72_spill] sm:$0xff] %v7768_v43 }
 0x3ad   : > { %2976 = vrot.lane.b32.xlu1 %v2568_v61, %s5506_s19 }
 0x3af   : > { %2974 = vrot.lane.b32.xlu0 %v2567_v36, %s5506_s19  ;;  %v7774_v36 = vld [vmem:[#allocation3 + $0x90] sm:$0xff] }
 0x3b1   : > { %2980 = vrot.lane.b32.xlu1 %v2570_v18, %s5506_s19 }
 0x3b3   : > { %2978 = vrot.lane.b32.xlu0 %v2569_v44, %s5506_s19  ;;  %v7780_v44 = vld [vmem:[#allocation3 + $0xb0] sm:$0xff] }
 0x3b4   : > { %v7690_v3 = vpop.permute.xlu1 %2808 }
 0x3b5   : > { %2984 = vrot.lane.b32.xlu1 %v2572_v20, %s5506_s19 }
 0x3b6   : > { %v7693_v31 = vpop.permute.xlu0 %2806 }
 0x3b7   : > { %2982 = vrot.lane.b32.xlu0 %v2571_v58, %s5506_s19  ;;  %v7786_v58 = vld [vmem:[#allocation3 + $0xa8] sm:$0xff] }
 0x3b8   : > { %v7696_v16 = vpop.permute.xlu1 %2812  ;;  %9848 = vst [vmem:[#allocation74_spill] sm:$0xff] %v7786_v58 }
 0x3b9   : > { %2988 = vrot.lane.b32.xlu1 %v2574_v10, %s5506_s19 }
 0x3ba   : > { %v7699_v38 = vpop.permute.xlu0 %2810 }
 0x3bb   : > { %2986 = vrot.lane.b32.xlu0 %v2573_v19, %s5506_s19  ;;  %v7792_v19 = vld [vmem:[#allocation3 + $0xc8] sm:$0xff] }
 0x3bc   : > { %v7702_v54 = vpop.permute.xlu1 %2816 }
 0x3bd   : > { %9833 = vst [vmem:[#allocation8_spill] sm:$0xff] %v7702_v54  ;;  %2992 = vrot.lane.b32.xlu1 %v2576_v45, %s5506_s19 }
 0x3be   : > { %v7705_v33 = vpop.permute.xlu0 %2814 }
 0x3bf   : > { %2990 = vrot.lane.b32.xlu0 %v2575_v7, %s5506_s19  ;;  %v7798_v7 = vld [vmem:[#allocation3 + $0xc0] sm:$0xff] }
 0x3c0   : > { %v7710_v37 = vpop.permute.xlu1 %2820 }
 0x3c1   : > { %9834 = vst [vmem:[#allocation10_spill] sm:$0xff] %v7710_v37  ;;  %3060 = vrot.lane.b32.xlu1 %v7708_v5, %s5507_s20 }
 0x3c2   : > { %v7716_v14 = vpop.permute.xlu0 %2818 }
 0x3c3   : > { %9835 = vst [vmem:[#allocation65_spill] sm:$0xff] %v7716_v14  ;;  %3058 = vrot.lane.b32.xlu0 %v7714_v21, %s5507_s20  ;;  %v2509_v14 = vld [vmem:[#allocation3 + $0x150] sm:$0xff] }
 0x3c4   : > { %v7722_v56 = vpop.permute.xlu1 %2824 }
 0x3c5   : > { %9836 = vst [vmem:[#allocation12_spill] sm:$0xff] %v7722_v56  ;;  %3064 = vrot.lane.b32.xlu1 %v7720_v59, %s5507_s20  ;;  %v2508_v56 = vld [vmem:[#allocation3 + $0x140] sm:$0xff] }
 0x3c6   : > { %v7728_v4 = vpop.permute.xlu0 %2822 }
 0x3c7   : > { %9837 = vst [vmem:[#allocation70_spill] sm:$0xff] %v7728_v4  ;;  %3062 = vrot.lane.b32.xlu0 %v7726_v63, %s5507_s20  ;;  %v2507_v4 = vld [vmem:[#allocation3 + $0x138] sm:$0xff] }
 0x3c8   : > { %v7734_v30 = vpop.permute.xlu1 %2828 }
 0x3c9   : > { %9838 = vst [vmem:[#allocation14_spill] sm:$0xff] %v7734_v30  ;;  %3068 = vrot.lane.b32.xlu1 %v7732_v23, %s5507_s20 }
 0x3ca   : > { %v7740_v46 = vpop.permute.xlu0 %2826 }
 0x3cb   : > { %9839 = vst [vmem:[#allocation15_spill] sm:$0xff] %v7740_v46  ;;  %3066 = vrot.lane.b32.xlu0 %v7738_v52, %s5507_s20 }
 0x3cc   : > { %v7746_v35 = vpop.permute.xlu1 %2832 }
 0x3cd   : > { %9840 = vst [vmem:[#allocation69_spill] sm:$0xff] %v7746_v35  ;;  %3072 = vrot.lane.b32.xlu1 %v7744_v41, %s5507_s20  ;;  %v7828_v35 = vld [vmem:[#allocation3 + $0x110] sm:$0xff] }
 0x3ce   : > { %v7752_v40 = vpop.permute.xlu0 %2830  ;;  %9856 = vst [vmem:[#allocation78_spill] sm:$0xff] %v7828_v35 }
 0x3cf   : > { %9841 = vst [vmem:[#allocation73_spill] sm:$0xff] %v7752_v40  ;;  %3070 = vrot.lane.b32.xlu0 %v7750_v2, %s5507_s20 }
 0x3d0   : > { %v7758_v32 = vpop.permute.xlu1 %2836 }
 0x3d1   : > { %9842 = vst [vmem:[#allocation17_spill] sm:$0xff] %v7758_v32  ;;  %3076 = vrot.lane.b32.xlu1 %v7756_v8, %s5507_s20  ;;  %v7816_v32 = vld [vmem:[#allocation3 + $0xf8] sm:$0xff] }
 0x3d2   : > { %v7764_v50 = vpop.permute.xlu0 %2834 }
 0x3d3   : > { %9843 = vst [vmem:[#allocation18_spill] sm:$0xff] %v7764_v50  ;;  %3074 = vrot.lane.b32.xlu0 %v7762_v29, %s5507_s20  ;;  %v7822_v50 = vld [vmem:[#allocation3 + $0xf0] sm:$0xff] }
 0x3d4   : > { %v7770_v61 = vpop.permute.xlu1 %2840 }
 0x3d5   : > { %9845 = vst [vmem:[#allocation75_spill] sm:$0xff] %v7770_v61  ;;  %3080 = vrot.lane.b32.xlu1 %v7768_v43, %s5507_s20  ;;  %v7804_v61 = vld [vmem:[#allocation3 + $0xe0] sm:$0xff] }
 0x3d6   : > { %v7776_v18 = vpop.permute.xlu0 %2838 }
 0x3d7   : > { %9846 = vst [vmem:[#allocation20_spill] sm:$0xff] %v7776_v18  ;;  %3078 = vrot.lane.b32.xlu0 %v7774_v36, %s5507_s20  ;;  %v7810_v18 = vld [vmem:[#allocation3 + $0xd8] sm:$0xff] }
 0x3d8   : > { %v7782_v20 = vpop.permute.xlu1 %2844 }
 0x3d9   : > { %9847 = vst [vmem:[#allocation21_spill] sm:$0xff] %v7782_v20  ;;  %3084 = vrot.lane.b32.xlu1 %v7780_v44, %s5507_s20 }
 0x3da   : > { %v7788_v10 = vpop.permute.xlu0 %2842 }
 0x3db   : > { %9849 = vst [vmem:[#allocation23_spill] sm:$0xff] %v7788_v10  ;;  %3082 = vrot.lane.b32.xlu0 %v7786_v58, %s5507_s20 }
 0x3dc   : > { %v7794_v45 = vpop.permute.xlu1 %2848 }
 0x3dd   : > { %9850 = vst [vmem:[#allocation25_spill] sm:$0xff] %v7794_v45  ;;  %3088 = vrot.lane.b32.xlu1 %v7792_v19, %s5507_s20 }
 0x3de   : > { %v7800_v20 = vpop.permute.xlu0 %2846 }
 0x3df   : > { %9851 = vst [vmem:[#allocation76_spill] sm:$0xff] %v7800_v20  ;;  %3086 = vrot.lane.b32.xlu0 %v7798_v7, %s5507_s20 }
 0x3e0   : > { %v7806_v10 = vpop.permute.xlu1 %2852 }
 0x3e1   : > { %9852 = vst [vmem:[#allocation27_spill] sm:$0xff] %v7806_v10  ;;  %3092 = vrot.lane.b32.xlu1 %v7804_v61, %s5507_s20 }
 0x3e2   : > { %v7812_v45 = vpop.permute.xlu0 %2850 }
 0x3e3   : > { %9853 = vst [vmem:[#allocation29_spill] sm:$0xff] %v7812_v45  ;;  %3090 = vrot.lane.b32.xlu0 %v7810_v18, %s5507_s20  ;;  %v7832_v45 = vld [vmem:[#allocation3 + $0x108] sm:$0xff] }
 0x3e4   : > { %v7818_v20 = vpop.permute.xlu1 %2856  ;;  %9857 = vst [vmem:[#allocation98_spill] sm:$0xff] %v7832_v45 }
 0x3e5   : > { %9854 = vst [vmem:[#allocation58_spill] sm:$0xff] %v7818_v20  ;;  %3096 = vrot.lane.b32.xlu1 %v7816_v32, %s5507_s20  ;;  %v7838_v20 = vld [vmem:[#allocation3 + $0x128] sm:$0xff] }
 0x3e6   : > { %v7824_v10 = vpop.permute.xlu0 %2854  ;;  %9859 = vst [vmem:[#allocation159_spill] sm:$0xff] %v7838_v20 }
 0x3e7   : > { %9855 = vst [vmem:[#allocation135_spill] sm:$0xff] %v7824_v10  ;;  %3094 = vrot.lane.b32.xlu0 %v7822_v50, %s5507_s20  ;;  %v7844_v10 = vld [vmem:[#allocation3 + $0x120] sm:$0xff] }
 0x3e8   : > { %9861 = vst [vmem:[#allocation9_spill] sm:$0xff] %v7844_v10 }
 0x3e9   : > { %3100 = vrot.lane.b32.xlu1 %v7828_v35, %s5507_s20  ;;  %v7834_v40 = vpop.permute.xlu1 %2860 }
 0x3ea   : > { %9858 = vst [vmem:[#allocation137_spill] sm:$0xff] %v7834_v40 }
 0x3eb   : > { %3098 = vrot.lane.b32.xlu0 %v7832_v45, %s5507_s20  ;;  %v7840_v30 = vpop.permute.xlu0 %2858 }
 0x3ec   : > { %9860 = vst [vmem:[#allocation100_spill] sm:$0xff] %v7840_v30  ;;  %v2510_v30 = vld [vmem:[#allocation3 + $0x158] sm:$0xff] }
 0x3ed   : > { %3104 = vrot.lane.b32.xlu1 %v7838_v20, %s5507_s20 }
 0x3ef   : > { %v7846_v46 = vpop.permute.xlu1 %2864  ;;  %3102 = vrot.lane.b32.xlu0 %v7844_v10, %s5507_s20  ;;  %v2512_v10 = vld [vmem:[#allocation3 + $0x170] sm:$0xff] }
 0x3f0   : > { %9862 = vst [vmem:[#allocation161_spill] sm:$0xff] %v7846_v46 }
 0x3f1   : > { %3108 = vrot.lane.b32.xlu1 %v2508_v56, %s5507_s20  ;;  %v7851_v40 = vpop.permute.xlu0 %2862 }
 0x3f2   : > { %9863 = vst [vmem:[#allocation31_spill] sm:$0xff] %v7851_v40  ;;  %v2511_v40 = vld [vmem:[#allocation3 + $0x168] sm:$0xff] }
 0x3f3   : > { %v7853_v37 = vpop.permute.xlu1 %2932  ;;  %3106 = vrot.lane.b32.xlu0 %v2507_v4, %s5507_s20  ;;  %v2608_v4 = vld [vmem:[#allocation3 + $0x188] sm:$0xff] }
 0x3f5   : > { %3112 = vrot.lane.b32.xlu1 %v2510_v30, %s5507_s20  ;;  %v7857_v20 = vpop.permute.xlu0 %2930  ;;  %v2607_v30 = vld [vmem:[#allocation3 + $0x180] sm:$0xff] }
 0x3f7   : > { %v7859_v46 = vpop.permute.xlu1 %2936  ;;  %3110 = vrot.lane.b32.xlu0 %v2509_v14, %s5507_s20 }
 0x3f9   : > { %3116 = vrot.lane.b32.xlu1 %v2512_v10, %s5507_s20  ;;  %v7863_v56 = vpop.permute.xlu0 %2934  ;;  %v4054_v10 = vld [vmem:[%s9387_s4 + $0x20] sm:$0xf] }
 0x3fa   : > { %5281 = vmatprep.subr.msk.mxu1 %vm2066_vm3, %v4054_v10 }
 0x3fb   : > { %v7865_v54 = vpop.permute.xlu1 %2940  ;;  %3114 = vrot.lane.b32.xlu0 %v2511_v40, %s5507_s20  ;;  %5282 = vmatpush3.msk.msra.mxu1 %vm2066_vm3, %v4054_v10  ;;  %v4051_v10 = vld [vmem:[%s9387_s4 + $0x8] sm:$0xff]  ;;  %vm4524_vm3 = vcmask 1047559  }
 0x3fd   : > { %v7868_v45 = vpop.permute.xlu0 %2938  ;;  %3120 = vrot.lane.b32.xlu1 %v2608_v4, %s5507_s20  ;;  %v4053_v4 = vld [vmem:[%s9387_s4 + $0x18] sm:$0xff] }
 0x3fe   : > { %5283 = vmatprep.subr.mxu1 %v4053_v4 }
 0x3ff   : > { %v7871_v35 = vpop.permute.xlu1 %2944  ;;  %3118 = vrot.lane.b32.xlu0 %v2607_v30, %s5507_s20  ;;  %5284 = vmatpush3.msra.mxu1 %v4053_v4  ;;  %v4050_v4 = vld [vmem:[%s9387_s4] sm:$0xff] }
 0x401   : > { %v7874_v14 = vpop.permute.xlu0 %2942  ;;  %3188 = vrot.lane.b32.xlu1 %v7476_v26, %s5508_s21  ;;  %v4052_v26 = vld [vmem:[%s9387_s4 + $0x10] sm:$0xff] }
 0x402   : > { %5285 = vmatprep.subr.mxu1 %v4052_v26 }
 0x403   : > { %v7881_v40 = vpop.permute.xlu1 %2948  ;;  %3186 = vrot.lane.b32.xlu0 %v7483_v0, %s5508_s21  ;;  %5286 = vmatpush3.msra.mxu1 %v4052_v26 }
 0x404   : > { %9864 = vst [vmem:[#allocation13_spill] sm:$0xff] %v7881_v40  ;;  %5287 = vmatprep.subr.mxu1 %v4051_v10 }
 0x405   : > { %v7890_v30 = vpop.permute.xlu0 %2946  ;;  %3192 = vrot.lane.b32.xlu1 %v7490_v27, %s5508_s21  ;;  %5288 = vmatpush3.msra.mxu1 %v4051_v10 }
 0x406   : > { %9865 = vst [vmem:[#allocation56_spill] sm:$0xff] %v7890_v30  ;;  %5289 = vmatprep.subr.mxu1 %v4050_v4 }
 0x407   : > { %v7897_v0 = vpop.permute.xlu1 %2952  ;;  %3190 = vrot.lane.b32.xlu0 %v7497_v51, %s5508_s21  ;;  %5290 = vmatpush3.msra.mxu1 %v4050_v4 }
 0x408   : > { %9866 = vst [vmem:[#allocation33_spill] sm:$0xff] %v7897_v0 }
 0x409   : > { %v7904_v40 = vpop.permute.xlu0 %2950  ;;  %3314 = vrot.lane.b32.xlu1 %v7618_v11, %s5509_s22 }
 0x40b   : > { %v7911_v0 = vpop.permute.xlu1 %2956  ;;  %3194 = vrot.lane.b32.xlu0 %v7511_v12, %s5508_s21 }
 0x40c   : > { %9867 = vst [vmem:[#allocation77_spill] sm:$0xff] %v7911_v0 }
 0x40d   : > { %v7915_v30 = vpop.permute.xlu0 %2954  ;;  %3442 = vrot.lane.b32.xlu1 %v7726_v63, %s5510_s23 }
 0x40f   : > { %v7919_v26 = vpop.permute.xlu1 %2960  ;;  %3316 = vrot.lane.b32.xlu0 %v7614_v48, %s5509_s22 }
 0x410   : > { %9868 = vst [vmem:[#allocation62_spill] sm:$0xff] %v7919_v26 }
 0x411   : > { %v7923_v11 = vpop.permute.xlu0 %2958  ;;  %3570 = vrot.lane.b32.xlu1 %v7497_v51, %s5511_s29 }
 0x412   : > { %9869 = vst [vmem:[#allocation136_spill] sm:$0xff] %v7923_v11 }
 0x413   : > { %v7927_v10 = vpop.permute.xlu1 %2964  ;;  %3444 = vrot.lane.b32.xlu0 %v7720_v59, %s5510_s23 }
 0x414   : > { %9870 = vst [vmem:[#allocation80_spill] sm:$0xff] %v7927_v10 }
 0x415   : > { %v7931_v4 = vpop.permute.xlu0 %2962  ;;  %3698 = vrot.lane.b32.xlu1 %v7626_v57, %s5512_s14 }
 0x416   : > { %9871 = vst [vmem:[#allocation99_spill] sm:$0xff] %v7931_v4 }
 0x417   : > { %v7935_v0 = vpop.permute.xlu1 %2968  ;;  %3572 = vrot.lane.b32.xlu0 %v7490_v27, %s5511_s29 }
 0x418   : > { %9872 = vst [vmem:[#allocation139_spill] sm:$0xff] %v7935_v0 }
 0x419   : > { %v7939_v48 = vpop.permute.xlu0 %2966  ;;  %3700 = vrot.lane.b32.xlu1 %v7622_v13, %s5512_s14 }
 0x41a   : > { %9873 = vst [vmem:[#allocation160_spill] sm:$0xff] %v7939_v48 }
 0x41b   : > { %v7943_v51 = vpop.permute.xlu1 %2972  ;;  %3318 = vrot.lane.b32.xlu0 %v7626_v57, %s5509_s22 }
 0x41c   : > { %9874 = vst [vmem:[#allocation102_spill] sm:$0xff] %v7943_v51 }
 0x41d   : > { %v7947_v10 = vpop.permute.xlu0 %2970  ;;  %3446 = vrot.lane.b32.xlu1 %v7738_v52, %s5510_s23 }
 0x41e   : > { %9875 = vst [vmem:[#allocation11_spill] sm:$0xff] %v7947_v10  ;;  %v2713_v10 = vld [vmem:[#allocation3 + $0x81] sm:$0xff] }
 0x41f   : > { %v7951_v4 = vpop.permute.xlu1 %2976  ;;  %3320 = vrot.lane.b32.xlu0 %v7622_v13, %s5509_s22 }
 0x420   : > { %9876 = vst [vmem:[#allocation163_spill] sm:$0xff] %v7951_v4 }
 0x421   : > { %v7955_v27 = vpop.permute.xlu0 %2974  ;;  %3574 = vrot.lane.b32.xlu1 %v7511_v12, %s5511_s29 }
 0x422   : > { %9877 = vst [vmem:[#allocation35_spill] sm:$0xff] %v7955_v27 }
 0x423   : > { %v7959_v0 = vpop.permute.xlu1 %2980  ;;  %3448 = vrot.lane.b32.xlu0 %v7732_v23, %s5510_s23 }
 0x424   : > { %9878 = vst [vmem:[#allocation19_spill] sm:$0xff] %v7959_v0 }
 0x425   : > { %v7963_v57 = vpop.permute.xlu0 %2978  ;;  %3702 = vrot.lane.b32.xlu1 %v7634_v55, %s5512_s14 }
 0x426   : > { %9879 = vst [vmem:[#allocation60_spill] sm:$0xff] %v7963_v57 }
 0x427   : > { %v7967_v51 = vpop.permute.xlu1 %2984  ;;  %3576 = vrot.lane.b32.xlu0 %v7504_v6, %s5511_s29 }
 0x428   : > { %9880 = vst [vmem:[#allocation37_spill] sm:$0xff] %v7967_v51 }
 0x429   : > { %v7971_v13 = vpop.permute.xlu0 %2982  ;;  %3322 = vrot.lane.b32.xlu1 %v7634_v55, %s5509_s22 }
 0x42a   : > { %9881 = vst [vmem:[#allocation79_spill] sm:$0xff] %v7971_v13 }
 0x42b   : > { %v7975_v12 = vpop.permute.xlu1 %2988  ;;  %3196 = vrot.lane.b32.xlu0 %v7504_v6, %s5508_s21 }
 0x42c   : > { %9882 = vst [vmem:[#allocation66_spill] sm:$0xff] %v7975_v12 }
 0x42d   : > { %v7979_v0 = vpop.permute.xlu0 %2986  ;;  %3324 = vrot.lane.b32.xlu1 %v7630_v25, %s5509_s22 }
 0x42e   : > { %9883 = vst [vmem:[#allocation138_spill] sm:$0xff] %v7979_v0 }
 0x42f   : > { %v7983_v57 = vpop.permute.xlu1 %2992  ;;  %3704 = vrot.lane.b32.xlu0 %v7630_v25, %s5512_s14 }
 0x430   : > { %9884 = vst [vmem:[#allocation82_spill] sm:$0xff] %v7983_v57 }
 0x431   : > { %v7987_v51 = vpop.permute.xlu0 %2990  ;;  %3452 = vrot.lane.b32.xlu1 %v7744_v41, %s5510_s23 }
 0x432   : > { %9885 = vst [vmem:[#allocation101_spill] sm:$0xff] %v7987_v51 }
 0x433   : > { %v7991_v55 = vpop.permute.xlu1 %3060  ;;  %3450 = vrot.lane.b32.xlu0 %v7750_v2, %s5510_s23 }
 0x435   : > { %v7995_v6 = vpop.permute.xlu0 %3058  ;;  %3198 = vrot.lane.b32.xlu1 %v7525_v62, %s5508_s21 }
 0x437   : > { %v7999_v12 = vpop.permute.xlu1 %3064  ;;  %3578 = vrot.lane.b32.xlu0 %v7525_v62, %s5511_s29 }
 0x439   : > { %v8003_v25 = vpop.permute.xlu0 %3062  ;;  %3706 = vrot.lane.b32.xlu1 %v7642_v9, %s5512_s14 }
 0x43b   : > { %v8007_v51 = vpop.permute.xlu1 %3068  ;;  %3580 = vrot.lane.b32.xlu0 %v7518_v22, %s5511_s29 }
 0x43d   : > { %v8011_v57 = vpop.permute.xlu0 %3066  ;;  %3326 = vrot.lane.b32.xlu1 %v7642_v9, %s5509_s22 }
 0x43f   : > { %v8015_v0 = vpop.permute.xlu1 %3072  ;;  %3200 = vrot.lane.b32.xlu0 %v7518_v22, %s5508_s21 }
 0x441   : > { %v8019_v62 = vpop.permute.xlu0 %3070  ;;  %3328 = vrot.lane.b32.xlu1 %v7638_v53, %s5509_s22 }
 0x443   : > { %v8023_v13 = vpop.permute.xlu1 %3076  ;;  %3708 = vrot.lane.b32.xlu0 %v7638_v53, %s5512_s14 }
 0x445   : > { %v8027_v4 = vpop.permute.xlu0 %3074  ;;  %3456 = vrot.lane.b32.xlu1 %v7756_v8, %s5510_s23 }
 0x447   : > { %v8031_v9 = vpop.permute.xlu1 %3080  ;;  %3454 = vrot.lane.b32.xlu0 %v7762_v29, %s5510_s23 }
 0x449   : > { %v8035_v22 = vpop.permute.xlu0 %3078  ;;  %3202 = vrot.lane.b32.xlu1 %v7536_v15, %s5508_s21 }
 0x44b   : > { %v8039_v27 = vpop.permute.xlu1 %3084  ;;  %3582 = vrot.lane.b32.xlu0 %v7536_v15, %s5511_s29 }
 0x44c   : > { %9886 = vst [vmem:[#allocation141_spill] sm:$0xff] %v8039_v27 }
 0x44d   : > { %v8043_v53 = vpop.permute.xlu0 %3082  ;;  %3710 = vrot.lane.b32.xlu1 %v7650_v47, %s5512_s14 }
 0x44e   : > { %9887 = vst [vmem:[#allocation162_spill] sm:$0xff] %v8043_v53 }
 0x44f   : > { %v8047_v48 = vpop.permute.xlu1 %3088  ;;  %3584 = vrot.lane.b32.xlu0 %v2713_v10, %s5511_s29 }
 0x450   : > { %9888 = vst [vmem:[#allocation104_spill] sm:$0xff] %v8047_v48 }
 0x451   : > { %v8050_v26 = vpop.permute.xlu0 %3086  ;;  %3330 = vrot.lane.b32.xlu1 %v7650_v47, %s5509_s22 }
 0x452   : > { %9889 = vst [vmem:[#allocation16_spill] sm:$0xff] %v8050_v26 }
 0x453   : > { %v8054_v11 = vpop.permute.xlu1 %3092  ;;  %3204 = vrot.lane.b32.xlu0 %v2713_v10, %s5508_s21  ;;  %v2619_v10 = vld [vmem:[#allocation3 + $0x91] sm:$0xff] }
 0x454   : > { %9890 = vst [vmem:[#allocation165_spill] sm:$0xff] %v8054_v11 }
 0x455   : > { %v8057_v15 = vpop.permute.xlu0 %3090  ;;  %3332 = vrot.lane.b32.xlu1 %v7646_v24, %s5509_s22 }
 0x456   : > { %9891 = vst [vmem:[#allocation39_spill] sm:$0xff] %v8057_v15 }
 0x457   : > { %v8061_v27 = vpop.permute.xlu1 %3096  ;;  %3712 = vrot.lane.b32.xlu0 %v7646_v24, %s5512_s14 }
 0x458   : > { %9892 = vst [vmem:[#allocation24_spill] sm:$0xff] %v8061_v27  ;;  %v2715_v27 = vld [vmem:[#allocation3 + $0x99] sm:$0xff] }
 0x459   : > { %v8065_v48 = vpop.permute.xlu0 %3094  ;;  %3460 = vrot.lane.b32.xlu1 %v7768_v43, %s5510_s23 }
 0x45a   : > { %9893 = vst [vmem:[#allocation64_spill] sm:$0xff] %v8065_v48 }
 0x45b   : > { %v8069_v47 = vpop.permute.xlu1 %3100  ;;  %3458 = vrot.lane.b32.xlu0 %v7774_v36, %s5510_s23 }
 0x45c   : > { %9894 = vst [vmem:[#allocation41_spill] sm:$0xff] %v8069_v47 }
 0x45d   : > { %v8073_v11 = vpop.permute.xlu0 %3098  ;;  %3206 = vrot.lane.b32.xlu1 %v2619_v10, %s5508_s21 }
 0x45e   : > { %9895 = vst [vmem:[#allocation81_spill] sm:$0xff] %v8073_v11 }
 0x45f   : > { %v8076_v15 = vpop.permute.xlu1 %3104  ;;  %3586 = vrot.lane.b32.xlu0 %v2619_v10, %s5511_s29 }
 0x460   : > { %9896 = vst [vmem:[#allocation71_spill] sm:$0xff] %v8076_v15 }
 0x461   : > { %v8079_v24 = vpop.permute.xlu0 %3102  ;;  %3714 = vrot.lane.b32.xlu1 %v7658_v34, %s5512_s14 }
 0x462   : > { %9897 = vst [vmem:[#allocation140_spill] sm:$0xff] %v8079_v24  ;;  %v2482_v24 = vld [vmem:[#allocation3 + $0x8] sm:$0xff] }
 0x463   : > { %v8083_v48 = vpop.permute.xlu1 %3108  ;;  %3588 = vrot.lane.b32.xlu0 %v2715_v27, %s5511_s29 }
 0x464   : > { %9898 = vst [vmem:[#allocation84_spill] sm:$0xff] %v8083_v48 }
 0x465   : > { %v8086_v47 = vpop.permute.xlu0 %3106  ;;  %3334 = vrot.lane.b32.xlu1 %v7658_v34, %s5509_s22 }
 0x466   : > { %9899 = vst [vmem:[#allocation103_spill] sm:$0xff] %v8086_v47 }
 0x467   : > { %v8090_v11 = vpop.permute.xlu1 %3112  ;;  %3208 = vrot.lane.b32.xlu0 %v2715_v27, %s5508_s21  ;;  %v2621_v27 = vld [vmem:[#allocation3 + $0xa9] sm:$0xff] }
 0x468   : > { %9900 = vst [vmem:[#allocation143_spill] sm:$0xff] %v8090_v11 }
 0x469   : > { %v8093_v10 = vpop.permute.xlu0 %3110  ;;  %3336 = vrot.lane.b32.xlu1 %v7654_v1, %s5509_s22 }
 0x46a   : > { %9901 = vst [vmem:[#allocation164_spill] sm:$0xff] %v8093_v10 }
 0x46b   : > { %v8097_v15 = vpop.permute.xlu1 %3116  ;;  %3716 = vrot.lane.b32.xlu0 %v7654_v1, %s5512_s14 }
 0x46c   : > { %9902 = vst [vmem:[#allocation106_spill] sm:$0xff] %v8097_v15  ;;  %v2717_v15 = vld [vmem:[#allocation3 + $0xb1] sm:$0xff] }
 0x46d   : > { %v8101_v48 = vpop.permute.xlu0 %3114  ;;  %3464 = vrot.lane.b32.xlu1 %v7780_v44, %s5510_s23 }
 0x46e   : > { %9903 = vst [vmem:[#allocation22_spill] sm:$0xff] %v8101_v48 }
 0x46f   : > { %v8105_v34 = vpop.permute.xlu1 %3120  ;;  %3462 = vrot.lane.b32.xlu0 %v7786_v58, %s5510_s23 }
 0x470   : > { %9904 = vst [vmem:[#allocation167_spill] sm:$0xff] %v8105_v34 }
 0x471   : > { %3210 = vrot.lane.b32.xlu1 %v2621_v27, %s5508_s21  ;;  %v8110_v11 = vpop.permute.xlu0 %3118 }
 0x472   : > { %9905 = vst [vmem:[#allocation43_spill] sm:$0xff] %v8110_v11  ;;  %v2481_v11 = vld [vmem:[#allocation3] sm:$0xff] }
 0x473   : > { %v3189_v10 = vpop.permute.xlu1 %3188  ;;  %3590 = vrot.lane.b32.xlu0 %v2621_v27, %s5511_s29  ;;  %v3794_v26 = vsel %vm309_vm0, %v2481_v11, %v7686_v17  ;;  %v2623_v17 = vld [vmem:[#allocation3 + $0xc1] sm:$0xff] }
 0x475   : > { %3718 = vrot.lane.b32.xlu1 %v7666_v49, %s5512_s14  ;;  %v3187_v1 = vpop.permute.xlu0 %3186 }
 0x477   : > { %v8115_v48 = vpop.permute.xlu1 %3192  ;;  %3592 = vrot.lane.b32.xlu0 %v2717_v15, %s5511_s29 }
 0x479   : > { %3338 = vrot.lane.b32.xlu1 %v7666_v49, %s5509_s22  ;;  %v3191_v44 = vpop.permute.xlu0 %3190 }
 0x47b   : > { %v3315_v34 = vpop.permute.xlu1 %3314  ;;  %3212 = vrot.lane.b32.xlu0 %v2717_v15, %s5508_s21  ;;  %v3826_v15 = vsel %vm1733_vm4, %v3794_v26, %v7857_v20 }
 0x47c   : > { %v3858_v58 = vsel %vm1766_vm5, %v3826_v15, %v7995_v6 }
 0x47d   : > { %3340 = vrot.lane.b32.xlu1 %v7662_v39, %s5509_s22  ;;  %v8123_v27 = vpop.permute.xlu0 %3194  ;;  %v3890_v53 = vsel %vm1799_vm6, %v3858_v58, %v3187_v1 }
 0x47e   : > { %v3922_v11 = vsel %vm1832_vm7, %v3890_v53, %v3315_v34 }
 0x47f   : > { %v3443_v47 = vpop.permute.xlu1 %3442  ;;  %3720 = vrot.lane.b32.xlu0 %v7662_v39, %s5512_s14  ;;  %v3795_v39 = vsel %vm309_vm0, %v2482_v24, %v7683_v28 }
 0x480   : > { %v3954_v6 = vsel %vm1865_vm8, %v3922_v11, %v3443_v47  ;;  %v2751_v11 = vld [vmem:[#allocation3 + $0xca] sm:$0xff] }
 0x481   : > { %3468 = vrot.lane.b32.xlu1 %v7792_v19, %s5510_s23  ;;  %v3317_v49 = vpop.permute.xlu0 %3316  ;;  %v3827_v19 = vsel %vm1733_vm4, %v3795_v39, %v7853_v37 }
 0x482   : > { %v3859_v26 = vsel %vm1766_vm5, %v3827_v19, %v7991_v55 }
 0x483   : > { %v3571_v43 = vpop.permute.xlu1 %3570  ;;  %3466 = vrot.lane.b32.xlu0 %v7798_v7, %s5510_s23  ;;  %v3891_v7 = vsel %vm1799_vm6, %v3859_v26, %v3189_v10  ;;  %v2719_v10 = vld [vmem:[#allocation3 + $0xc9] sm:$0xff] }
 0x484   : > { %v3986_v28 = vsel %vm1898_vm9, %v3954_v6, %v3571_v43  ;;  %v3923_v58 = vsel %vm1832_vm7, %v3891_v7, %v3317_v49  ;;  %v3796_v49 = vsel %vm309_vm0, %v7714_v21, %v7693_v31 }
 0x485   : > { %3214 = vrot.lane.b32.xlu1 %v2623_v17, %s5508_s21  ;;  %v3445_v20 = vpop.permute.xlu0 %3444  ;;  %v3828_v39 = vsel %vm1733_vm4, %v3796_v49, %v7863_v56 }
 0x486   : > { %v3955_v53 = vsel %vm1865_vm8, %v3923_v58, %v3445_v20 }
 0x487   : > { %v3699_v24 = vpop.permute.xlu1 %3698  ;;  %3594 = vrot.lane.b32.xlu0 %v2623_v17, %s5511_s29  ;;  %v3860_v17 = vsel %vm1766_vm5, %v3828_v39, %v8003_v25 }
 0x488   : > { %v4018_v37 = vsel %vm1931_vm10, %v3986_v28, %v3699_v24  ;;  %v3892_v19 = vsel %vm1799_vm6, %v3860_v17, %v3191_v44  ;;  %v2625_v44 = vld [vmem:[#allocation3 + $0xd9] sm:$0xff] }
 0x489   : > { %3722 = vrot.lane.b32.xlu1 %v7674_v42, %s5512_s14  ;;  %5291 = vmatprep.mubr.msk.f32.mxu1 %vm1969_vm11, %v4018_v37  ;;  %v3573_v55 = vpop.permute.xlu0 %3572  ;;  %v2752_v24 = vld [vmem:[#allocation3 + $0xda] sm:$0xff] }
 0x48a   : > { %v3987_v47 = vsel %vm1898_vm9, %v3955_v53, %v3573_v55  ;;  %v2721_v53 = vld [vmem:[#allocation3 + $0xe1] sm:$0xff] }
 0x48b   : > { %v3701_v34 = vpop.permute.xlu1 %3700  ;;  %3596 = vrot.lane.b32.xlu0 %v2719_v10, %s5511_s29 }
 0x48c   : > { %v4019_v43 = vsel %vm1931_vm10, %v3987_v47, %v3701_v34  ;;  %v2658_v34 = vld [vmem:[#allocation3 + $0xe2] sm:$0xff] }
 0x48d   : > { %3342 = vrot.lane.b32.xlu1 %v7674_v42, %s5509_s22  ;;  %5292 = vmatmul.mubr.msk.f32.vlgmr.msra.gmra.mxu1 %vm1969_vm11, %v4019_v43  ;;  %v3319_v1 = vpop.permute.xlu0 %3318 }
 0x48e   : > { %v3924_v20 = vsel %vm1832_vm7, %v3892_v19, %v3319_v1  ;;  %v3799_v19 = vsel %vm309_vm0, %v7720_v59, %v7696_v16  ;;  %v2723_v59 = vld [vmem:[#allocation3 + $0xf9] sm:$0xff] }
 0x48f   : > { %v3447_v15 = vpop.permute.xlu1 %3446  ;;  %3216 = vrot.lane.b32.xlu0 %v2719_v10, %s5508_s21 }
 0x490   : > { %v3956_v21 = vsel %vm1865_vm8, %v3924_v20, %v3447_v15 }
 0x491   : > { %3344 = vrot.lane.b32.xlu1 %v7670_v60, %s5509_s22  ;;  %v3321_v42 = vpop.permute.xlu0 %3320 }
 0x493   : > { %v3575_v26 = vpop.permute.xlu1 %3574  ;;  %3724 = vrot.lane.b32.xlu0 %v2751_v11, %s5512_s14 }
 0x494   : > { %v3988_v56 = vsel %vm1898_vm9, %v3956_v21, %v3575_v26 }
 0x495   : > { %3472 = vrot.lane.b32.xlu1 %v7804_v61, %s5510_s23  ;;  %v3449_v31 = vpop.permute.xlu0 %3448  ;;  %v3797_v61 = vsel %vm309_vm0, %v7708_v5, %v7690_v3 }
 0x496   : > { %v3829_v28 = vsel %vm1733_vm4, %v3797_v61, %v7859_v46  ;;  %v2660_v61 = vld [vmem:[#allocation3 + $0xfa] sm:$0xff] }
 0x497   : > { %v3703_v25 = vpop.permute.xlu1 %3702  ;;  %3470 = vrot.lane.b32.xlu0 %v7810_v18, %s5510_s23  ;;  %v3861_v18 = vsel %vm1766_vm5, %v3829_v28, %v7999_v12 }
 0x498   : > { %v4020_v60 = vsel %vm1931_vm10, %v3988_v56, %v3703_v25  ;;  %v3893_v37 = vsel %vm1799_vm6, %v3861_v18, %v8115_v48  ;;  %v3798_v48 = vsel %vm309_vm0, %v7726_v63, %v7699_v38 }
 0x499   : > { %3218 = vrot.lane.b32.xlu1 %v2625_v44, %s5508_s21  ;;  %5294 = vmatprep.mubr.msk.f32.mxu1 %vm1969_vm11, %v4020_v60  ;;  %v3577_v6 = vpop.permute.xlu0 %3576  ;;  %v3925_v55 = vsel %vm1832_vm7, %v3893_v37, %v3321_v42  ;;  %v3830_v43 = vsel %vm1733_vm4, %v3798_v48, %v7868_v45 }
 0x49a   : > { %v3957_v5 = vsel %vm1865_vm8, %v3925_v55, %v3449_v31  ;;  %v3862_v49 = vsel %vm1766_vm5, %v3830_v43, %v8011_v57  ;;  %v2754_v31 = vld [vmem:[#allocation3 + $0xf2] sm:$0xff] }
 0x49b   : > { %v3323_v7 = vpop.permute.xlu1 %3322  ;;  %3598 = vrot.lane.b32.xlu0 %v2625_v44, %s5511_s29  ;;  %v3989_v46 = vsel %vm1898_vm9, %v3957_v5, %v3577_v6  ;;  %v3894_v15 = vsel %vm1799_vm6, %v3862_v49, %v8123_v27  ;;  %v2627_v27 = vld [vmem:[#allocation3 + $0xf1] sm:$0xff]  ;;  %v3800_v6 = vsel %vm309_vm0, %v7738_v52, %v7705_v33  ;;  %v9906_v33 = vld [vmem:[#allocation78_spill] sm:$0xff] }
 0x49c   : > { %v3926_v17 = vsel %vm1832_vm7, %v3894_v15, %v3323_v7  ;;  %v3832_v7 = vsel %vm1733_vm4, %v3800_v6, %v7874_v14  ;;  %v2629_v5 = vld [vmem:[#allocation3 + $0x109] sm:$0xff]  ;;  %v2725_v49 = vld [vmem:[#allocation3 + $0x111] sm:$0xff] }
 0x49d   : > { %3726 = vrot.lane.b32.xlu1 %v2752_v24, %s5512_s14  ;;  %v3197_v58 = vpop.permute.xlu0 %3196 }
 0x49f   : > { %v3325_v3 = vpop.permute.xlu1 %3324  ;;  %3600 = vrot.lane.b32.xlu0 %v2721_v53, %s5511_s29 }
 0x4a1   : > { %3346 = vrot.lane.b32.xlu1 %v2752_v24, %s5509_s22  ;;  %v3705_v47 = vpop.permute.xlu0 %3704  ;;  %v3864_v24 = vsel %vm1766_vm5, %v3832_v7, %v8019_v62 }
 0x4a2   : > { %v4021_v12 = vsel %vm1931_vm10, %v3989_v46, %v3705_v47  ;;  %v9908_v46 = vld [vmem:[#allocation8_spill] sm:$0xff] }
 0x4a3   : > { %v3453_v10 = vpop.permute.xlu1 %3452  ;;  %3220 = vrot.lane.b32.xlu0 %v2721_v53, %s5508_s21  ;;  %5295 = vmatmul.mubr.msk.f32.gmra.mxu1 %vm1969_vm11, %v4021_v12  ;;  %v3801_v47 = vsel %vm309_vm0, %v7732_v23, %v9908_v46 }
 0x4a5   : > { %3348 = vrot.lane.b32.xlu1 %v2658_v34, %s5509_s22  ;;  %v3451_v1 = vpop.permute.xlu0 %3450 }
 0x4a6   : > { %v3958_v38 = vsel %vm1865_vm8, %v3926_v17, %v3451_v1  ;;  %v2756_v1 = vld [vmem:[#allocation3 + $0x10a] sm:$0xff] }
 0x4a7   : > { %v3199_v39 = vpop.permute.xlu1 %3198  ;;  %3728 = vrot.lane.b32.xlu0 %v2658_v34, %s5512_s14 }
 0x4a8   : > { %v3896_v18 = vsel %vm1799_vm6, %v3864_v24, %v3199_v39  ;;  %v2758_v24 = vld [vmem:[#allocation3 + $0x122] sm:$0xff] }
 0x4a9   : > { %3476 = vrot.lane.b32.xlu1 %v7816_v32, %s5510_s23  ;;  %v3579_v63 = vpop.permute.xlu0 %3578  ;;  %v3831_v32 = vsel %vm1733_vm4, %v3799_v19, %v7865_v54 }
 0x4aa   : > { %v3990_v45 = vsel %vm1898_vm9, %v3958_v38, %v3579_v63  ;;  %v3863_v20 = vsel %vm1766_vm5, %v3831_v32, %v8007_v51 }
 0x4ab   : > { %v3707_v42 = vpop.permute.xlu1 %3706  ;;  %3474 = vrot.lane.b32.xlu0 %v7822_v50, %s5510_s23  ;;  %v3895_v50 = vsel %vm1799_vm6, %v3863_v20, %v3197_v58 }
 0x4ac   : > { %v4022_v57 = vsel %vm1931_vm10, %v3990_v45, %v3707_v42  ;;  %v3927_v21 = vsel %vm1832_vm7, %v3895_v50, %v3325_v3  ;;  %v9907_v3 = vld [vmem:[#allocation98_spill] sm:$0xff]  ;;  %v9909_v45 = vld [vmem:[#allocation65_spill] sm:$0xff] }
 0x4ad   : > { %3222 = vrot.lane.b32.xlu1 %v2627_v27, %s5508_s21  ;;  %5297 = vmatprep.mubr.msk.f32.mxu1 %vm1969_vm11, %v4022_v57  ;;  %v3581_v11 = vpop.permute.xlu0 %3580  ;;  %v3959_v54 = vsel %vm1865_vm8, %v3927_v21, %v3453_v10  ;;  %v3833_v10 = vsel %vm1733_vm4, %v3801_v47, %v7871_v35  ;;  %v3802_v42 = vsel %vm309_vm0, %v7750_v2, %v9909_v45  ;;  %v2662_v57 = vld [vmem:[#allocation3 + $0x112] sm:$0xff] }
 0x4ae   : > { %v3991_v25 = vsel %vm1898_vm9, %v3959_v54, %v3581_v11  ;;  %v3865_v48 = vsel %vm1766_vm5, %v3833_v10, %v8015_v0  ;;  %v9911_v2 = vld [vmem:[#allocation159_spill] sm:$0xff]  ;;  %v2631_v54 = vld [vmem:[#allocation3 + $0x121] sm:$0xff] }
 0x4af   : > { %v3327_v26 = vpop.permute.xlu1 %3326  ;;  %3602 = vrot.lane.b32.xlu0 %v2627_v27, %s5511_s29  ;;  %v9910_v27 = vld [vmem:[#allocation56_spill] sm:$0xff] }
 0x4b0   : > { %v3928_v37 = vsel %vm1832_vm7, %v3896_v18, %v3327_v26  ;;  %v3834_v19 = vsel %vm1733_vm4, %v3802_v42, %v9910_v27  ;;  %v2727_v18 = vld [vmem:[#allocation3 + $0x129] sm:$0xff]  ;;  %v2760_v42 = vld [vmem:[#allocation3 + $0x13a] sm:$0xff] }
 0x4b1   : > { %3730 = vrot.lane.b32.xlu1 %v2754_v31, %s5512_s14  ;;  %v3201_v16 = vpop.permute.xlu0 %3200  ;;  %v3866_v32 = vsel %vm1766_vm5, %v3834_v19, %v8027_v4 }
 0x4b2   : > { %v3897_v43 = vsel %vm1799_vm6, %v3865_v48, %v3201_v16 }
 0x4b3   : > { %v3329_v56 = vpop.permute.xlu1 %3328  ;;  %3604 = vrot.lane.b32.xlu0 %v2723_v59, %s5511_s29 }
 0x4b4   : > { %v3929_v15 = vsel %vm1832_vm7, %v3897_v43, %v3329_v56  ;;  %v9912_v56 = vld [vmem:[#allocation9_spill] sm:$0xff] }
 0x4b5   : > { %3350 = vrot.lane.b32.xlu1 %v2754_v31, %s5509_s22  ;;  %v3709_v51 = vpop.permute.xlu0 %3708 }
 0x4b6   : > { %v4023_v60 = vsel %vm1931_vm10, %v3991_v25, %v3709_v51  ;;  %v9913_v25 = vld [vmem:[#allocation10_spill] sm:$0xff] }
 0x4b7   : > { %v3457_v44 = vpop.permute.xlu1 %3456  ;;  %3224 = vrot.lane.b32.xlu0 %v2723_v59, %s5508_s21  ;;  %5298 = vmatmul.mubr.msk.f32.gmra.mxu1 %vm1969_vm11, %v4023_v60  ;;  %v3803_v51 = vsel %vm309_vm0, %v7744_v41, %v9913_v25 }
 0x4b8   : > { %v3961_v35 = vsel %vm1865_vm8, %v3929_v15, %v3457_v44  ;;  %v9914_v44 = vld [vmem:[#allocation13_spill] sm:$0xff]  ;;  %v9916_v15 = vld [vmem:[#allocation12_spill] sm:$0xff] }
 0x4b9   : > { %3352 = vrot.lane.b32.xlu1 %v2660_v61, %s5509_s22  ;;  %v3455_v28 = vpop.permute.xlu0 %3454  ;;  %v3835_v6 = vsel %vm1733_vm4, %v3803_v51, %v9914_v44  ;;  %v2699_v51 = vld [vmem:[#allocation3 + $0x158] sm:$0xff]  ;;  %v2698_v44 = vld [vmem:[#allocation3 + $0x150] sm:$0xff] }
 0x4ba   : > { %v3960_v53 = vsel %vm1865_vm8, %v3928_v37, %v3455_v28 }
 0x4bb   : > { %v3203_v58 = vpop.permute.xlu1 %3202  ;;  %3732 = vrot.lane.b32.xlu0 %v2660_v61, %s5512_s14  ;;  %v3867_v61 = vsel %vm1766_vm5, %v3835_v6, %v8023_v13 }
 0x4bc   : > { %v3898_v20 = vsel %vm1799_vm6, %v3866_v32, %v3203_v58 }
 0x4bd   : > { %3480 = vrot.lane.b32.xlu1 %v9906_v33, %s5510_s23  ;;  %v3583_v52 = vpop.permute.xlu0 %3582 }
 0x4be   : > { %v3992_v14 = vsel %vm1898_vm9, %v3960_v53, %v3583_v52 }
 0x4bf   : > { %v3711_v55 = vpop.permute.xlu1 %3710  ;;  %3478 = vrot.lane.b32.xlu0 %v9907_v3, %s5510_s23 }
 0x4c0   : > { %v4024_v62 = vsel %vm1931_vm10, %v3992_v14, %v3711_v55  ;;  %v9915_v55 = vld [vmem:[#allocation70_spill] sm:$0xff] }
 0x4c1   : > { %3226 = vrot.lane.b32.xlu1 %v2629_v5, %s5508_s21  ;;  %5300 = vmatprep.mubr.msk.f32.mxu1 %vm1969_vm11, %v4024_v62  ;;  %v3585_v12 = vpop.permute.xlu0 %3584  ;;  %v3804_v3 = vsel %vm309_vm0, %v7762_v29, %v9915_v55  ;;  %v2664_v62 = vld [vmem:[#allocation3 + $0x12a] sm:$0xff] }
 0x4c2   : > { %v3993_v17 = vsel %vm1898_vm9, %v3961_v35, %v3585_v12 }
 0x4c3   : > { %v3331_v34 = vpop.permute.xlu1 %3330  ;;  %3606 = vrot.lane.b32.xlu0 %v2629_v5, %s5511_s29  ;;  %v3836_v5 = vsel %vm1733_vm4, %v3804_v3, %v7904_v40  ;;  %v2731_v3 = vld [vmem:[#allocation3 + $0x159] sm:$0xff] }
 0x4c4   : > { %v3930_v50 = vsel %vm1832_vm7, %v3898_v20, %v3331_v34  ;;  %v3868_v47 = vsel %vm1766_vm5, %v3836_v5, %v8035_v22  ;;  %v2697_v34 = vld [vmem:[#allocation3 + $0x140] sm:$0xff] }
 0x4c5   : > { %3734 = vrot.lane.b32.xlu1 %v2756_v1, %s5512_s14  ;;  %v3205_v23 = vpop.permute.xlu0 %3204 }
 0x4c6   : > { %v3899_v28 = vsel %vm1799_vm6, %v3867_v61, %v3205_v23 }
 0x4c7   : > { %v3333_v39 = vpop.permute.xlu1 %3332  ;;  %3608 = vrot.lane.b32.xlu0 %v2725_v49, %s5511_s29 }
 0x4c8   : > { %v3931_v58 = vsel %vm1832_vm7, %v3899_v28, %v3333_v39  ;;  %v3805_v39 = vsel %vm309_vm0, %v7756_v8, %v9916_v15  ;;  %v9920_v28 = vld [vmem:[#allocation14_spill] sm:$0xff] }
 0x4c9   : > { %3354 = vrot.lane.b32.xlu1 %v2756_v1, %s5509_s22  ;;  %v3713_v0 = vpop.permute.xlu0 %3712  ;;  %v2696_v1 = vld [vmem:[#allocation3 + $0x138] sm:$0xff] }
 0x4ca   : > { %v4025_v38 = vsel %vm1931_vm10, %v3993_v17, %v3713_v0  ;;  %v9917_v17 = vld [vmem:[#allocation33_spill] sm:$0xff] }
 0x4cb   : > { %v3461_v63 = vpop.permute.xlu1 %3460  ;;  %3228 = vrot.lane.b32.xlu0 %v2725_v49, %s5508_s21  ;;  %5301 = vmatmul.mubr.msk.f32.gmra.mxu1 %vm1969_vm11, %v4025_v38  ;;  %v2633_v49 = vld [vmem:[#allocation3 + $0x139] sm:$0xff]  ;;  %v3837_v0 = vsel %vm1733_vm4, %v3805_v39, %v9917_v17 }
 0x4cc   : > { %v3963_v53 = vsel %vm1865_vm8, %v3931_v58, %v3461_v63  ;;  %v3869_v38 = vsel %vm1766_vm5, %v3837_v0, %v8031_v9  ;;  %v9922_v58 = vld [vmem:[#allocation77_spill] sm:$0xff]  ;;  %v2701_v0 = vld [vmem:[#allocation3 + $0x170] sm:$0xff] }
 0x4cd   : > { %3356 = vrot.lane.b32.xlu1 %v2662_v57, %s5509_s22  ;;  %v3459_v11 = vpop.permute.xlu0 %3458 }
 0x4ce   : > { %v3962_v31 = vsel %vm1865_vm8, %v3930_v50, %v3459_v11  ;;  %v9918_v50 = vld [vmem:[#allocation15_spill] sm:$0xff] }
 0x4cf   : > { %v3207_v26 = vpop.permute.xlu1 %3206  ;;  %3736 = vrot.lane.b32.xlu0 %v2662_v57, %s5512_s14  ;;  %v2729_v57 = vld [vmem:[#allocation3 + $0x141] sm:$0xff] }
 0x4d0   : > { %v3900_v12 = vsel %vm1799_vm6, %v3868_v47, %v3207_v26 }
 0x4d1   : > { %3484 = vrot.lane.b32.xlu1 %v9911_v2, %s5510_s23  ;;  %v3587_v16 = vpop.permute.xlu0 %3586  ;;  %v2666_v2 = vld [vmem:[#allocation3 + $0x142] sm:$0xff] }
 0x4d2   : > { %v3994_v59 = vsel %vm1898_vm9, %v3962_v31, %v3587_v16  ;;  %v3806_v31 = vsel %vm309_vm0, %v7774_v36, %v9918_v50  ;;  %v9930_v50 = vld [vmem:[#allocation104_spill] sm:$0xff] }
 0x4d3   : > { %v3715_v21 = vpop.permute.xlu1 %3714  ;;  %3482 = vrot.lane.b32.xlu0 %v9912_v56, %s5510_s23  ;;  %v3838_v16 = vsel %vm1733_vm4, %v3806_v31, %v7915_v30 }
 0x4d4   : > { %v4026_v4 = vsel %vm1931_vm10, %v3994_v59, %v3715_v21  ;;  %v9919_v21 = vld [vmem:[#allocation162_spill] sm:$0xff] }
 0x4d5   : > { %3230 = vrot.lane.b32.xlu1 %v2631_v54, %s5508_s21  ;;  %5303 = vmatprep.mubr.msk.f32.mxu1 %vm1969_vm11, %v4026_v4  ;;  %v3589_v60 = vpop.permute.xlu0 %3588  ;;  %v3870_v56 = vsel %vm1766_vm5, %v3838_v16, %v9919_v21 }
 0x4d6   : > { %v3995_v33 = vsel %vm1898_vm9, %v3963_v53, %v3589_v60  ;;  %v9923_v53 = vld [vmem:[#allocation141_spill] sm:$0xff] }
 0x4d7   : > { %v3335_v7 = vpop.permute.xlu1 %3334  ;;  %3610 = vrot.lane.b32.xlu0 %v2631_v54, %s5511_s29 }
 0x4d8   : > { %v3932_v48 = vsel %vm1832_vm7, %v3900_v12, %v3335_v7  ;;  %v2635_v7 = vld [vmem:[#allocation3 + $0x151] sm:$0xff] }
 0x4d9   : > { %3738 = vrot.lane.b32.xlu1 %v2758_v24, %s5512_s14  ;;  %v3209_v41 = vpop.permute.xlu0 %3208 }
 0x4da   : > { %v3901_v45 = vsel %vm1799_vm6, %v3869_v38, %v3209_v41 }
 0x4db   : > { %v3337_v37 = vpop.permute.xlu1 %3336  ;;  %3612 = vrot.lane.b32.xlu0 %v2727_v18, %s5511_s29 }
 0x4dc   : > { %v3933_v27 = vsel %vm1832_vm7, %v3901_v45, %v3337_v37 }
 0x4dd   : > { %3358 = vrot.lane.b32.xlu1 %v2758_v24, %s5509_s22  ;;  %v3717_v13 = vpop.permute.xlu0 %3716  ;;  %v9921_v24 = vld [vmem:[#allocation72_spill] sm:$0xff] }
 0x4de   : > { %v4027_v52 = vsel %vm1931_vm10, %v3995_v33, %v3717_v13  ;;  %v3807_v41 = vsel %vm309_vm0, %v9921_v24, %v9920_v28  ;;  %v9932_v28 = vld [vmem:[#allocation99_spill] sm:$0xff] }
 0x4df   : > { %v3465_v14 = vpop.permute.xlu1 %3464  ;;  %3232 = vrot.lane.b32.xlu0 %v2727_v18, %s5508_s21  ;;  %5304 = vmatmul.mubr.msk.f32.gmra.mxu1 %vm1969_vm11, %v4027_v52  ;;  %v3839_v37 = vsel %vm1733_vm4, %v3807_v41, %v9922_v58 }
 0x4e0   : > { %v3965_v11 = vsel %vm1865_vm8, %v3933_v27, %v3465_v14  ;;  %v3871_v33 = vsel %vm1766_vm5, %v3839_v37, %v9923_v53  ;;  %v2762_v14 = vld [vmem:[#allocation3 + $0x152] sm:$0xff]  ;;  %v2637_v27 = vld [vmem:[#allocation3 + $0x169] sm:$0xff] }
 0x4e1   : > { %3360 = vrot.lane.b32.xlu1 %v2664_v62, %s5509_s22  ;;  %v3463_v46 = vpop.permute.xlu0 %3462 }
 0x4e2   : > { %v3964_v29 = vsel %vm1865_vm8, %v3932_v48, %v3463_v46 }
 0x4e3   : > { %v3211_v10 = vpop.permute.xlu1 %3210  ;;  %3740 = vrot.lane.b32.xlu0 %v2664_v62, %s5512_s14 }
 0x4e4   : > { %v3902_v4 = vsel %vm1799_vm6, %v3870_v56, %v3211_v10  ;;  %v2733_v56 = vld [vmem:[#allocation3 + $0x171] sm:$0xff] }
 0x4e5   : > { %3488 = vrot.lane.b32.xlu1 %v2697_v34, %s5510_s23  ;;  %v3591_v43 = vpop.permute.xlu0 %3590  ;;  %v9924_v34 = vld [vmem:[#allocation73_spill] sm:$0xff] }
 0x4e6   : > { %v3996_v40 = vsel %vm1898_vm9, %v3964_v29, %v3591_v43  ;;  %v9925_v29 = vld [vmem:[#allocation74_spill] sm:$0xff] }
 0x4e7   : > { %v3719_v23 = vpop.permute.xlu1 %3718  ;;  %3486 = vrot.lane.b32.xlu0 %v2696_v1, %s5510_s23  ;;  %v3808_v43 = vsel %vm309_vm0, %v9925_v29, %v9924_v34  ;;  %v9926_v1 = vld [vmem:[#allocation136_spill] sm:$0xff] }
 0x4e8   : > { %v4028_v22 = vsel %vm1931_vm10, %v3996_v40, %v3719_v23  ;;  %v2668_v40 = vld [vmem:[#allocation3 + $0x15a] sm:$0xff]  ;;  %v3840_v23 = vsel %vm1733_vm4, %v3808_v43, %v9926_v1 }
 0x4e9   : > { %3234 = vrot.lane.b32.xlu1 %v2633_v49, %s5508_s21  ;;  %5306 = vmatprep.mubr.msk.f32.mxu1 %vm1969_vm11, %v4028_v22  ;;  %v3593_v35 = vpop.permute.xlu0 %3592  ;;  %v9935_v34 = vld [vmem:[#allocation80_spill] sm:$0xff]  ;;  %v9936_v43 = vld [vmem:[#allocation165_spill] sm:$0xff] }
 0x4ea   : > { %v3997_v32 = vsel %vm1898_vm9, %v3965_v11, %v3593_v35  ;;  %v9928_v11 = vld [vmem:[#allocation69_spill] sm:$0xff] }
 0x4eb   : > { %v3339_v63 = vpop.permute.xlu1 %3338  ;;  %3614 = vrot.lane.b32.xlu0 %v2633_v49, %s5511_s29  ;;  %v9927_v49 = vld [vmem:[#allocation16_spill] sm:$0xff] }
 0x4ec   : > { %v3934_v25 = vsel %vm1832_vm7, %v3902_v4, %v3339_v63  ;;  %v3872_v15 = vsel %vm1766_vm5, %v3840_v23, %v9927_v49 }
 0x4ed   : > { %3742 = vrot.lane.b32.xlu1 %v2760_v42, %s5512_s14  ;;  %v3213_v8 = vpop.permute.xlu0 %3212 }
 0x4ee   : > { %v3903_v52 = vsel %vm1799_vm6, %v3871_v33, %v3213_v8 }
 0x4ef   : > { %v3341_v19 = vpop.permute.xlu1 %3340  ;;  %3616 = vrot.lane.b32.xlu0 %v2729_v57, %s5511_s29 }
 0x4f0   : > { %v3935_v62 = vsel %vm1832_vm7, %v3903_v52, %v3341_v19  ;;  %v5425_v19 = vld [vmem:[#allocation3 + $0xb0] sm:$0xff] }
 0x4f1   : > { %3362 = vrot.lane.b32.xlu1 %v2760_v42, %s5509_s22  ;;  %v3721_v9 = vpop.permute.xlu0 %3720  ;;  %v2700_v42 = vld [vmem:[#allocation3 + $0x168] sm:$0xff] }
 0x4f2   : > { %v4029_v20 = vsel %vm1931_vm10, %v3997_v32, %v3721_v9  ;;  %v3809_v32 = vsel %vm309_vm0, %v5425_v19, %v9928_v11  ;;  %v9938_v19 = vld [vmem:[#allocation160_spill] sm:$0xff] }
 0x4f3   : > { %v3469_v26 = vpop.permute.xlu1 %3468  ;;  %3236 = vrot.lane.b32.xlu0 %v2729_v57, %s5508_s21  ;;  %5307 = vmatmul.mubr.msk.f32.gmra.mxu1 %vm1969_vm11, %v4029_v20  ;;  %v9929_v20 = vld [vmem:[#allocation62_spill] sm:$0xff] }
 0x4f4   : > { %v3967_v46 = vsel %vm1865_vm8, %v3935_v62, %v3469_v26  ;;  %v3841_v26 = vsel %vm1733_vm4, %v3809_v32, %v9929_v20 }
 0x4f5   : > { %3364 = vrot.lane.b32.xlu1 %v2666_v2, %s5509_s22  ;;  %v3467_v59 = vpop.permute.xlu0 %3466  ;;  %v3873_v31 = vsel %vm1766_vm5, %v3841_v26, %v9930_v50  ;;  %v2705_v26 = vld [vmem:[#allocation3 + $0x1a0] sm:$0xff] }
 0x4f6   : > { %v3966_v36 = vsel %vm1865_vm8, %v3934_v25, %v3467_v59  ;;  %v2764_v59 = vld [vmem:[#allocation3 + $0x16a] sm:$0xff] }
 0x4f7   : > { %v3215_v54 = vpop.permute.xlu1 %3214  ;;  %3744 = vrot.lane.b32.xlu0 %v2666_v2, %s5512_s14 }
 0x4f8   : > { %v3904_v39 = vsel %vm1799_vm6, %v3872_v15, %v3215_v54  ;;  %v2735_v15 = vld [vmem:[#allocation3 + $0x189] sm:$0xff] }
 0x4f9   : > { %3492 = vrot.lane.b32.xlu1 %v2699_v51, %s5510_s23  ;;  %v3595_v60 = vpop.permute.xlu0 %3594 }
 0x4fa   : > { %v3998_v30 = vsel %vm1898_vm9, %v3966_v36, %v3595_v60 }
 0x4fb   : > { %v3723_v6 = vpop.permute.xlu1 %3722  ;;  %3490 = vrot.lane.b32.xlu0 %v2698_v44, %s5510_s23  ;;  %v5426_v44 = vld [vmem:[#allocation3 + $0xc0] sm:$0xff] }
 0x4fc   : > { %v4030_v61 = vsel %vm1931_vm10, %v3998_v30, %v3723_v6  ;;  %v9931_v6 = vld [vmem:[#allocation18_spill] sm:$0xff] }
 0x4fd   : > { %3238 = vrot.lane.b32.xlu1 %v2635_v7, %s5508_s21  ;;  %5309 = vmatprep.mubr.msk.f32.mxu1 %vm1969_vm11, %v4030_v61  ;;  %v3597_v18 = vpop.permute.xlu0 %3596  ;;  %v3810_v61 = vsel %vm309_vm0, %v5426_v44, %v9931_v6  ;;  %v9941_v6 = vld [vmem:[#allocation139_spill] sm:$0xff] }
 0x4fe   : > { %v3999_v47 = vsel %vm1898_vm9, %v3967_v46, %v3597_v18  ;;  %v3842_v24 = vsel %vm1733_vm4, %v3810_v61, %v9932_v28  ;;  %v9933_v18 = vld [vmem:[#allocation39_spill] sm:$0xff]  ;;  %v2639_v46 = vld [vmem:[#allocation3 + $0x181] sm:$0xff]  ;;  %v9942_v28 = vld [vmem:[#allocation24_spill] sm:$0xff] }
 0x4ff   : > { %v3343_v13 = vpop.permute.xlu1 %3342  ;;  %3618 = vrot.lane.b32.xlu0 %v2635_v7, %s5511_s29  ;;  %v2670_v7 = vld [vmem:[#allocation3 + $0x172] sm:$0xff]  ;;  %v3874_v58 = vsel %vm1766_vm5, %v3842_v24, %v9933_v18 }
 0x500   : > { %v3936_v17 = vsel %vm1832_vm7, %v3904_v39, %v3343_v13  ;;  %v2703_v13 = vld [vmem:[#allocation3 + $0x188] sm:$0xff] }
 0x501   : > { %3746 = vrot.lane.b32.xlu1 %v2762_v14, %s5512_s14  ;;  %v3217_v55 = vpop.permute.xlu0 %3216 }
 0x502   : > { %v3905_v16 = vsel %vm1799_vm6, %v3873_v31, %v3217_v55 }
 0x503   : > { %v3345_v5 = vpop.permute.xlu1 %3344  ;;  %3620 = vrot.lane.b32.xlu0 %v2731_v3, %s5511_s29 }
 0x504   : > { %v3937_v4 = vsel %vm1832_vm7, %v3905_v16, %v3345_v5  ;;  %v2704_v16 = vld [vmem:[#allocation3 + $0x198] sm:$0xff] }
 0x505   : > { %3366 = vrot.lane.b32.xlu1 %v2762_v14, %s5509_s22  ;;  %v3725_v12 = vpop.permute.xlu0 %3724 }
 0x506   : > { %v4031_v10 = vsel %vm1931_vm10, %v3999_v47, %v3725_v12  ;;  %v5427_v47 = vld [vmem:[#allocation3 + $0xc8] sm:$0xff]  ;;  %v9934_v12 = vld [vmem:[#allocation17_spill] sm:$0xff] }
 0x507   : > { %v3473_v48 = vpop.permute.xlu1 %3472  ;;  %3240 = vrot.lane.b32.xlu0 %v2731_v3, %s5508_s21  ;;  %5310 = vmatmul.mubr.msk.f32.gmra.mxu1 %vm1969_vm11, %v4031_v10  ;;  %v2702_v3 = vld [vmem:[#allocation3 + $0x180] sm:$0xff]  ;;  %v3811_v10 = vsel %vm309_vm0, %v5427_v47, %v9934_v12  ;;  %v9944_v47 = vld [vmem:[#allocation11_spill] sm:$0xff] }
 0x508   : > { %v3969_v25 = vsel %vm1865_vm8, %v3937_v4, %v3473_v48  ;;  %v3843_v29 = vsel %vm1733_vm4, %v3811_v10, %v9935_v34  ;;  %v2737_v4 = vld [vmem:[#allocation3 + $0x1a1] sm:$0xff] }
 0x509   : > { %3368 = vrot.lane.b32.xlu1 %v2668_v40, %s5509_s22  ;;  %v3471_v22 = vpop.permute.xlu0 %3470 }
 0x50a   : > { %v3968_v38 = vsel %vm1865_vm8, %v3936_v17, %v3471_v22  ;;  %v2766_v22 = vld [vmem:[#allocation3 + $0x182] sm:$0xff] }
 0x50b   : > { %v3219_v35 = vpop.permute.xlu1 %3218  ;;  %3748 = vrot.lane.b32.xlu0 %v2668_v40, %s5512_s14  ;;  %v3875_v40 = vsel %vm1766_vm5, %v3843_v29, %v9936_v43 }
 0x50c   : > { %v3906_v37 = vsel %vm1799_vm6, %v3874_v58, %v3219_v35  ;;  %v2768_v58 = vld [vmem:[#allocation3 + $0x19a] sm:$0xff] }
 0x50d   : > { %3496 = vrot.lane.b32.xlu1 %v2701_v0, %s5510_s23  ;;  %v3599_v63 = vpop.permute.xlu0 %3598 }
 0x50e   : > { %v4000_v45 = vsel %vm1898_vm9, %v3968_v38, %v3599_v63 }
 0x50f   : > { %v3727_v8 = vpop.permute.xlu1 %3726  ;;  %3494 = vrot.lane.b32.xlu0 %v2700_v42, %s5510_s23  ;;  %v5428_v42 = vld [vmem:[#allocation3 + $0xd8] sm:$0xff] }
 0x510   : > { %v4032_v57 = vsel %vm1931_vm10, %v4000_v45, %v3727_v8  ;;  %v9937_v8 = vld [vmem:[#allocation20_spill] sm:$0xff] }
 0x511   : > { %3242 = vrot.lane.b32.xlu1 %v2637_v27, %s5508_s21  ;;  %5312 = vmatprep.mubr.msk.f32.mxu1 %vm1969_vm11, %v4032_v57  ;;  %v3601_v9 = vpop.permute.xlu0 %3600  ;;  %v3812_v57 = vsel %vm309_vm0, %v5428_v42, %v9937_v8 }
 0x512   : > { %v4001_v51 = vsel %vm1898_vm9, %v3969_v25, %v3601_v9  ;;  %v3844_v11 = vsel %vm1733_vm4, %v3812_v57, %v9938_v19  ;;  %v9939_v9 = vld [vmem:[#allocation64_spill] sm:$0xff] }
 0x513   : > { %v3347_v2 = vpop.permute.xlu1 %3346  ;;  %3622 = vrot.lane.b32.xlu0 %v2637_v27, %s5511_s29  ;;  %v2672_v27 = vld [vmem:[#allocation3 + $0x18a] sm:$0xff]  ;;  %v3876_v20 = vsel %vm1766_vm5, %v3844_v11, %v9939_v9 }
 0x514   : > { %v3938_v33 = vsel %vm1832_vm7, %v3906_v37, %v3347_v2 }
 0x515   : > { %3750 = vrot.lane.b32.xlu1 %v2764_v59, %s5512_s14  ;;  %v3221_v21 = vpop.permute.xlu0 %3220 }
 0x516   : > { %v3907_v23 = vsel %vm1799_vm6, %v3875_v40, %v3221_v21 }
 0x517   : > { %v3349_v54 = vpop.permute.xlu1 %3348  ;;  %3624 = vrot.lane.b32.xlu0 %v2733_v56, %s5511_s29 }
 0x518   : > { %v3939_v39 = vsel %vm1832_vm7, %v3907_v23, %v3349_v54 }
 0x519   : > { %3370 = vrot.lane.b32.xlu1 %v2764_v59, %s5509_s22  ;;  %v3729_v36 = vpop.permute.xlu0 %3728 }
 0x51a   : > { %v4033_v60 = vsel %vm1931_vm10, %v4001_v51, %v3729_v36  ;;  %v2736_v51 = vld [vmem:[#allocation3 + $0x199] sm:$0xff] }
 0x51b   : > { %v3477_v30 = vpop.permute.xlu1 %3476  ;;  %3244 = vrot.lane.b32.xlu0 %v2733_v56, %s5508_s21  ;;  %5313 = vmatmul.mubr.msk.f32.gmra.mxu1 %vm1969_vm11, %v4033_v60  ;;  %v5429_v36 = vld [vmem:[#allocation3 + $0xe0] sm:$0xff]  ;;  %v9940_v60 = vld [vmem:[#allocation75_spill] sm:$0xff] }
 0x51c   : > { %v3971_v17 = vsel %vm1865_vm8, %v3939_v39, %v3477_v30  ;;  %v3813_v30 = vsel %vm309_vm0, %v5429_v36, %v9940_v60  ;;  %v5431_v39 = vld [vmem:[#allocation3 + $0xf8] sm:$0xff] }
 0x51d   : > { %3372 = vrot.lane.b32.xlu1 %v2670_v7, %s5509_s22  ;;  %v3475_v41 = vpop.permute.xlu0 %3474  ;;  %v3845_v61 = vsel %vm1733_vm4, %v3813_v30, %v9941_v6 }
 0x51e   : > { %v3970_v52 = vsel %vm1865_vm8, %v3938_v33, %v3475_v41  ;;  %v3877_v24 = vsel %vm1766_vm5, %v3845_v61, %v9942_v28  ;;  %v8528_v61 = vld [vmem:[%s9388_s5] ss:$0 sm:$0xff] }
 0x51f   : > { %v3223_v53 = vpop.permute.xlu1 %3222  ;;  %3752 = vrot.lane.b32.xlu0 %v2670_v7, %s5512_s14  ;;  %v2769_v7 = vld [vmem:[#allocation3 + $0x1a2] sm:$0xff] }
 0x520   : > { %v3908_v50 = vsel %vm1799_vm6, %v3876_v20, %v3223_v53 }
 0x521   : > { %3500 = vrot.lane.b32.xlu1 %v2703_v13, %s5510_s23  ;;  %v3603_v14 = vpop.permute.xlu0 %3602 }
 0x522   : > { %v4002_v55 = vsel %vm1898_vm9, %v3970_v52, %v3603_v14 }
 0x523   : > { %v3731_v62 = vpop.permute.xlu1 %3730  ;;  %3498 = vrot.lane.b32.xlu0 %v2702_v3, %s5510_s23 }
 0x524   : > { %v4034_v5 = vsel %vm1931_vm10, %v4002_v55, %v3731_v62  ;;  %v5430_v62 = vld [vmem:[#allocation3 + $0xf0] sm:$0xff] }
 0x525   : > { %3246 = vrot.lane.b32.xlu1 %v2639_v46, %s5508_s21  ;;  %5315 = vmatprep.mubr.msk.f32.mxu1 %vm1969_vm11, %v4034_v5  ;;  %v3605_v48 = vpop.permute.xlu0 %3604  ;;  %v9943_v5 = vld [vmem:[#allocation23_spill] sm:$0xff] }
 0x526   : > { %v4003_v0 = vsel %vm1898_vm9, %v3971_v17, %v3605_v48  ;;  %v9945_v48 = vld [vmem:[#allocation81_spill] sm:$0xff] }
 0x527   : > { %v3351_v1 = vpop.permute.xlu1 %3350  ;;  %3626 = vrot.lane.b32.xlu0 %v2639_v46, %s5511_s29  ;;  %v3814_v46 = vsel %vm309_vm0, %v5430_v62, %v9943_v5 }
 0x528   : > { %v3940_v2 = vsel %vm1832_vm7, %v3908_v50, %v3351_v1  ;;  %v3846_v12 = vsel %vm1733_vm4, %v3814_v46, %v9944_v47 }
 0x529   : > { %3754 = vrot.lane.b32.xlu1 %v2766_v22, %s5512_s14  ;;  %v3225_v49 = vpop.permute.xlu0 %3224  ;;  %v3878_v34 = vsel %vm1766_vm5, %v3846_v12, %v9945_v48 }
 0x52a   : > { %v3909_v18 = vsel %vm1799_vm6, %v3877_v24, %v3225_v49  ;;  %v5433_v24 = vld [vmem:[#allocation3 + $0x110] sm:$0xff] }
 0x52b   : > { %v3353_v35 = vpop.permute.xlu1 %3352  ;;  %3628 = vrot.lane.b32.xlu0 %v2735_v15, %s5511_s29 }
 0x52c   : > { %v3941_v53 = vsel %vm1832_vm7, %v3909_v18, %v3353_v35  ;;  %v9946_v35 = vld [vmem:[#allocation21_spill] sm:$0xff] }
 0x52d   : > { %3374 = vrot.lane.b32.xlu1 %v2766_v22, %s5509_s22  ;;  %v3733_v38 = vpop.permute.xlu0 %3732  ;;  %v3815_v17 = vsel %vm309_vm0, %v5431_v39, %v9946_v35  ;;  %v9955_v39 = vld [vmem:[#allocation29_spill] sm:$0xff] }
 0x52e   : > { %v4035_v63 = vsel %vm1931_vm10, %v4003_v0, %v3733_v38  ;;  %v9947_v38 = vld [vmem:[#allocation102_spill] sm:$0xff] }
 0x52f   : > { %v3481_v45 = vpop.permute.xlu1 %3480  ;;  %3248 = vrot.lane.b32.xlu0 %v2735_v15, %s5508_s21  ;;  %5316 = vmatmul.mubr.msk.f32.gmra.mxu1 %vm1969_vm11, %v4035_v63  ;;  %v3847_v63 = vsel %vm1733_vm4, %v3815_v17, %v9947_v38 }
 0x530   : > { %v3973_v13 = vsel %vm1865_vm8, %v3941_v53, %v3481_v45  ;;  %v9948_v45 = vld [vmem:[#allocation41_spill] sm:$0xff]  ;;  %v9953_v53 = vld [vmem:[#allocation163_spill] sm:$0xff] }
 0x531   : > { %3376 = vrot.lane.b32.xlu1 %v2672_v27, %s5509_s22  ;;  %v3479_v32 = vpop.permute.xlu0 %3478  ;;  %v3879_v42 = vsel %vm1766_vm5, %v3847_v63, %v9948_v45 }
 0x532   : > { %v3972_v59 = vsel %vm1865_vm8, %v3940_v2, %v3479_v32  ;;  %v9949_v2 = vld [vmem:[#allocation76_spill] sm:$0xff] }
 0x533   : > { %v3227_v31 = vpop.permute.xlu1 %3226  ;;  %3756 = vrot.lane.b32.xlu0 %v2672_v27, %s5512_s14 }
 0x534   : > { %v3910_v29 = vsel %vm1799_vm6, %v3878_v34, %v3227_v31  ;;  %v5432_v31 = vld [vmem:[#allocation3 + $0x108] sm:$0xff] }
 0x535   : > { %3504 = vrot.lane.b32.xlu1 %v2705_v26, %s5510_s23  ;;  %v3607_v21 = vpop.permute.xlu0 %3606 }
 0x536   : > { %v4004_v56 = vsel %vm1898_vm9, %v3972_v59, %v3607_v21  ;;  %v9950_v59 = vld [vmem:[#allocation35_spill] sm:$0xff] }
 0x537   : > { %v3735_v54 = vpop.permute.xlu1 %3734  ;;  %3502 = vrot.lane.b32.xlu0 %v2704_v16, %s5510_s23  ;;  %v3816_v16 = vsel %vm309_vm0, %v5432_v31, %v9949_v2 }
 0x538   : > { %v4036_v25 = vsel %vm1931_vm10, %v4004_v56, %v3735_v54  ;;  %v3848_v21 = vsel %vm1733_vm4, %v3816_v16, %v9950_v59 }
 0x539   : > { %3632 = vrot.lane.b32.xlu1 %v2737_v4, %s5511_s29  ;;  %5318 = vmatprep.mubr.msk.f32.mxu1 %vm1969_vm11, %v4036_v25  ;;  %v3609_v44 = vpop.permute.xlu0 %3608  ;;  %v9951_v4 = vld [vmem:[#allocation140_spill] sm:$0xff] }
 0x53a   : > { %v4005_v52 = vsel %vm1898_vm9, %v3973_v13, %v3609_v44  ;;  %v3880_v54 = vsel %vm1766_vm5, %v3848_v21, %v9951_v4 }
 0x53b   : > { %v3355_v41 = vpop.permute.xlu1 %3354  ;;  %3630 = vrot.lane.b32.xlu0 %v2736_v51, %s5511_s29 }
 0x53c   : > { %v3942_v40 = vsel %vm1832_vm7, %v3910_v29, %v3355_v41  ;;  %v9952_v41 = vld [vmem:[#allocation25_spill] sm:$0xff] }
 0x53d   : > { %3760 = vrot.lane.b32.xlu1 %v2769_v7, %s5512_s14  ;;  %v3229_v37 = vpop.permute.xlu0 %3228  ;;  %v3817_v18 = vsel %vm309_vm0, %v5433_v24, %v9952_v41 }
 0x53e   : > { %v3911_v57 = vsel %vm1799_vm6, %v3879_v42, %v3229_v37 }
 0x53f   : > { %v3357_v33 = vpop.permute.xlu1 %3356  ;;  %3758 = vrot.lane.b32.xlu0 %v2768_v58, %s5512_s14 }
 0x540   : > { %v3943_v19 = vsel %vm1832_vm7, %v3911_v57, %v3357_v33  ;;  %v3849_v33 = vsel %vm1733_vm4, %v3817_v18, %v9953_v53 }
 0x541   : > { %v3737_v14 = vpop.permute.xlu0 %3736 }
 0x542   : > { %v4037_v55 = vsel %vm1931_vm10, %v4005_v52, %v3737_v14  ;;  %v9954_v52 = vld [vmem:[#allocation71_spill] sm:$0xff] }
 0x543   : > { %v3485_v3 = vpop.permute.xlu1 %3484  ;;  %5319 = vmatmul.mubr.msk.f32.gmra.mxu1 %vm1969_vm11, %v4037_v55  ;;  %v3881_v14 = vsel %vm1766_vm5, %v3849_v33, %v9954_v52  ;;  %v8542_v55 = vld [vmem:[%s9389_s6] ss:$0 sm:$0xff] }
 0x544   : > { %v3975_v32 = vsel %vm1865_vm8, %v3943_v19, %v3485_v3 }
 0x545   : > { %v3483_v10 = vpop.permute.xlu0 %3482 }
 0x546   : > { %v3974_v1 = vsel %vm1865_vm8, %v3942_v40, %v3483_v10 }
 0x547   : > { %v3231_v43 = vpop.permute.xlu1 %3230 }
 0x548   : > { %v3912_v25 = vsel %vm1799_vm6, %v3880_v54, %v3231_v43 }
 0x549   : > { %v3611_v23 = vpop.permute.xlu0 %3610 }
 0x54a   : > { %v4006_v22 = vsel %vm1898_vm9, %v3974_v1, %v3611_v23 }
 0x54b   : > { %v3739_v49 = vpop.permute.xlu1 %3738 }
 0x54c   : > { %v4038_v15 = vsel %vm1931_vm10, %v4006_v22, %v3739_v49 }
 0x54d   : > { %5321 = vmatprep.mubr.msk.f32.mxu1 %vm1969_vm11, %v4038_v15  ;;  %v3613_v0 = vpop.permute.xlu0 %3612  ;;  %v5293_v60 = vpop.f32.mrf.mxu1  ;;  %v5434_v15 = vld [vmem:[#allocation3 + $0x120] sm:$0xff] }
 0x54e   : > { %v4007_v9 = vsel %vm1898_vm9, %v3975_v32, %v3613_v0  ;;  %v4387_v13 = vmul.f32 %v5293_v60, %v8528_v61  ;;  %v3818_v35 = vsel %vm309_vm0, %v5434_v15, %v9955_v39  ;;  %v9956_v0 = vld [vmem:[#allocation60_spill] sm:$0xff]  ;;  %v9957_v32 = vld [vmem:[#allocation103_spill] sm:$0xff] }
 0x54f   : > { %v3359_v8 = vpop.permute.xlu1 %3358  ;;  %v4220_v58 = vpop.f32.mrf.mxu1  ;;  %v3850_v38 = vsel %vm1733_vm4, %v3818_v35, %v9956_v0 }
 0x550   : > { %v3944_v36 = vsel %vm1832_vm7, %v3912_v25, %v3359_v8  ;;  %v4426_v12 = vadd.f32 %v8542_v55, %v4387_v13  ;;  %v5435_v25 = vld [vmem:[#allocation3 + $0x128] sm:$0xff]  ;;  %v4386_v60 = vmul.f32 %v8528_v61, %v4220_v58 }
 0x551   : > { %v3233_v27 = vpop.permute.xlu0 %3232 }
 0x552   : > { %v3913_v5 = vsel %vm1799_vm6, %v3881_v14, %v3233_v27  ;;  %v8551_v23 = vmax.f32 %v4426_v12, 0.0  ;;  %v4425_v33 = vadd.f32 %v8542_v55, %v4386_v60 }
 0x553   : > { %v3361_v11 = vpop.permute.xlu1 %3360 }
 0x554   : > { %v3945_v48 = vsel %vm1832_vm7, %v3913_v5, %v3361_v11 }
 0x555   : > { %v3741_v20 = vpop.permute.xlu0 %3740 }
 0x556   : > { %v4039_v26 = vsel %vm1931_vm10, %v4007_v9, %v3741_v20  ;;  %v3882_v9 = vsel %vm1766_vm5, %v3850_v38, %v9957_v32 }
 0x557   : > { %v3489_v50 = vpop.permute.xlu1 %3488  ;;  %5322 = vmatmul.mubr.msk.f32.gmra.mxu1 %vm1969_vm11, %v4039_v26 }
 0x558   : > { %v3977_v29 = vsel %vm1865_vm8, %v3945_v48, %v3489_v50  ;;  %v9961_v48 = vld [vmem:[#allocation135_spill] sm:$0xff] }
 0x559   : > { %v3487_v56 = vpop.permute.xlu0 %3486 }
 0x55a   : > { %v3976_v30 = vsel %vm1865_vm8, %v3944_v36, %v3487_v56 }
 0x55b   : > { %v3235_v51 = vpop.permute.xlu1 %3234 }
 0x55c   : > { %v3914_v20 = vsel %vm1799_vm6, %v3882_v9, %v3235_v51  ;;  %v9958_v51 = vld [vmem:[#allocation27_spill] sm:$0xff] }
 0x55d   : > { %v3615_v44 = vpop.permute.xlu0 %3614  ;;  %v3819_v36 = vsel %vm309_vm0, %v5435_v25, %v9958_v51 }
 0x55e   : > { %v4008_v6 = vsel %vm1898_vm9, %v3976_v30, %v3615_v44  ;;  %v9959_v44 = vld [vmem:[#allocation19_spill] sm:$0xff] }
 0x55f   : > { %v3743_v7 = vpop.permute.xlu1 %3742 }
 0x560   : > { %v4040_v28 = vsel %vm1931_vm10, %v4008_v6, %v3743_v7  ;;  %v3851_v6 = vsel %vm1733_vm4, %v3819_v36, %v9959_v44  ;;  %v9960_v7 = vld [vmem:[#allocation84_spill] sm:$0xff] }
 0x561   : > { %5324 = vmatprep.mubr.msk.f32.mxu1 %vm1969_vm11, %v4040_v28  ;;  %v3617_v37 = vpop.permute.xlu0 %3616  ;;  %v3883_v28 = vsel %vm1766_vm5, %v3851_v6, %v9960_v7  ;;  %v5437_v6 = vld [vmem:[#allocation3 + $0x140] sm:$0xff]  ;;  %v9964_v7 = vld [vmem:[#allocation58_spill] sm:$0xff] }
 0x562   : > { %v4009_v40 = vsel %vm1898_vm9, %v3977_v29, %v3617_v37 }
 0x563   : > { %v3363_v3 = vpop.permute.xlu1 %3362  ;;  %v5296_v62 = vpop.f32.mrf.mxu1 }
 0x564   : > { %v4389_v46 = vmul.f32 %v5296_v62, %v8528_v61  ;;  %v3946_v31 = vsel %vm1832_vm7, %v3914_v20, %v3363_v3 }
 0x565   : > { %v3237_v47 = vpop.permute.xlu0 %3236  ;;  %v4230_v63 = vpop.f32.mrf.mxu1 }
 0x566   : > { %v4428_v10 = vadd.f32 %v8542_v55, %v4389_v46  ;;  %v4388_v26 = vmul.f32 %v8528_v61, %v4230_v63  ;;  %v3915_v37 = vsel %vm1799_vm6, %v3883_v28, %v3237_v47  ;;  %v3821_v28 = vsel %vm309_vm0, %v5437_v6, %v9964_v7 }
 0x567   : > { %v3365_v34 = vpop.permute.xlu1 %3364 }
 0x568   : > { %v4460_v43 = vmax.f32 %v4428_v10, 0.0  ;;  %v4427_v56 = vadd.f32 %v8542_v55, %v4388_v26  ;;  %v3947_v62 = vsel %vm1832_vm7, %v3915_v37, %v3365_v34  ;;  %v5436_v10 = vld [vmem:[#allocation3 + $0x138] sm:$0xff]  ;;  %v9966_v37 = vld [vmem:[#allocation143_spill] sm:$0xff] }
 0x569   : > { %v3745_v1 = vpop.permute.xlu0 %3744  ;;  %v3820_v29 = vsel %vm309_vm0, %v5436_v10, %v9961_v48 }
 0x56a   : > { %v8553_v22 = vrot.slane %v4460_v43, 7  ;;  %v4041_v49 = vsel %vm1931_vm10, %v4009_v40, %v3745_v1  ;;  %v4459_v24 = vmax.f32 %v4427_v56, 0.0  ;;  %v8613_v43 = vmax.f32 %v4425_v33, 0.0 }
 0x56b   : > { %v3493_v17 = vpop.permute.xlu1 %3492  ;;  %5325 = vmatmul.mubr.msk.f32.gmra.mxu1 %vm1969_vm11, %v4041_v49  ;;  %v9962_v49 = vld [vmem:[#allocation79_spill] sm:$0xff] }
 0x56c   : > { %v4757_v45 = vsel %vm4506_vm1, %v8553_v22, %v8551_v23  ;;  %v4793_v42 = vsel %vm4509_vm12, %v8553_v22, %v8551_v23  ;;  %v4821_v57 = vsel %vm4512_vm13, %v8553_v22, %v8551_v23  ;;  %v4849_v27 = vsel %vm4515_vm14, %v8553_v22, %v8551_v23 }
 0x56d   : > { %v3491_v8 = vpop.permute.xlu0 %3490  ;;  %v4877_v19 = vsel %vm4518_vm15, %v8553_v22, %v8551_v23  ;;  %v4905_v11 = vsel %vm4521_vm2, %v8553_v22, %v8551_v23  ;;  %v8587_v2 = vsel %vm4524_vm3, %v8553_v22, %v8551_v23  ;;  %v8606_v3 = vrot.slane %v4459_v24, 7 }
 0x56e   : > { %v3978_v16 = vsel %vm1865_vm8, %v3946_v31, %v3491_v8  ;;  %v3979_v46 = vsel %vm1865_vm8, %v3947_v62, %v3493_v17  ;;  %v3852_v15 = vsel %vm1733_vm4, %v3820_v29, %v9962_v49  ;;  %v9963_v17 = vld [vmem:[#allocation164_spill] sm:$0xff] }
 0x56f   : > { %v3239_v50 = vpop.permute.xlu1 %3238  ;;  %v3884_v0 = vsel %vm1766_vm5, %v3852_v15, %v9963_v17  ;;  %v4572_v63 = vsel %vm4512_vm13, %v8606_v3, %v8613_v43  ;;  %v4600_v32 = vsel %vm4515_vm14, %v8606_v3, %v8613_v43  ;;  %v9967_v15 = vld [vmem:[#allocation100_spill] sm:$0xff] }
 0x570   : > { %v3916_v56 = vsel %vm1799_vm6, %v3884_v0, %v3239_v50 }
 0x571   : > { %v3619_v59 = vpop.permute.xlu0 %3618 }
 0x572   : > { %v4010_v21 = vsel %vm1898_vm9, %v3978_v16, %v3619_v59 }
 0x573   : > { %v3747_v4 = vpop.permute.xlu1 %3746 }
 0x574   : > { %v4042_v54 = vsel %vm1931_vm10, %v4010_v21, %v3747_v4 }
 0x575   : > { %5327 = vmatprep.mubr.msk.f32.mxu1 %vm1969_vm11, %v4042_v54  ;;  %v3621_v30 = vpop.permute.xlu0 %3620 }
 0x576   : > { %v4011_v40 = vsel %vm1898_vm9, %v3979_v46, %v3621_v30 }
 0x577   : > { %v3367_v41 = vpop.permute.xlu1 %3366  ;;  %v5299_v18 = vpop.f32.mrf.mxu1 }
 0x578   : > { %v4391_v53 = vmul.f32 %v5299_v18, %v8528_v61  ;;  %v3948_v54 = vsel %vm1832_vm7, %v3916_v56, %v3367_v41  ;;  %v9965_v41 = vld [vmem:[#allocation37_spill] sm:$0xff] }
 0x579   : > { %v4240_v13 = vpop.f32.mrf.mxu1  ;;  %v3241_v58 = vpop.permute.xlu0 %3240  ;;  %v3853_v18 = vsel %vm1733_vm4, %v3821_v28, %v9965_v41  ;;  %v9970_v41 = vld [vmem:[#allocation137_spill] sm:$0xff] }
 0x57a   : > { %v4430_v52 = vadd.f32 %v8542_v55, %v4391_v53  ;;  %v4390_v14 = vmul.f32 %v8528_v61, %v4240_v13 }
 0x57b   : > { %v3369_v5 = vpop.permute.xlu1 %3368 }
 0x57c   : > { %v4462_v12 = vmax.f32 %v4430_v52, 0.0  ;;  %v4429_v47 = vadd.f32 %v8542_v55, %v4390_v14 }
 0x57d   : > { %v3749_v1 = vpop.permute.xlu0 %3748 }
 0x57e   : > { %v8618_v39 = vrot.slane %v4462_v12, 6  ;;  %v4461_v34 = vmax.f32 %v4429_v47, 0.0  ;;  %v4043_v35 = vsel %vm1931_vm10, %v4011_v40, %v3749_v1 }
 0x57f   : > { %v3497_v38 = vpop.permute.xlu1 %3496  ;;  %5328 = vmatmul.mubr.msk.f32.gmra.mxu1 %vm1969_vm11, %v4043_v35 }
 0x580   : > { %v8627_v8 = vrot.slane %v4461_v34, 6  ;;  %v4759_v9 = vsel %vm4509_vm12, %v8618_v39, %v4757_v45  ;;  %v4794_v20 = vsel %vm4512_vm13, %v8618_v39, %v4793_v42  ;;  %v4822_v31 = vsel %vm4515_vm14, %v8618_v39, %v4821_v57 }
 0x581   : > { %v3495_v26 = vpop.permute.xlu0 %3494  ;;  %v4850_v16 = vsel %vm4518_vm15, %v8618_v39, %v4849_v27  ;;  %v4878_v59 = vsel %vm4521_vm2, %v8618_v39, %v4877_v19  ;;  %v8644_v21 = vsel %vm4524_vm3, %v8618_v39, %v4905_v11  ;;  %v4628_v42 = vsel %vm4518_vm15, %v8606_v3, %v8613_v43 }
 0x582   : > { %v4573_v45 = vsel %vm4515_vm14, %v8627_v8, %v4572_v63  ;;  %v4656_v57 = vsel %vm4521_vm2, %v8606_v3, %v8613_v43  ;;  %v4601_v19 = vsel %vm4518_vm15, %v8627_v8, %v4600_v32  ;;  %v4629_v11 = vsel %vm4521_vm2, %v8627_v8, %v4628_v42  ;;  %v9968_v63 = vld [vmem:[#allocation138_spill] sm:$0xff] }
 0x583   : > { %v3243_v27 = vpop.permute.xlu1 %3242  ;;  %v8661_v50 = vsel %vm4524_vm3, %v8627_v8, %v4656_v57  ;;  %v4712_v4 = vsel %vm4506_vm1, %v8627_v8, %v8606_v3  ;;  %v4961_v25 = vsel %vm4506_vm1, %v8618_v39, %v8553_v22  ;;  %v3980_v51 = vsel %vm1865_vm8, %v3948_v54, %v3495_v26 }
 0x584   : > { %v3885_v22 = vsel %vm1766_vm5, %v3853_v18, %v9966_v37  ;;  %v9971_v37 = vld [vmem:[#allocation66_spill] sm:$0xff] }
 0x585   : > { %v3623_v36 = vpop.permute.xlu0 %3622  ;;  %v3917_v13 = vsel %vm1799_vm6, %v3885_v22, %v3241_v58  ;;  %v5438_v58 = vld [vmem:[#allocation3 + $0x150] sm:$0xff] }
 0x586   : > { %v4012_v60 = vsel %vm1898_vm9, %v3980_v51, %v3623_v36  ;;  %v3949_v47 = vsel %vm1832_vm7, %v3917_v13, %v3369_v5  ;;  %v3822_v34 = vsel %vm309_vm0, %v5438_v58, %v9967_v15 }
 0x587   : > { %v3751_v30 = vpop.permute.xlu1 %3750  ;;  %v3981_v48 = vsel %vm1865_vm8, %v3949_v47, %v3497_v38  ;;  %v3854_v5 = vsel %vm1733_vm4, %v3822_v34, %v9968_v63  ;;  %v9969_v38 = vld [vmem:[#allocation22_spill] sm:$0xff] }
 0x588   : > { %v4044_v44 = vsel %vm1931_vm10, %v4012_v60, %v3751_v30  ;;  %v3886_v26 = vsel %vm1766_vm5, %v3854_v5, %v9969_v38  ;;  %v5440_v5 = vld [vmem:[#allocation3 + $0x170] sm:$0xff]  ;;  %v9973_v38 = vld [vmem:[#allocation161_spill] sm:$0xff] }
 0x589   : > { %5330 = vmatprep.mubr.msk.f32.mxu1 %vm1969_vm11, %v4044_v44  ;;  %v3625_v24 = vpop.permute.xlu0 %3624 }
 0x58a   : > { %v4013_v1 = vsel %vm1898_vm9, %v3981_v48, %v3625_v24  ;;  %v5439_v24 = vld [vmem:[#allocation3 + $0x158] sm:$0xff] }
 0x58b   : > { %v3371_v53 = vpop.permute.xlu1 %3370  ;;  %v5302_v33 = vpop.f32.mrf.mxu1  ;;  %v3823_v18 = vsel %vm309_vm0, %v5439_v24, %v9970_v41  ;;  %v9975_v41 = vld [vmem:[#allocation82_spill] sm:$0xff] }
 0x58c   : > { %v4393_v52 = vmul.f32 %v5302_v33, %v8528_v61  ;;  %v3855_v22 = vsel %vm1733_vm4, %v3823_v18, %v9971_v37 }
 0x58d   : > { %v4250_v14 = vpop.f32.mrf.mxu1  ;;  %v3245_v62 = vpop.permute.xlu0 %3244 }
 0x58e   : > { %v4432_v46 = vadd.f32 %v8542_v55, %v4393_v52  ;;  %v4392_v12 = vmul.f32 %v8528_v61, %v4250_v14 }
 0x58f   : > { %v3373_v10 = vpop.permute.xlu1 %3372 }
 0x590   : > { %v4464_v29 = vmax.f32 %v4432_v46, 0.0  ;;  %v4431_v40 = vadd.f32 %v8542_v55, %v4392_v12 }
 0x591   : > { %v3753_v49 = vpop.permute.xlu0 %3752 }
 0x592   : > { %v8690_v35 = vrot.slane %v4464_v29, 5  ;;  %v4463_v17 = vmax.f32 %v4431_v40, 0.0  ;;  %v4045_v0 = vsel %vm1931_vm10, %v4013_v1, %v3753_v49 }
 0x593   : > { %v3501_v32 = vpop.permute.xlu1 %3500  ;;  %5331 = vmatmul.mubr.msk.f32.gmra.mxu1 %vm1969_vm11, %v4045_v0 }
 0x594   : > { %v8698_v56 = vrot.slane %v4463_v17, 5  ;;  %v4761_v42 = vsel %vm4512_vm13, %v8690_v35, %v4759_v9  ;;  %v4795_v57 = vsel %vm4515_vm14, %v8690_v35, %v4794_v20  ;;  %v4823_v51 = vsel %vm4518_vm15, %v8690_v35, %v4822_v31 }
 0x595   : > { %v3499_v54 = vpop.permute.xlu0 %3498  ;;  %v4851_v36 = vsel %vm4521_vm2, %v8690_v35, %v4850_v16  ;;  %v8710_v60 = vsel %vm4524_vm3, %v8690_v35, %v4878_v59  ;;  %v4934_v30 = vsel %vm4506_vm1, %v8690_v35, %v8618_v39  ;;  %v3918_v9 = vsel %vm1799_vm6, %v3886_v26, %v3243_v27 }
 0x596   : > { %v4574_v20 = vsel %vm4518_vm15, %v8698_v56, %v4573_v45  ;;  %v4602_v31 = vsel %vm4521_vm2, %v8698_v56, %v4601_v19  ;;  %v8724_v16 = vsel %vm4524_vm3, %v8698_v56, %v4629_v11  ;;  %v4685_v59 = vsel %vm4506_vm1, %v8698_v56, %v8627_v8 }
 0x597   : > { %v8718_v44 = vpop.permute.xlu1 %3246  ;;  %v4713_v39 = vsel %vm4509_vm12, %v8698_v56, %v4712_v4  ;;  %v3950_v27 = vsel %vm1832_vm7, %v3918_v9, %v3371_v53  ;;  %v4962_v45 = vsel %vm4509_vm12, %v8690_v35, %v4961_v25  ;;  %v9972_v53 = vld [vmem:[#allocation106_spill] sm:$0xff] }
 0x598   : > { %v3982_v6 = vsel %vm1865_vm8, %v3950_v27, %v3499_v54  ;;  %v3887_v25 = vsel %vm1766_vm5, %v3855_v22, %v9972_v53  ;;  %v9977_v22 = vld [vmem:[#allocation167_spill] sm:$0xff] }
 0x599   : > { %v3627_v7 = vpop.permute.xlu0 %3626  ;;  %v3919_v52 = vsel %vm1799_vm6, %v3887_v25, %v3245_v62 }
 0x59a   : > { %v4014_v19 = vsel %vm1898_vm9, %v3982_v6, %v3627_v7  ;;  %v3951_v29 = vsel %vm1832_vm7, %v3919_v52, %v3373_v10  ;;  %v3825_v10 = vsel %vm309_vm0, %v5440_v5, %v9973_v38 }
 0x59b   : > { %v3755_v28 = vpop.permute.xlu1 %3754  ;;  %v3983_v1 = vsel %vm1865_vm8, %v3951_v29, %v3501_v32 }
 0x59c   : > { %v4046_v11 = vsel %vm1931_vm10, %v4014_v19, %v3755_v28  ;;  %v5441_v28 = vld [vmem:[#allocation3 + $0x168] sm:$0xff] }
 0x59d   : > { %5333 = vmatprep.mubr.msk.f32.mxu1 %vm1969_vm11, %v4046_v11  ;;  %v3629_v4 = vpop.permute.xlu0 %3628  ;;  %v9974_v11 = vld [vmem:[#allocation31_spill] sm:$0xff] }
 0x59e   : > { %v4015_v15 = vsel %vm1898_vm9, %v3983_v1, %v3629_v4  ;;  %v3824_v24 = vsel %vm309_vm0, %v5441_v28, %v9974_v11  ;;  %v9976_v4 = vld [vmem:[#allocation101_spill] sm:$0xff] }
 0x59f   : > { %v3375_v33 = vpop.permute.xlu1 %3374  ;;  %v5305_v13 = vpop.f32.mrf.mxu1  ;;  %v3856_v37 = vsel %vm1733_vm4, %v3824_v24, %v9976_v4 }
 0x5a0   : > { %v4395_v14 = vmul.f32 %v5305_v13, %v8528_v61 }
 0x5a1   : > { %v4260_v46 = vpop.f32.mrf.mxu1  ;;  %v3249_v12 = vpop.permute.xlu0 %3248 }
 0x5a2   : > { %v4434_v47 = vadd.f32 %v8542_v55, %v4395_v14  ;;  %v4394_v48 = vmul.f32 %v8528_v61, %v4260_v46 }
 0x5a3   : > { %v3377_v40 = vpop.permute.xlu1 %3376 }
 0x5a4   : > { %v4466_v49 = vmax.f32 %v4434_v47, 0.0  ;;  %v4433_v58 = vadd.f32 %v8542_v55, %v4394_v48 }
 0x5a5   : > { %v3757_v34 = vpop.permute.xlu0 %3756 }
 0x5a6   : > { %v4762_v62 = vrot.slane %v4466_v49, 4  ;;  %v4465_v17 = vmax.f32 %v4433_v58, 0.0  ;;  %v4047_v0 = vsel %vm1931_vm10, %v4015_v15, %v3757_v34 }
 0x5a7   : > { %v3505_v63 = vpop.permute.xlu1 %3504  ;;  %5334 = vmatmul.mubr.msk.f32.gmra.mxu1 %vm1969_vm11, %v4047_v0 }
 0x5a8   : > { %v8756_v26 = vrot.slane %v4465_v17, 4  ;;  %v4763_v32 = vsel %vm4515_vm14, %v4762_v62, %v4761_v42  ;;  %v4796_v54 = vsel %vm4518_vm15, %v4762_v62, %v4795_v57  ;;  %v4824_v27 = vsel %vm4521_vm2, %v4762_v62, %v4823_v51 }
 0x5a9   : > { %v3503_v9 = vpop.permute.xlu0 %3502  ;;  %v8762_v6 = vsel %vm4524_vm3, %v4762_v62, %v4851_v36  ;;  %v4907_v7 = vsel %vm4506_vm1, %v4762_v62, %v8690_v35  ;;  %v4935_v19 = vsel %vm4509_vm12, %v4762_v62, %v4934_v30  ;;  %v3857_v42 = vsel %vm1733_vm4, %v3825_v10, %v9975_v41 }
 0x5aa   : > { %v4575_v57 = vsel %vm4521_vm2, %v8756_v26, %v4574_v20  ;;  %v8775_v51 = vsel %vm4524_vm3, %v8756_v26, %v4602_v31  ;;  %v4658_v35 = vsel %vm4506_vm1, %v8756_v26, %v8698_v56  ;;  %v4686_v36 = vsel %vm4509_vm12, %v8756_v26, %v4685_v59  ;;  %v9978_v31 = vld [vmem:[#allocation43_spill] sm:$0xff] }
 0x5ab   : > { %v3633_v18 = vpop.permute.xlu1 %3632  ;;  %v4714_v30 = vsel %vm4512_vm13, %v8756_v26, %v4713_v39  ;;  %v3889_v20 = vsel %vm1766_vm5, %v3857_v42, %v9977_v22  ;;  %v4963_v53 = vsel %vm4512_vm13, %v4762_v62, %v4962_v45  ;;  %v3888_v25 = vsel %vm1766_vm5, %v3856_v37, %v9978_v31 }
 0x5ac   : > { %v3921_v13 = vsel %vm1799_vm6, %v3889_v20, %v3249_v12  ;;  %v3920_v59 = vsel %vm1799_vm6, %v3888_v25, %v8718_v44  ;;  %vm4566_vm4 = vcmask 64545   ;;  %vm4594_vm5 = vcmask 97346  }
 0x5ad   : > { %v3631_v52 = vpop.permute.xlu0 %3630  ;;  %v3952_v14 = vsel %vm1832_vm7, %v3920_v59, %v3375_v33  ;;  %v3953_v39 = vsel %vm1832_vm7, %v3921_v13, %v3377_v40  ;;  %vm4570_vm6 = vcmask 57376   ;;  %vm4598_vm7 = vcmask 91200  }
 0x5ae   : > { %v3984_v46 = vsel %vm1865_vm8, %v3952_v14, %v3503_v9  ;;  %v3985_v48 = vsel %vm1865_vm8, %v3953_v39, %v3505_v63  ;;  %vm4596_vm8 = vcmask 97344  }
 0x5af   : > { %v3761_v47 = vpop.permute.xlu1 %3760  ;;  %v4016_v45 = vsel %vm1898_vm9, %v3984_v46, %v3631_v52  ;;  %v4017_v1 = vsel %vm1898_vm9, %v3985_v48, %v3633_v18  ;;  %vm4624_vm9 = vcmask 130144  }
 0x5b0   : > { %v4049_v49 = vsel %vm1931_vm10, %v4017_v1, %v3761_v47 }
 0x5b1   : > { %v3759_v29 = vpop.permute.xlu0 %3758 }
 0x5b2   : > { %v4048_v12 = vsel %vm1931_vm10, %v4016_v45, %v3759_v29  ;;  %vm4622_vm10 = vcmask 130147  }
 0x5b3   : > { %v5308_v58 = vpop.f32.mrf.mxu1  ;;  %5336 = vmatprep.mubr.msk.f32.mxu1 %vm1969_vm11, %v4048_v12 }
 0x5b4   : > { %v4397_v44 = vmul.f32 %v5308_v58, %v8528_v61  ;;  %5337 = vmatmul.mubr.msk.f32.gmra.mxu1 %vm1969_vm11, %v4049_v49  ;;  %vm4650_vm11 = vcmask 162948  }
 0x5b5   : > { %v4270_v33 = vpop.f32.mrf.mxu1 }
 0x5b6   : > { %v4436_v40 = vadd.f32 %v8542_v55, %v4397_v44  ;;  %v4396_v15 = vmul.f32 %v8528_v61, %v4270_v33 }
 0x5b8   : > { %v4468_v34 = vmax.f32 %v4436_v40, 0.0  ;;  %v4435_v17 = vadd.f32 %v8542_v55, %v4396_v15 }
 0x5ba   : > { %v4764_v0 = vrot.slane %v4468_v34, 3  ;;  %v4467_v63 = vmax.f32 %v4435_v17, 0.0  ;;  %v4507_v17 = vsel %vm4506_vm1, %v8606_v3, %v8613_v43 }
 0x5bc   : > { %v4517_v5 = vrot.slane %v4467_v63, 3  ;;  %v4765_v38 = vsel %vm4518_vm15, %v4764_v0, %v4763_v32  ;;  %v4797_v10 = vsel %vm4521_vm2, %v4764_v0, %v4796_v54  ;;  %v8811_v9 = vsel %vm4524_vm3, %v4764_v0, %v4824_v27 }
 0x5bd   : > { %v4880_v28 = vsel %vm4506_vm1, %v4764_v0, %v4762_v62  ;;  %v4908_v11 = vsel %vm4509_vm12, %v4764_v0, %v4907_v7  ;;  %v4936_v24 = vsel %vm4512_vm13, %v4764_v0, %v4935_v19  ;;  %v4964_v41 = vsel %vm4515_vm14, %v4764_v0, %v4963_v53 }
 0x5be   : > { %v8818_v42 = vsel %vm4524_vm3, %v4517_v5, %v4575_v57  ;;  %v4631_v18 = vsel %vm4506_vm1, %v4517_v5, %v8756_v26  ;;  %v4659_v32 = vsel %vm4509_vm12, %v4517_v5, %v4658_v35  ;;  %v4687_v54 = vsel %vm4512_vm13, %v4517_v5, %v4686_v36 }
 0x5bf   : > { %v4715_v27 = vsel %vm4515_vm14, %v4517_v5, %v4714_v30  ;;  %v4544_v57 = vsel %vm4509_vm12, %v8606_v3, %v8613_v43 }
 0x5c0   : > { %v4545_v35 = vsel %vm4512_vm13, %v8627_v8, %v4544_v57 }
 0x5c1   : > { %v4546_v36 = vsel %vm4515_vm14, %v8698_v56, %v4545_v35 }
 0x5c2   : > { %v4547_v31 = vsel %vm4518_vm15, %v8756_v26, %v4546_v36 }
 0x5c3   : > { %v4548_v25 = vsel %vm4521_vm2, %v4517_v5, %v4547_v31 }
 0x5c7   : > { %v5311_v4 = vpop.f32.mrf.mxu1 }
 0x5c8   : > { %v4399_v62 = vmul.f32 %v5311_v4, %v8528_v61 }
 0x5c9   : > { %v4280_v7 = vpop.f32.mrf.mxu1 }
 0x5ca   : > { %v4438_v19 = vadd.f32 %v8542_v55, %v4399_v62  ;;  %v4398_v37 = vmul.f32 %v8528_v61, %v4280_v7 }
 0x5cc   : > { %v4470_v22 = vmax.f32 %v4438_v19, 0.0  ;;  %v4437_v20 = vadd.f32 %v8542_v55, %v4398_v37 }
 0x5ce   : > { %v4766_v30 = vrot.slane %v4470_v22, 2  ;;  %v4469_v53 = vmax.f32 %v4437_v20, 0.0 }
 0x5d0   : > { %v4520_v13 = vrot.slane %v4469_v53, 2  ;;  %v4767_v52 = vsel %vm4521_vm2, %v4766_v30, %v4765_v38  ;;  %v8841_v59 = vsel %vm4524_vm3, %v4766_v30, %v4797_v10  ;;  %v4853_v14 = vsel %vm4506_vm1, %v4766_v30, %v4764_v0 }
 0x5d1   : > { %v4881_v39 = vsel %vm4509_vm12, %v4766_v30, %v4880_v28  ;;  %v4909_v46 = vsel %vm4512_vm13, %v4766_v30, %v4908_v11  ;;  %v4937_v47 = vsel %vm4515_vm14, %v4766_v30, %v4936_v24  ;;  %v4965_v48 = vsel %vm4518_vm15, %v4766_v30, %v4964_v41 }
 0x5d2   : > { %v4549_v45 = vsel %vm4524_vm3, %v4520_v13, %v4548_v25  ;;  %v4604_v29 = vsel %vm4506_vm1, %v4520_v13, %v4517_v5  ;;  %v4632_v1 = vsel %vm4509_vm12, %v4520_v13, %v4631_v18  ;;  %v4660_v12 = vsel %vm4512_vm13, %v4520_v13, %v4659_v32 }
 0x5d3   : > { %4557 = vrot.lane.b32.xlu0 %v4549_v45, %s5505_s18  ;;  %v4688_v49 = vsel %vm4515_vm14, %v4520_v13, %v4687_v54  ;;  %v4716_v58 = vsel %vm4518_vm15, %v4520_v13, %v4715_v27  ;;  %v4510_v0 = vsel %vm4509_vm12, %v8627_v8, %v4507_v17 }
 0x5d4   : > { %v4513_v10 = vsel %vm4512_vm13, %v8698_v56, %v4510_v0 }
 0x5d5   : > { %v4516_v28 = vsel %vm4515_vm14, %v8756_v26, %v4513_v10 }
 0x5d6   : > { %v4519_v41 = vsel %vm4518_vm15, %v4517_v5, %v4516_v28 }
 0x5d7   : > { %v4522_v18 = vsel %vm4521_vm2, %v4520_v13, %v4519_v41 }
 0x5db   : > { %v5314_v44 = vpop.f32.mrf.mxu1 }
 0x5dc   : > { %v4401_v33 = vmul.f32 %v5314_v44, %v8528_v61 }
 0x5dd   : > { %v4290_v40 = vpop.f32.mrf.mxu1 }
 0x5de   : > { %v4440_v15 = vadd.f32 %v8542_v55, %v4401_v33  ;;  %v4400_v34 = vmul.f32 %v8528_v61, %v4290_v40 }
 0x5e0   : > { %v4472_v63 = vmax.f32 %v4440_v15, 0.0  ;;  %v4439_v38 = vadd.f32 %v8542_v55, %v4400_v34 }
 0x5e2   : > { %v4768_v11 = vrot.slane %v4472_v63, 1  ;;  %v4471_v24 = vmax.f32 %v4439_v38, 0.0 }
 0x5e4   : > { %v8873_v32 = vrot.slane %v4471_v24, 1  ;;  %v8876_v8 = vsel %vm4524_vm3, %v4768_v11, %v4767_v52  ;;  %v4826_v54 = vsel %vm4506_vm1, %v4768_v11, %v4766_v30  ;;  %v4854_v56 = vsel %vm4509_vm12, %v4768_v11, %v4853_v14 }
 0x5e5   : > { %v4882_v27 = vsel %vm4512_vm13, %v4768_v11, %v4881_v39  ;;  %v4910_v26 = vsel %vm4515_vm14, %v4768_v11, %v4909_v46  ;;  %v4938_v4 = vsel %vm4518_vm15, %v4768_v11, %v4937_v47  ;;  %v4966_v62 = vsel %vm4521_vm2, %v4768_v11, %v4965_v48 }
 0x5e6   : > { %v4525_v5 = vsel %vm4524_vm3, %v8873_v32, %v4522_v18  ;;  %v8888_v7 = vsel %vm4506_vm1, %v8873_v32, %v4520_v13  ;;  %v8892_v19 = vsel %vm4509_vm12, %v8873_v32, %v4604_v29  ;;  %v8896_v37 = vsel %vm4512_vm13, %v8873_v32, %v4632_v1 }
 0x5e7   : > { %4542 = vst.msk [vmem:[%s8898_s17] sm:$0xff] %vm309_vm0, %v4525_v5  ;;  %v8904_v57 = vsel %vm4515_vm14, %v8873_v32, %v4660_v12  ;;  %v8908_v22 = vsel %vm4518_vm15, %v8873_v32, %v4688_v49  ;;  %v8912_v20 = vsel %vm4521_vm2, %v8873_v32, %v4716_v58 }
 0x5ef   : > { %v5317_v35 = vpop.f32.mrf.mxu1 }
 0x5f0   : > { %v4403_v36 = vmul.f32 %v5317_v35, %v8528_v61 }
 0x5f1   : > { %v4300_v47 = vpop.f32.mrf.mxu1 }
 0x5f2   : > { %v4442_v30 = vadd.f32 %v8542_v55, %v4403_v36 }
 0x5f4   : > { %v4474_v53 = vmax.f32 %v4442_v30, 0.0 }
 0x5f6   : > { %v4799_v31 = vsel %vm4506_vm1, %v4474_v53, %v4768_v11  ;;  %v4827_v25 = vsel %vm4509_vm12, %v4474_v53, %v4826_v54  ;;  %v4855_v13 = vsel %vm4512_vm13, %v4474_v53, %v4854_v56  ;;  %v4883_v52 = vsel %vm4515_vm14, %v4474_v53, %v4882_v27 }
 0x5f7   : > { %v4911_v14 = vsel %vm4518_vm15, %v4474_v53, %v4910_v26  ;;  %v4939_v39 = vsel %vm4521_vm2, %v4474_v53, %v4938_v4  ;;  %v8923_v46 = vsel %vm4524_vm3, %v4474_v53, %v4966_v62 }
 0x603   : > { %v5320_v48 = vpop.f32.mrf.mxu1 }
 0x604   : > { %v4405_v45 = vmul.f32 %v5320_v48, %v8528_v61 }
 0x605   : > { %v4310_v17 = vpop.f32.mrf.mxu1 }
 0x606   : > { %v4444_v29 = vadd.f32 %v8542_v55, %v4405_v45 }
 0x608   : > { %v4476_v1 = vmax.f32 %v4444_v29, 0.0 }
 0x60a   : > { %v4770_v12 = vrot.slane %v4476_v1, 7 }
 0x60c   : > { %v4771_v49 = vsel %vm4506_vm1, %v4770_v12, %v4474_v53  ;;  %v4800_v58 = vsel %vm4509_vm12, %v4770_v12, %v4799_v31  ;;  %v4828_v44 = vsel %vm4512_vm13, %v4770_v12, %v4827_v25  ;;  %v4856_v33 = vsel %vm4515_vm14, %v4770_v12, %v4855_v13 }
 0x60d   : > { %v4884_v40 = vsel %vm4518_vm15, %v4770_v12, %v4883_v52  ;;  %v4912_v15 = vsel %vm4521_vm2, %v4770_v12, %v4911_v14  ;;  %v8934_v34 = vsel %vm4524_vm3, %v4770_v12, %v4939_v39  ;;  %v4404_v53 = vmul.f32 %v8528_v61, %v4310_v17 }
 0x60e   : > { %v4402_v52 = vmul.f32 %v8528_v61, %v4300_v47 }
 0x60f   : > { %v4443_v39 = vadd.f32 %v8542_v55, %v4404_v53 }
 0x610   : > { %v4441_v1 = vadd.f32 %v8542_v55, %v4402_v52 }
 0x617   : > { %v5323_v0 = vpop.f32.mrf.mxu1 }
 0x618   : > { %v4407_v63 = vmul.f32 %v5323_v0, %v8528_v61 }
 0x619   : > { %v4320_v4 = vpop.f32.mrf.mxu1 }
 0x61a   : > { %v4446_v38 = vadd.f32 %v8542_v55, %v4407_v63  ;;  %v4406_v31 = vmul.f32 %v8528_v61, %v4320_v4 }
 0x61c   : > { %v4478_v10 = vmax.f32 %v4446_v38, 0.0  ;;  %v4445_v45 = vadd.f32 %v8542_v55, %v4406_v31 }
 0x61e   : > { %v8938_v28 = vrot.slane %v4478_v10, 6 }
 0x620   : > { %v8942_v11 = vsel %vm4509_vm12, %v8938_v28, %v4771_v49  ;;  %v8946_v24 = vsel %vm4512_vm13, %v8938_v28, %v4800_v58  ;;  %v8950_v41 = vsel %vm4515_vm14, %v8938_v28, %v4828_v44  ;;  %v8954_v18 = vsel %vm4518_vm15, %v8938_v28, %v4856_v33 }
 0x621   : > { %v8958_v54 = vsel %vm4521_vm2, %v8938_v28, %v4884_v40  ;;  %v8962_v56 = vsel %vm4524_vm3, %v8938_v28, %v4912_v15  ;;  %v8966_v27 = vsel %vm4506_vm1, %v8938_v28, %v4770_v12  ;;  %v4475_v49 = vmax.f32 %v4443_v39, 0.0 }
 0x622   : > { %v4477_v44 = vmax.f32 %v4445_v45, 0.0  ;;  %v8989_v40 = vmax.f32 %v4441_v1, 0.0 }
 0x623   : > { %v8991_v17 = vrot.slane %v4475_v49, 7 }
 0x624   : > { %v8993_v38 = vrot.slane %v4477_v44, 6 }
 0x625   : > { %v4527_v49 = vsel %vm4506_vm1, %v8991_v17, %v8989_v40 }
 0x626   : > { %v4529_v44 = vsel %vm4509_vm12, %v8993_v38, %v4527_v49 }
 0x62b   : > { %v8969_v62 = vpop.f32.mrf.mxu1 }
 0x62d   : > { %v4330_v5 = vpop.f32.mrf.mxu1 }
 0x62e   : > { %v4408_v13 = vmul.f32 %v8528_v61, %v4330_v5 }
 0x630   : > { %v4447_v29 = vadd.f32 %v8542_v55, %v4408_v13 }
 0x632   : > { %v4479_v33 = vmax.f32 %v4447_v29, 0.0 }
 0x63f   : > { %v8971_v35 = vpop.f32.mrf.mxu1 }
 0x641   : > { %v4340_v36 = vpop.f32.mrf.mxu1 }
 0x642   : > { %v4410_v14 = vmul.f32 %v8528_v61, %v4340_v36  ;;  %v4550_v36 = vsel %vm4506_vm1, %v8989_v40, %v8873_v32 }
 0x643   : > { %v4551_v31 = vsel %vm4509_vm12, %v8991_v17, %v4550_v36 }
 0x644   : > { %v4449_v12 = vadd.f32 %v8542_v55, %v4410_v14  ;;  %v4552_v13 = vsel %vm4512_vm13, %v8993_v38, %v4551_v31 }
 0x645   : > { %v4558_v26 = vpop.permute.xlu0 %4557 }
 0x646   : > { %4567 = vst.msk [vmem:[%s8898_s17 - $0x1] sm:$0xfe] %vm4566_vm4, %v4558_v26  ;;  %v4481_v15 = vmax.f32 %v4449_v12, 0.0  ;;  %v8996_v26 = vrot.slane %v4479_v33, 5  ;;  %vm4710_vm4 = vcmask 226496  }
 0x648   : > { %v8998_v4 = vrot.slane %v4481_v15, 4  ;;  %v4553_v52 = vsel %vm4515_vm14, %v8996_v26, %v4552_v13  ;;  %v4531_v33 = vsel %vm4512_vm13, %v8996_v26, %v4529_v44 }
 0x64a   : > { %v4554_v39 = vsel %vm4518_vm15, %v8998_v4, %v4553_v52 }
 0x653   : > { %v8973_v30 = vpop.f32.mrf.mxu1 }
 0x655   : > { %v4350_v25 = vpop.f32.mrf.mxu1 }
 0x656   : > { %v4412_v48 = vmul.f32 %v8528_v61, %v4350_v25 }
 0x658   : > { %v4451_v58 = vadd.f32 %v8542_v55, %v4412_v48 }
 0x65a   : > { %v4483_v0 = vmax.f32 %v4451_v58, 0.0 }
 0x65c   : > { %v9004_v53 = vrot.slane %v4483_v0, 3  ;;  %v4533_v0 = vsel %vm4515_vm14, %v8998_v4, %v4531_v33 }
 0x65e   : > { %v4555_v32 = vsel %vm4521_vm2, %v9004_v53, %v4554_v39 }
 0x667   : > { %v8987_v47 = vpop.f32.mrf.mxu1 }
 0x669   : > { %v4360_v63 = vpop.f32.mrf.mxu1 }
 0x66a   : > { %v4414_v10 = vmul.f32 %v8528_v61, %v4360_v63 }
 0x66c   : > { %v4453_v5 = vadd.f32 %v8542_v55, %v4414_v10  ;;  %v4535_v10 = vsel %vm4518_vm15, %v9004_v53, %v4533_v0 }
 0x66e   : > { %v4485_v25 = vmax.f32 %v4453_v5, 0.0 }
 0x670   : > { %v9012_v14 = vrot.slane %v4485_v25, 2 }
 0x672   : > { %v4556_v48 = vsel %vm4524_vm3, %v9012_v14, %v4555_v32  ;;  %v4537_v31 = vsel %vm4521_vm2, %v9012_v14, %v4535_v10  ;;  %v4409_v10 = vmul.f32 %v8969_v62, %v8528_v61  ;;  %v4413_v62 = vmul.f32 %v8973_v30, %v8528_v61 }
 0x673   : > { %4559 = vrot.lane.b32.xlu1 %v4556_v48, %s5505_s18 }
 0x674   : > { %v9021_v45 = vpop.f32.mrf.mxu1 }
 0x675   : > { %v4417_v30 = vmul.f32 %v9021_v45, %v8528_v61 }
 0x676   : > { %v4370_v29 = vpop.f32.mrf.mxu1 }
 0x677   : > { %v4416_v1 = vmul.f32 %v8528_v61, %v4370_v29  ;;  %4585 = vrot.lane.b32.xlu1 %v8818_v42, %s5506_s19  ;;  %v4578_v42 = vsel %vm4509_vm12, %v8989_v40, %v8888_v7  ;;  %v4606_v7 = vsel %vm4512_vm13, %v8989_v40, %v8892_v19 }
 0x678   : > { %v4579_v63 = vsel %vm4512_vm13, %v8991_v17, %v4578_v42  ;;  %v4607_v13 = vsel %vm4515_vm14, %v8991_v17, %v4606_v7  ;;  %v4662_v42 = vsel %vm4518_vm15, %v8989_v40, %v8904_v57  ;;  %v4684_v57 = vsel %vm4524_vm3, %v8606_v3, %v8613_v43 }
 0x679   : > { %v4455_v12 = vadd.f32 %v8542_v55, %v4416_v1  ;;  %v4580_v36 = vsel %vm4515_vm14, %v8993_v38, %v4579_v63  ;;  %v4608_v19 = vsel %vm4518_vm15, %v8993_v38, %v4607_v13  ;;  %v4611_v1 = vsel %vm4506_vm1, %v9012_v14, %v9004_v53 }
 0x67a   : > { %v4581_v25 = vsel %vm4518_vm15, %v8996_v26, %v4580_v36  ;;  %v4609_v48 = vsel %vm4521_vm2, %v8996_v26, %v4608_v19  ;;  %v4663_v63 = vsel %vm4521_vm2, %v8991_v17, %v4662_v42  ;;  %v4665_v36 = vsel %vm4506_vm1, %v8998_v4, %v8996_v26 }
 0x67b   : > { %v4487_v58 = vmax.f32 %v4455_v12, 0.0  ;;  %v4582_v39 = vsel %vm4521_vm2, %v8998_v4, %v4581_v25  ;;  %v4610_v29 = vsel %vm4524_vm3, %v8998_v4, %v4609_v48  ;;  %v4638_v12 = vsel %vm4506_vm1, %v9004_v53, %v8998_v4 }
 0x67c   : > { %v4583_v32 = vsel %vm4524_vm3, %v9004_v53, %v4582_v39  ;;  %v4692_v7 = vsel %vm4506_vm1, %v8996_v26, %v8993_v38  ;;  %v4415_v3 = vmul.f32 %v8987_v47, %v8528_v61  ;;  %v4448_v13 = vadd.f32 %v8542_v55, %v4409_v10 }
 0x67d   : > { %v9034_v15 = vrot.slane %v4487_v58, 1  ;;  %v4639_v58 = vsel %vm4509_vm12, %v9012_v14, %v4638_v12 }
 0x67e   : > { %v4454_v48 = vadd.f32 %v8542_v55, %v4415_v3  ;;  %v4480_v45 = vmax.f32 %v4448_v13, 0.0 }
 0x67f   : > { %4561 = vrot.lane.b32.xlu0 %v9034_v15, %s5505_s18  ;;  %v4584_v5 = vsel %vm4506_vm1, %v9034_v15, %v9012_v14  ;;  %v4539_v52 = vsel %vm4524_vm3, %v9034_v15, %v4537_v31  ;;  %v4612_v49 = vsel %vm4509_vm12, %v9034_v15, %v4611_v1  ;;  %s5513_s18 = smov 36  }
 0x680   : > { %4589 = vrot.lane.b32.xlu1 %v4584_v5, %s5506_s19  ;;  %4543 = vst.msk [vmem:[%s8898_s17 + $0x8] sm:$0xff] %vm309_vm0, %v4539_v52  ;;  %v4411_v5 = vmul.f32 %v8971_v35, %v8528_v61  ;;  %v4693_v35 = vsel %vm4509_vm12, %v8998_v4, %v4692_v7  ;;  %v4690_v61 = vsel %vm4521_vm2, %v8989_v40, %v8908_v22  ;;  %vm4568_vm0 = vcmask 64544  }
 0x681   : > { %v4694_v25 = vsel %vm4512_vm13, %v9004_v53, %v4693_v35  ;;  %v4691_v1 = vsel %vm4524_vm3, %v8991_v17, %v4690_v61  ;;  %v4719_v22 = vsel %vm4506_vm1, %v8993_v38, %v8991_v17 }
 0x682   : > { %v4695_v39 = vsel %vm4515_vm14, %v9012_v14, %v4694_v25  ;;  %v4450_v19 = vadd.f32 %v8542_v55, %v4411_v5 }
 0x683   : > { %4587 = vrot.lane.b32.xlu0 %v4583_v32, %s5506_s19  ;;  %v4696_v47 = vsel %vm4518_vm15, %v9034_v15, %v4695_v39  ;;  %v4452_v32 = vadd.f32 %v8542_v55, %v4413_v62 }
 0x684   : > { %4615 = vrot.lane.b32.xlu1 %v4610_v29, %s5507_s20  ;;  %v4456_v29 = vadd.f32 %v8542_v55, %v4417_v30  ;;  %v4482_v12 = vmax.f32 %v4450_v19, 0.0 }
 0x686   : > { %v4488_v55 = vmax.f32 %v4456_v29, 0.0 }
 0x687   : > { %4613 = vrot.lane.b32.xlu0 %v8775_v51, %s5507_s20  ;;  %v4640_v51 = vsel %vm4512_vm13, %v9034_v15, %v4639_v58  ;;  %v4484_v58 = vmax.f32 %v4452_v32, 0.0 }
 0x688   : > { %4641 = vrot.lane.b32.xlu1 %v8724_v16, %s5508_s21  ;;  %v4634_v16 = vsel %vm4515_vm14, %v8989_v40, %v8896_v37  ;;  %v4664_v37 = vsel %vm4524_vm3, %v8993_v38, %v4663_v63  ;;  %v9190_v42 = vrot.slane %v4488_v55, 1 }
 0x689   : > { %v4635_v44 = vsel %vm4518_vm15, %v8991_v17, %v4634_v16  ;;  %v9170_v16 = vrot.slane %v4480_v45, 5 }
 0x68a   : > { %v4636_v33 = vsel %vm4521_vm2, %v8993_v38, %v4635_v44  ;;  %v4720_v44 = vsel %vm4509_vm12, %v8996_v26, %v4719_v22 }
 0x68b   : > { %4617 = vrot.lane.b32.xlu0 %v4612_v49, %s5507_s20  ;;  %v4637_v0 = vsel %vm4524_vm3, %v8996_v26, %v4636_v33  ;;  %v4718_v49 = vsel %vm4524_vm3, %v8989_v40, %v8912_v20  ;;  %v9174_v33 = vrot.slane %v4482_v12, 4  ;;  %v4721_v20 = vsel %vm4512_vm13, %v8998_v4, %v4720_v44  ;;  %s5514_s20 = smov 40  }
 0x68c   : > { %4645 = vrot.lane.b32.xlu1 %v4640_v51, %s5508_s21  ;;  %v4486_v51 = vmax.f32 %v4454_v48, 0.0  ;;  %v9180_v40 = vrot.slane %v4484_v58, 3  ;;  %v4722_v17 = vsel %vm4515_vm14, %v9004_v53, %v4721_v20  ;;  %v4775_v4 = vsel %vm4512_vm13, %v9170_v16, %v8942_v11 }
 0x68d   : > { %v4723_v26 = vsel %vm4518_vm15, %v9012_v14, %v4722_v17  ;;  %v4802_v11 = vsel %vm4515_vm14, %v9170_v16, %v8946_v24  ;;  %v4830_v63 = vsel %vm4518_vm15, %v9170_v16, %v8950_v41  ;;  %v4941_v35 = vsel %vm4506_vm1, %v9170_v16, %v8938_v28 }
 0x68e   : > { %v9186_v38 = vrot.slane %v4486_v51, 2  ;;  %v4831_v10 = vsel %vm4521_vm2, %v9174_v33, %v4830_v63  ;;  %v4887_v7 = vsel %vm4506_vm1, %v9180_v40, %v9174_v33  ;;  %v4942_v3 = vsel %vm4509_vm12, %v9174_v33, %v4941_v35 }
 0x68f   : > { %4643 = vrot.lane.b32.xlu0 %v4637_v0, %s5508_s21  ;;  %v4832_v24 = vsel %vm4524_vm3, %v9180_v40, %v4831_v10  ;;  %s5515_s21 = smov 44  }
 0x690   : > { %4671 = vrot.lane.b32.xlu1 %v4664_v37, %s5509_s22  ;;  %v4833_v41 = vsel %vm4506_vm1, %v9190_v42, %v9186_v38  ;;  %v4860_v5 = vsel %vm4506_vm1, %v9186_v38, %v9180_v40  ;;  %v4888_v62 = vsel %vm4509_vm12, %v9186_v38, %v4887_v7 }
 0x693   : > { %4669 = vrot.lane.b32.xlu0 %v8661_v50, %s5509_s22  ;;  %v4666_v50 = vsel %vm4509_vm12, %v9004_v53, %v4665_v36  ;;  %v4886_v36 = vsel %vm4524_vm3, %v9170_v16, %v8958_v54 }
 0x694   : > { %4697 = vrot.lane.b32.xlu1 %v4684_v57, %s5510_s23  ;;  %v4667_v31 = vsel %vm4512_vm13, %v9012_v14, %v4666_v50  ;;  %v4861_v57 = vsel %vm4509_vm12, %v9190_v42, %v4860_v5 }
 0x695   : > { %v4668_v52 = vsel %vm4515_vm14, %v9034_v15, %v4667_v31  ;;  %v4969_v31 = vsel %vm4509_vm12, %v9170_v16, %v8966_v27 }
 0x696   : > { %v4970_v28 = vsel %vm4512_vm13, %v9174_v33, %v4969_v31 }
 0x697   : > { %4673 = vrot.lane.b32.xlu0 %v4668_v52, %s5509_s22  ;;  %s5516_s22 = smov 48  }
 0x698   : > { %4701 = vrot.lane.b32.xlu1 %v4696_v47, %s5510_s23 }
 0x69b   : > { %4699 = vrot.lane.b32.xlu0 %v4691_v1, %s5510_s23  ;;  %s5517_s23 = smov 52  }
 0x69c   : > { %4727 = vrot.lane.b32.xlu1 %v4718_v49, %s5511_s29 }
 0x69f   : > { %4725 = vrot.lane.b32.xlu0 %v8613_v43, %s5511_s29  ;;  %v4724_v43 = vsel %vm4521_vm2, %v9034_v15, %v4723_v26 }
 0x6a0   : > { %4784 = vrot.lane.b32.xlu1 %v8876_v8, %s5512_s14  ;;  %v4777_v8 = vsel %vm4515_vm14, %v9174_v33, %v4775_v4 }
 0x6a1   : > { %v4779_v53 = vsel %vm4518_vm15, %v9180_v40, %v4777_v8 }
 0x6a2   : > { %v4781_v14 = vsel %vm4521_vm2, %v9186_v38, %v4779_v53 }
 0x6a3   : > { %4729 = vrot.lane.b32.xlu0 %v4724_v43, %s5511_s29  ;;  %v4783_v15 = vsel %vm4524_vm3, %v9190_v42, %v4781_v14  ;;  %s5518_s29 = smov 56  }
 0x6a4   : > { %4806 = vrot.lane.b32.xlu1 %v8841_v59, %s5513_s18  ;;  %v4803_v59 = vsel %vm4518_vm15, %v9174_v33, %v4802_v11 }
 0x6a5   : > { %v4804_v0 = vsel %vm4521_vm2, %v9180_v40, %v4803_v59 }
 0x6a6   : > { %v4805_v37 = vsel %vm4524_vm3, %v9186_v38, %v4804_v0 }
 0x6a7   : > { %4786 = vrot.lane.b32.xlu0 %v4783_v15, %s5512_s14  ;;  %s5519_s14 = smov 60  }
 0x6a8   : > { %4810 = vrot.lane.b32.xlu1 %v9190_v42, %s5513_s18 }
 0x6ab   : > { %4808 = vrot.lane.b32.xlu0 %v4805_v37, %s5513_s18  ;;  %s9335_s18 = scalar_lea.hbm %s9390_s7, %s5148_s8 }
 0x6ac   : > { %4836 = vrot.lane.b32.xlu1 %v4832_v24, %s5514_s20 }
 0x6af   : > { %4834 = vrot.lane.b32.xlu0 %v8811_v9, %s5514_s20  ;;  %v4858_v9 = vsel %vm4521_vm2, %v9170_v16, %v8954_v18  ;;  %v4914_v18 = vsel %vm4506_vm1, %v9174_v33, %v9170_v16  ;;  %vm4678_vm1 = vcmask 195749  }
 0x6b0   : > { %4862 = vrot.lane.b32.xlu1 %v8762_v6, %s5515_s21  ;;  %v4859_v6 = vsel %vm4524_vm3, %v9174_v33, %v4858_v9  ;;  %v4915_v54 = vsel %vm4509_vm12, %v9180_v40, %v4914_v18  ;;  %vm4626_vm12 = vcmask 125024   ;;  %vm4682_vm3 = vcmask 192672  }
 0x6b3   : > { %4838 = vrot.lane.b32.xlu0 %v4833_v41, %s5514_s20  ;;  %s5442_s20 = scalar_lea.vmem %s9337_s9, 256 }
 0x6b4   : > { %4866 = vrot.lane.b32.xlu1 %v4861_v57, %s5515_s21  ;;  %p5443_p11 = scmp.ne.s32.totalorder %s9337_s9, %s5442_s20 }
 0x6b6   : > { %p5444_p12 = pnand %p5443_p11, %p5600_p5 }
 0x6b7   : > { %4864 = vrot.lane.b32.xlu0 %v4859_v6, %s5515_s21  ;;  %s5520_s21 = smov [#allocation4]  }
 0x6b8   : > { %4892 = vrot.lane.b32.xlu1 %v4886_v36, %s5516_s22  ;;  %p5445_p13 = pneg %p5444_p12 }
 0x6bb   : > { %4890 = vrot.lane.b32.xlu0 %v8710_v60, %s5516_s22  ;;  %v4889_v60 = vsel %vm4512_vm13, %v9190_v42, %v4888_v62 }
 0x6bc   : > { %4918 = vrot.lane.b32.xlu1 %v8644_v21, %s5517_s23  ;;  %v4916_v21 = vsel %vm4512_vm13, %v9186_v38, %v4915_v54 }
 0x6bd   : > { %v4917_v50 = vsel %vm4515_vm14, %v9190_v42, %v4916_v21 }
 0x6bf   : > { %4894 = vrot.lane.b32.xlu0 %v4889_v60, %s5516_s22  ;;  %s5446_s22 = sshll.u32 %s5520_s21, 4  ;;  %s5447_s22 = int_to_ptr.vmem [resolvable:$false] %s5446_s22 }
 0x6c0   : > { %4922 = vrot.lane.b32.xlu1 %v4917_v50, %s5517_s23  ;;  %p5449_p0 = scmp.lt.s32.totalorder %s9337_s9, %s5447_s22 }
 0x6c3   : > { %4920 = vrot.lane.b32.xlu0 %v8962_v56, %s5517_s23  ;;  %v4971_v56 = vsel %vm4515_vm14, %v9180_v40, %v4970_v28  ;;  %s5448_s23 = scalar_lea.vmem %s5447_s22, 512 }
 0x6c4   : > { %4948 = vrot.lane.b32.xlu1 %v8934_v34, %s5518_s29  ;;  %v4943_v34 = vsel %vm4512_vm13, %v9180_v40, %v4942_v3  ;;  %vm4654_vm13 = vcmask 158848   ;;  %p5450_p1 = scmp.lt.s32.totalorder %s5448_s23, %s5442_s20 }
 0x6c6   : > { %p5451_p2 = por %p5450_p1, %p5449_p0 }
 0x6c7   : > { %4946 = vrot.lane.b32.xlu0 %v8587_v2, %s5518_s29  ;;  %v4944_v2 = vsel %vm4515_vm14, %v9186_v38, %v4943_v34  ;;  %vm4652_vm14 = vcmask 162944  }
 0x6c8   : > { %4974 = vrot.lane.b32.xlu1 %v8551_v23, %s5519_s14  ;;  %v4945_v27 = vsel %vm4518_vm15, %v9190_v42, %v4944_v2  ;;  %v4972_v23 = vsel %vm4518_vm15, %v9186_v38, %v4971_v56  ;;  %vm4680_vm15 = vcmask 195744   ;;  %p5452_p3 = pnand %p5451_p2, %p5445_p13 }
 0x6c9   : > { %v4973_v25 = vsel %vm4521_vm2, %v9190_v42, %v4972_v23  ;;  %vm4706_vm2 = vcmask 228550  }
 0x6cb   : > { %4950 = vrot.lane.b32.xlu0 %v4945_v27, %s5518_s29 }
 0x6cc   : > { %4978 = vrot.lane.b32.xlu1 %v4973_v25, %s5519_s14 }
 0x6cf   : > { %4976 = vrot.lane.b32.xlu0 %v8923_v46, %s5519_s14 }
 0x6e5   : > { %v4560_v13 = vpop.permute.xlu1 %4559 }
 0x6e6   : > { %4569 = vst.msk [vmem:[%s8898_s17 + $0x7] sm:$0xff] %vm4568_vm0, %v4560_v13  ;;  %vm4708_vm0 = vcmask 228544  }
 0x6e9   : > { %v4586_v30 = vpop.permute.xlu1 %4585 }
 0x6ea   : > { %4595 = vst.msk [vmem:[%s8898_s17 - $0x2] sm:$0xfc] %vm4594_vm5, %v4586_v30  ;;  %vm4736_vm5 = vcmask 261344  }
 0x6f1   : > { %v4562_v52 = vpop.permute.xlu0 %4561 }
 0x6f2   : > { %4571 = vst.msk [vmem:[%s8898_s17 + $0xf] sm:$0x1] %vm4570_vm6, %v4562_v52  ;;  %v4590_v39 = vpop.permute.xlu1 %4589  ;;  %vm4734_vm6 = vcmask 261351  }
 0x6f3   : > { %4599 = vst.msk [vmem:[%s8898_s17 + $0xe] sm:$0x3] %vm4598_vm7, %v4590_v39  ;;  %vm4790_vm7 = vcmask 294144  }
 0x6f5   : > { %v4588_v46 = vpop.permute.xlu0 %4587 }
 0x6f6   : > { %4597 = vst.msk [vmem:[%s8898_s17 + $0x6] sm:$0xff] %vm4596_vm8, %v4588_v46  ;;  %v4616_v19 = vpop.permute.xlu1 %4615  ;;  %vm4738_vm8 = vcmask 260320  }
 0x6f7   : > { %4625 = vst.msk [vmem:[%s8898_s17 + $0x5] sm:$0xff] %vm4624_vm9, %v4616_v19  ;;  %vm4815_vm9 = vcmask 326945  }
 0x6f9   : > { %v4614_v47 = vpop.permute.xlu0 %4613 }
 0x6fa   : > { %4623 = vst.msk [vmem:[%s8898_s17 - $0x3] sm:$0xf8] %vm4622_vm10, %v4614_v47  ;;  %v4642_v32 = vpop.permute.xlu1 %4641  ;;  %vm4819_vm10 = vcmask 319776  }
 0x6fb   : > { %4651 = vst.msk [vmem:[%s8898_s17 - $0x4] sm:$0xf0] %vm4650_vm11, %v4642_v32  ;;  %vm4817_vm11 = vcmask 326944  }
 0x6fd   : > { %v4618_v48 = vpop.permute.xlu0 %4617 }
 0x6fe   : > { %4627 = vst.msk [vmem:[%s8898_s17 + $0xd] sm:$0x7] %vm4626_vm12, %v4618_v48  ;;  %v4646_v61 = vpop.permute.xlu1 %4645  ;;  %vm4845_vm12 = vcmask 359744  }
 0x6ff   : > { %4655 = vst.msk [vmem:[%s8898_s17 + $0xc] sm:$0xf] %vm4654_vm13, %v4646_v61  ;;  %vm4843_vm13 = vcmask 359746  }
 0x701   : > { %v4644_v45 = vpop.permute.xlu0 %4643 }
 0x702   : > { %4653 = vst.msk [vmem:[%s8898_s17 + $0x4] sm:$0xff] %vm4652_vm14, %v4644_v45  ;;  %v4672_v29 = vpop.permute.xlu1 %4671  ;;  %vm4871_vm14 = vcmask 392547  }
 0x703   : > { %4681 = vst.msk [vmem:[%s8898_s17 + $0x3] sm:$0xff] %vm4680_vm15, %v4672_v29  ;;  %vm4847_vm15 = vcmask 353600  }
 0x705   : > { %v4670_v1 = vpop.permute.xlu0 %4669 }
 0x706   : > { %4679 = vst.msk [vmem:[%s8898_s17 - $0x5] sm:$0xe0] %vm4678_vm1, %v4670_v1  ;;  %v4698_v12 = vpop.permute.xlu1 %4697  ;;  %vm4875_vm1 = vcmask 387424  }
 0x707   : > { %4707 = vst.msk [vmem:[%s8898_s17 - $0x6] sm:$0xc0] %vm4706_vm2, %v4698_v12  ;;  %vm4873_vm2 = vcmask 392544  }
 0x709   : > { %v4674_v49 = vpop.permute.xlu0 %4673 }
 0x70a   : > { %4683 = vst.msk [vmem:[%s8898_s17 + $0xb] sm:$0x1f] %vm4682_vm3, %v4674_v49  ;;  %v4702_v58 = vpop.permute.xlu1 %4701  ;;  %vm4901_vm3 = vcmask 425344  }
 0x70b   : > { %4711 = vst.msk [vmem:[%s8898_s17 + $0xa] sm:$0x3f] %vm4710_vm4, %v4702_v58  ;;  %vm4899_vm4 = vcmask 425348  }
 0x70d   : > { %v4700_v51 = vpop.permute.xlu0 %4699 }
 0x70e   : > { %4709 = vst.msk [vmem:[%s8898_s17 + $0x2] sm:$0xff] %vm4708_vm0, %v4700_v51  ;;  %v4728_v22 = vpop.permute.xlu1 %4727  ;;  %vm4927_vm0 = vcmask 458149  }
 0x70f   : > { %4737 = vst.msk [vmem:[%s8898_s17 + $0x1] sm:$0xff] %vm4736_vm5, %v4728_v22  ;;  %vm4903_vm5 = vcmask 421248  }
 0x711   : > { %v4726_v16 = vpop.permute.xlu0 %4725 }
 0x712   : > { %4735 = vst.msk [vmem:[%s8898_s17 - $0x7] sm:$0x80] %vm4734_vm6, %v4726_v16  ;;  %v4785_v55 = vpop.permute.xlu1 %4784  ;;  %vm4931_vm6 = vcmask 455072  }
 0x713   : > { %4791 = vst.msk [vmem:[%s8898_s17] sm:$0xff] %vm4790_vm7, %v4785_v55 }
 0x715   : > { %v4730_v44 = vpop.permute.xlu0 %4729 }
 0x716   : > { %4739 = vst.msk [vmem:[%s8898_s17 + $0x9] sm:$0x7f] %vm4738_vm8, %v4730_v44  ;;  %v4807_v33 = vpop.permute.xlu1 %4806  ;;  %vm4957_vm8 = vcmask 490944  }
 0x717   : > { %4816 = vst.msk [vmem:[%s8898_s17 - $0x1] sm:$0xfe] %vm4815_vm9, %v4807_v33  ;;  %vm4955_vm9 = vcmask 490950  }
 0x719   : > { %v4787_v20 = vpop.permute.xlu0 %4786 }
 0x71a   : > { %4792 = vst.msk [vmem:[%s8898_s17 + $0x8] sm:$0xff] %vm4790_vm7, %v4787_v20  ;;  %v4811_v40 = vpop.permute.xlu1 %4810  ;;  %vm4929_vm7 = vcmask 458144  }
 0x71b   : > { %4820 = vst.msk [vmem:[%s8898_s17 + $0xf] sm:$0x1] %vm4819_vm10, %v4811_v40  ;;  %vm4983_vm10 = vcmask 523751  }
 0x71d   : > { %v4809_v17 = vpop.permute.xlu0 %4808 }
 0x71e   : > { %4818 = vst.msk [vmem:[%s8898_s17 + $0x7] sm:$0xff] %vm4817_vm11, %v4809_v17  ;;  %v4837_v38 = vpop.permute.xlu1 %4836  ;;  %vm4959_vm11 = vcmask 488896  }
 0x71f   : > { %4846 = vst.msk [vmem:[%s8898_s17 + $0x6] sm:$0xff] %vm4845_vm12, %v4837_v38  ;;  %vm4987_vm12 = vcmask 522720  }
 0x721   : > { %v4835_v26 = vpop.permute.xlu0 %4834 }
 0x722   : > { %4844 = vst.msk [vmem:[%s8898_s17 - $0x2] sm:$0xfc] %vm4843_vm13, %v4835_v26  ;;  %v4863_v42 = vpop.permute.xlu1 %4862  ;;  %vm4985_vm13 = vcmask 523744  }
 0x723   : > { %4872 = vst.msk [vmem:[%s8898_s17 - $0x3] sm:$0xf8] %vm4871_vm14, %v4863_v42 }
 0x725   : > { %v4839_v43 = vpop.permute.xlu0 %4838 }
 0x726   : > { %4848 = vst.msk [vmem:[%s8898_s17 + $0xe] sm:$0x3] %vm4847_vm15, %v4839_v43  ;;  %v4867_v4 = vpop.permute.xlu1 %4866 }
 0x727   : > { %4876 = vst.msk [vmem:[%s8898_s17 + $0xd] sm:$0x7] %vm4875_vm1, %v4867_v4 }
 0x729   : > { %v4865_v8 = vpop.permute.xlu0 %4864 }
 0x72a   : > { %4874 = vst.msk [vmem:[%s8898_s17 + $0x5] sm:$0xff] %vm4873_vm2, %v4865_v8  ;;  %v4893_v53 = vpop.permute.xlu1 %4892 }
 0x72b   : > { %4902 = vst.msk [vmem:[%s8898_s17 + $0x4] sm:$0xff] %vm4901_vm3, %v4893_v53 }
 0x72d   : > { %v4891_v14 = vpop.permute.xlu0 %4890 }
 0x72e   : > { %4900 = vst.msk [vmem:[%s8898_s17 - $0x4] sm:$0xf0] %vm4899_vm4, %v4891_v14  ;;  %v4919_v15 = vpop.permute.xlu1 %4918 }
 0x72f   : > { %4928 = vst.msk [vmem:[%s8898_s17 - $0x5] sm:$0xe0] %vm4927_vm0, %v4919_v15 }
 0x731   : > { %v4895_v11 = vpop.permute.xlu0 %4894 }
 0x732   : > { %4904 = vst.msk [vmem:[%s8898_s17 + $0xc] sm:$0xf] %vm4903_vm5, %v4895_v11  ;;  %v4923_v59 = vpop.permute.xlu1 %4922 }
 0x733   : > { %4932 = vst.msk [vmem:[%s8898_s17 + $0xb] sm:$0x1f] %vm4931_vm6, %v4923_v59 }
 0x735   : > { %v4921_v0 = vpop.permute.xlu0 %4920 }
 0x736   : > { %4930 = vst.msk [vmem:[%s8898_s17 + $0x3] sm:$0xff] %vm4929_vm7, %v4921_v0  ;;  %v4949_v63 = vpop.permute.xlu1 %4948 }
 0x737   : > { %4958 = vst.msk [vmem:[%s8898_s17 + $0x2] sm:$0xff] %vm4957_vm8, %v4949_v63 }
 0x739   : > { %v4947_v37 = vpop.permute.xlu0 %4946 }
 0x73a   : > { %4956 = vst.msk [vmem:[%s8898_s17 - $0x6] sm:$0xc0] %vm4955_vm9, %v4947_v37  ;;  %v4975_v10 = vpop.permute.xlu1 %4974 }
 0x73b   : > { %4984 = vst.msk [vmem:[%s8898_s17 - $0x7] sm:$0x80] %vm4983_vm10, %v4975_v10 }
 0x73d   : > { %v4951_v24 = vpop.permute.xlu0 %4950 }
 0x73e   : > { %4960 = vst.msk [vmem:[%s8898_s17 + $0xa] sm:$0x3f] %vm4959_vm11, %v4951_v24  ;;  %v4979_v41 = vpop.permute.xlu1 %4978 }
 0x73f   : > { %4988 = vst.msk [vmem:[%s8898_s17 + $0x9] sm:$0x7f] %vm4987_vm12, %v4979_v41 }
 0x741   : > { %v4977_v5 = vpop.permute.xlu0 %4976 }
 0x742   : > { %4986 = vst.msk [vmem:[%s8898_s17 + $0x1] sm:$0xff] %vm4985_vm13, %v4977_v5 }
 0x743   : > { %5455 = shalt.err (!%p5452_p3)
}
 0x744   : > { %s5456_s15 = scalar_lea.hbm %s9335_s18, 256  ;;  %s5460_s14 = scalar_lea.hbm %s9390_s7, 512 }
 0x745   : > { %p5457_p4 = scmp.ne.s32.totalorder %s9335_s18, %s5456_s15  ;;  %p5461_p9 = scmp.lt.s32.totalorder %s9335_s18, %s9390_s7 }
 0x746   : > { %p5462_p10 = scmp.lt.s32.totalorder %s5460_s14, %s5456_s15 }
 0x747   : > { %p5458_p7 = pnand %p5457_p4, %p5600_p5 }
 0x748   : > { %p5463_p11 = por %p5462_p10, %p5461_p9 }
 0x749   : > { %p5459_p8 = pneg %p5458_p7 }
 0x74b   : > { %p5464_p12 = pnand %p5463_p11, %p5459_p8 }
 0x74d   : > { %5467 = shalt.err (!%p5464_p12)
}
 0x74e   : > { %s5521_s16 = smov 128  }
 0x74f   : > { %5339 = dma.vmem_to_hbm [thread:$0]  (%p5600_p5), %s9337_s9, 256, %s9335_s18, %s9342_s28, %s5521_s16, %s5521_s16, %s5506_s19  }
 0x750 PF: > { %p5345_p13 = scmp.ge.s32.totalorder %s5502_s27, 2  ;;  %s5018_s20 = sand.u32 1, %s5490_s24  }
 0x751   : > { %s5019_s21 = scalar_lea.sflag [#allocation5], %s5018_s20 }
 0x752   : > { %p5342_p0 = pnand %p5345_p13, %p5604_p6 }
 0x754   : > { %p5343_p1 = pneg %p5342_p0 }
 0x756   : > { %5485 = dma.done.wait (%p5343_p1), %s5019_s21, 256  }
 0x757   : > { %5487 = vsyncadd (%p5343_p1), %s5019_s21, 4294967040  ;;  %p17_p2 = scmp.ge.s32.totalorder %s5587_s30, 4   ;;  %s9979_s24 = smov %s5494_s25 }
 0x758   : > { %s9980_s25 = smov %s5498_s26  ;;  %s9981_s26 = smov %s5598_s10 }
 0x759   : > { %s9982_s27 = smov %s5587_s30  ;;  %19 = sbr.rel (!%p17_p2) target bundleno = 3 (0x3), region = 89 }
 0x75e   :  { %5024 = vsyncpa [#allocation5], 1 }
 0x75f   :  { %5026 = vsyncpa [#allocation5 + $0x1], 1 }

</bundles_post_ra>
